<compile_context>
chip_gen: v7x
topology: tpu7x:2x2x1
jax: 0.10.0
libtpu: 0.0.40
codegen_flags: <defaults>
</compile_context>

<pallas_src>
import functools

import jax
import jax.numpy as jnp
import numpy as np
from jax.experimental import pallas as pl
from jax.experimental.pallas import tpu as pltpu

# (original ConvTranspose2d kernel tap, padded-input window start) per output parity.
_TERMS = {0: ((1, 1), (3, 0)), 1: ((0, 2), (2, 1))}


def _parity_accumulate(x, w, H, W, Cin):
    """4 accumulating MXU matmuls per output parity (no channel concat).

    x: (B, H+2, W+2, Cin) bf16 -- already ReLU'd and zero-padded
    w: (4, 4, Cin, Cout)  bf16 -- (parity, tap, Cin, Cout)
    returns list of 4 f32 (B*H*W, Cout) accumulators in parity order rh*2+rw.
    """
    B = x.shape[0]
    M = B * H * W
    # 9 shared shifted windows, flattened once and reused across parities.
    win = {}
    for sh in (0, 1, 2):
        for sw in (0, 1, 2):
            win[(sh, sw)] = x[:, sh:sh + H, sw:sw + W, :].reshape(M, Cin)
    accs = []
    for rh in (0, 1):
        for rw in (0, 1):
            p = rh * 2 + rw
            acc = None
            t = 0
            for _, sh in _TERMS[rh]:
                for _, sw in _TERMS[rw]:
                    d = jnp.dot(win[(sh, sw)], w[p, t],
                                preferred_element_type=jnp.float32)
                    acc = d if acc is None else acc + d
                    t += 1
            accs.append(acc)
    return accs


def _convtr_bn_kernel(xp_ref, w_ref, o_ref, stats_ref, *, H, W, Cin, Cout):
    """ConvTranspose2d (bias omitted: BatchNorm cancels it) + per-block BN partials.

    o_ref    : (B, H*W, 4*Cout) bf16 -- 4 output parities folded onto the lane axis
    stats_ref: (8, Cout) f32         -- row 0: sum, row 1: sum of squares
    """
    B = xp_ref.shape[0]
    x = xp_ref[...]
    w = w_ref[...]
    accs = _parity_accumulate(x, w, H, W, Cin)

    s = jnp.zeros((1, Cout), jnp.float32)
    q = jnp.zeros((1, Cout), jnp.float32)
    for a in accs:
        s = s + jnp.sum(a, axis=0, keepdims=True)
        q = q + jnp.sum(a * a, axis=0, keepdims=True)
    stats_ref[...] = jnp.concatenate(
        [s, q, jnp.zeros((6, Cout), jnp.float32)], axis=0)

    y = jnp.concatenate([a.astype(o_ref.dtype) for a in accs], axis=-1)
    o_ref[...] = y.reshape(B, H * W, 4 * Cout)


def _convtr_tanh_kernel(xp_ref, w_ref, b_ref, o_ref, *, H, W, Cin, Cout):
    """Outermost path: ConvTranspose2d + bias + tanh, fused in one kernel."""
    B = xp_ref.shape[0]
    x = xp_ref[...]
    w = w_ref[...]
    bias = b_ref[...]                                    # (1, Cout) f32
    accs = _parity_accumulate(x, w, H, W, Cin)
    y = jnp.concatenate([jnp.tanh(a + bias) for a in accs], axis=-1)
    o_ref[...] = y.astype(o_ref.dtype).reshape(B, H * W, 4 * Cout)


def _vmem_budgets():
    """(batch-block picker budget, scoped vmem_limit_bytes), generation aware."""
    try:
        cap = int(pltpu.get_tpu_info().vmem_capacity_bytes)
    except Exception:
        cap = 64 * 1024 * 1024                           # conservative (v7x-sized)
    if cap >= 100 * 1024 * 1024:                         # v5e / v6e: 128 MiB per TC
        return 36 * 1024 * 1024, 88 * 1024 * 1024
    return 14 * 1024 * 1024, 40 * 1024 * 1024            # v7x: 64 MiB per TC


def _pick_batch_block(N, H, W, Cin, Cout, budget_bytes, out_bytes):
    """Largest batch block dividing N that fits the VMEM budget, capped so the grid
    has >= 2 steps when N >= 2 (so v7x can shard the 'parallel' axis on both TCs)."""
    def est(b):
        m = b * H * W
        in_blk = b * (H + 2) * (W + 2) * Cin * 2          # bf16 padded input block
        out_blk = m * 4 * Cout * out_bytes                # output block
        wins = 9 * m * Cin * 2                            # shared shifted windows
        acc = 4 * m * Cout * 4                            # f32 parity accumulators
        wgt = 2 * 4 * 4 * Cin * Cout * 2                  # double-buffered weights
        return 2 * (in_blk + out_blk) + wins + acc + wgt
    cap = max(1, N // 2)
    for b in range(cap, 0, -1):
        if N % b == 0 and est(b) <= budget_bytes:
            return b
    return 1


def unet_skip_connection_d_block(x_nchw, weight, bias, gamma, beta,
                                 *, outermost=False, eps=1e-5):
    """Forward of UnetSkipConnectionDBlock.

    x_nchw: (N, inner_nc, H, W)          -- NCHW, like PyTorch
    weight: (inner_nc, outer_nc, 4, 4)   -- nn.ConvTranspose2d weight layout
    bias  : (outer_nc,)
    gamma, beta: (outer_nc,)             -- BatchNorm2d affine params
    returns (N, outer_nc, 2H, 2W) in NCHW.
    """
    N, Cin, H, W = x_nchw.shape
    Cout = weight.shape[1]

    # ---- layout prep (XLA, fused): ReLU + NHWC + zero pad + bf16 cast -------
    x = jnp.maximum(x_nchw, 0.0)
    x = jnp.transpose(x, (0, 2, 3, 1))                               # NHWC
    x_pad = jnp.pad(x, ((0, 0), (1, 1), (1, 1), (0, 0))).astype(jnp.bfloat16)

    # Per-parity / per-tap packed weights: (4, 4, Cin, Cout).
    w_k = jnp.transpose(weight, (2, 3, 0, 1)).astype(jnp.float32)    # (kh,kw,Cin,Cout)
    w_pack = jnp.stack(
        [jnp.stack([w_k[kh, kw] for kh, _ in _TERMS[rh] for kw, _ in _TERMS[rw]],
                   axis=0)
         for rh in (0, 1) for rw in (0, 1)], axis=0).astype(jnp.bfloat16)

    pick_budget, vmem_limit = _vmem_budgets()
    out_dtype = jnp.float32 if outermost else jnp.bfloat16
    out_bytes = 4 if outermost else 2
    B_blk = _pick_batch_block(N, H, W, Cin, Cout, pick_budget, out_bytes)
    G = N // B_blk

    x_spec = pl.BlockSpec((B_blk, H + 2, W + 2, Cin), lambda n: (n, 0, 0, 0))
    w_spec = pl.BlockSpec((4, 4, Cin, Cout), lambda n: (0, 0, 0, 0))
    y_spec = pl.BlockSpec((B_blk, H * W, 4 * Cout), lambda n: (n, 0, 0))
    cparams = pltpu.CompilerParams(
        dimension_semantics=("parallel",),               # batch grid: shardable on v7x
        vmem_limit_bytes=vmem_limit)

    if outermost:
        b2 = bias.reshape(1, Cout).astype(jnp.float32)
        y = pl.pallas_call(
            functools.partial(_convtr_tanh_kernel, H=H, W=W, Cin=Cin, Cout=Cout),
            out_shape=jax.ShapeDtypeStruct((N, H * W, 4 * Cout), out_dtype),
            grid=(G,),
            in_specs=[x_spec, w_spec, pl.BlockSpec((1, Cout), lambda n: (0, 0))],
            out_specs=y_spec,
            compiler_params=cparams,
        )(x_pad, w_pack, b2)
        y6 = y.astype(jnp.float32).reshape(N, H, W, 2, 2, Cout)
    else:
        y, stats = pl.pallas_call(
            functools.partial(_convtr_bn_kernel, H=H, W=W, Cin=Cin, Cout=Cout),
            out_shape=(jax.ShapeDtypeStruct((N, H * W, 4 * Cout), out_dtype),
                       jax.ShapeDtypeStruct((G * 8, Cout), jnp.float32)),
            grid=(G,),
            in_specs=[x_spec, w_spec],
            out_specs=(y_spec, pl.BlockSpec((8, Cout), lambda n: (n, 0))),
            compiler_params=cparams,
        )(x_pad, w_pack)

        # ---- training-mode BatchNorm2d: tiny partial reduction + affine in XLA
        #      (the affine fuses into the final transpose; no extra HBM pass). ----
        stats = stats.reshape(G, 8, Cout)
        M = 4.0 * N * H * W                              # elements per channel
        tot = jnp.sum(stats[:, 0, :], axis=0)
        tot2 = jnp.sum(stats[:, 1, :], axis=0)
        mean = tot / M
        var = jnp.maximum(tot2 / M - mean * mean, 0.0)   # biased (training) variance
        scale = gamma.astype(jnp.float32) * jax.lax.rsqrt(var + eps)
        shift = beta.astype(jnp.float32) - mean * scale
        # Note: conv bias is omitted above — it is exactly cancelled by the mean
        # subtraction, so the normalized output is identical.
        y6 = y.astype(jnp.float32).reshape(N, H, W, 2, 2, Cout) * scale + shift
        # TODO(synk): running_mean/running_var buffer updates (training-time side
        # effect in PyTorch) are not reproduced; forward output is unaffected.

    # ---- single combined parity interleave + NHWC->NCHW transpose ------------
    out = jnp.transpose(y6, (0, 5, 1, 3, 2, 4)).reshape(N, Cout, 2 * H, 2 * W)
    return out


def _reference(x, w, b, gamma, beta, *, outermost=False, eps=1e-5):
    """Pure-JAX reference matching PyTorch semantics (NCHW)."""
    xr = jnp.maximum(x, 0.0)
    w_conv = jnp.transpose(w[:, :, ::-1, ::-1], (1, 0, 2, 3))        # (Cout,Cin,4,4)
    y = jax.lax.conv_general_dilated(
        xr, w_conv, window_strides=(1, 1), padding=((2, 2), (2, 2)),
        lhs_dilation=(2, 2), dimension_numbers=("NCHW", "OIHW", "NCHW"),
    ) + b[None, :, None, None]
    if outermost:
        return jnp.tanh(y)
    mean = jnp.mean(y, axis=(0, 2, 3), keepdims=True)
    var = jnp.mean((y - mean) ** 2, axis=(0, 2, 3), keepdims=True)
    return ((y - mean) * jax.lax.rsqrt(var + eps)
            * gamma[None, :, None, None] + beta[None, :, None, None])


if __name__ == "__main__":
    key = jax.random.PRNGKey(0)
    kx, kw, kb = jax.random.split(key, 3)

    N, inner_nc, outer_nc, H, W = 2, 8, 4, 16, 16
    x = jax.random.normal(kx, (N, inner_nc, H, W), jnp.float32)
    weight = 0.1 * jax.random.normal(kw, (inner_nc, outer_nc, 4, 4), jnp.float32)
    bias = 0.1 * jax.random.normal(kb, (outer_nc,), jnp.float32)
    gamma = jnp.ones((outer_nc,), jnp.float32)     # fresh nn.BatchNorm2d affine init
    beta = jnp.zeros((outer_nc,), jnp.float32)

    ok = True
    for outermost in (False, True):
        out = jax.block_until_ready(
            unet_skip_connection_d_block(x, weight, bias, gamma, beta,
                                         outermost=outermost))
        ref = jax.block_until_ready(
            _reference(x, weight, bias, gamma, beta, outermost=outermost))
        assert out.shape == (N, outer_nc, 2 * H, 2 * W), out.shape
        if not np.allclose(np.asarray(out), np.asarray(ref), rtol=2e-2, atol=2e-2):
            ok = False
            err = float(np.max(np.abs(np.asarray(out) - np.asarray(ref))))
            print("mismatch (outermost=%s): max abs err %.3e" % (outermost, err))
    if not ok:
        raise SystemExit(1)
    print("KERNEL_OK")
</pallas_src>

<mosaic_0001>
module attributes {stable_mosaic.version = 11 : i64} {
  func.func @_convtr_bn_kernel(%arg0: i32, %arg1: memref<1x18x18x8xbf16, #tpu.memory_space<vmem>>, %arg2: memref<4x4x8x4xbf16, #tpu.memory_space<vmem>>, %arg3: memref<1x256x16xbf16, #tpu.memory_space<vmem>>, %arg4: memref<8x4xf32, #tpu.memory_space<vmem>>) attributes {dimension_semantics = [#tpu.dimension_semantics<parallel>], iteration_bounds = array<i64: 2>, scalar_prefetch = 0 : i64, scratch_operands = 0 : i64, tpu.core_type = #tpu.core_type<tc>, window_params = [{transform_indices = @transform_0, window_bounds = array<i64: 1, 18, 18, 8>}, {pipeline_mode = #tpu.pipeline_mode<synchronous>, transform_indices = @transform_1, window_bounds = array<i64: 4, 4, 8, 4>}, {transform_indices = @transform_2, window_bounds = array<i64: 1, 256, 16>}, {transform_indices = @transform_3, window_bounds = array<i64: 8, 4>}]} {
    %c0 = arith.constant 0 : index
    %c0_0 = arith.constant 0 : index
    %c0_1 = arith.constant 0 : index
    %c0_2 = arith.constant 0 : index
    %0 = vector.load %arg1[%c0, %c0_0, %c0_1, %c0_2] : memref<1x18x18x8xbf16, #tpu.memory_space<vmem>>, vector<1x18x18x8xbf16>
    %c0_3 = arith.constant 0 : index
    %c0_4 = arith.constant 0 : index
    %c0_5 = arith.constant 0 : index
    %c0_6 = arith.constant 0 : index
    %1 = vector.load %arg2[%c0_3, %c0_4, %c0_5, %c0_6] : memref<4x4x8x4xbf16, #tpu.memory_space<vmem>>, vector<4x4x8x4xbf16>
    %2 = vector.extract_strided_slice %0 {offsets = [0, 0, 0, 0], sizes = [1, 16, 16, 8], strides = [1, 1, 1, 1]} : vector<1x18x18x8xbf16> to vector<1x16x16x8xbf16>
    %3 = vector.shape_cast %2 : vector<1x16x16x8xbf16> to vector<256x8xbf16>
    %4 = vector.extract_strided_slice %0 {offsets = [0, 0, 1, 0], sizes = [1, 16, 16, 8], strides = [1, 1, 1, 1]} : vector<1x18x18x8xbf16> to vector<1x16x16x8xbf16>
    %5 = vector.shape_cast %4 : vector<1x16x16x8xbf16> to vector<256x8xbf16>
    %6 = vector.extract_strided_slice %0 {offsets = [0, 0, 2, 0], sizes = [1, 16, 16, 8], strides = [1, 1, 1, 1]} : vector<1x18x18x8xbf16> to vector<1x16x16x8xbf16>
    %7 = vector.shape_cast %6 : vector<1x16x16x8xbf16> to vector<256x8xbf16>
    %8 = vector.extract_strided_slice %0 {offsets = [0, 1, 0, 0], sizes = [1, 16, 16, 8], strides = [1, 1, 1, 1]} : vector<1x18x18x8xbf16> to vector<1x16x16x8xbf16>
    %9 = vector.shape_cast %8 : vector<1x16x16x8xbf16> to vector<256x8xbf16>
    %10 = vector.extract_strided_slice %0 {offsets = [0, 1, 1, 0], sizes = [1, 16, 16, 8], strides = [1, 1, 1, 1]} : vector<1x18x18x8xbf16> to vector<1x16x16x8xbf16>
    %11 = vector.shape_cast %10 : vector<1x16x16x8xbf16> to vector<256x8xbf16>
    %12 = vector.extract_strided_slice %0 {offsets = [0, 1, 2, 0], sizes = [1, 16, 16, 8], strides = [1, 1, 1, 1]} : vector<1x18x18x8xbf16> to vector<1x16x16x8xbf16>
    %13 = vector.shape_cast %12 : vector<1x16x16x8xbf16> to vector<256x8xbf16>
    %14 = vector.extract_strided_slice %0 {offsets = [0, 2, 0, 0], sizes = [1, 16, 16, 8], strides = [1, 1, 1, 1]} : vector<1x18x18x8xbf16> to vector<1x16x16x8xbf16>
    %15 = vector.shape_cast %14 : vector<1x16x16x8xbf16> to vector<256x8xbf16>
    %16 = vector.extract_strided_slice %0 {offsets = [0, 2, 1, 0], sizes = [1, 16, 16, 8], strides = [1, 1, 1, 1]} : vector<1x18x18x8xbf16> to vector<1x16x16x8xbf16>
    %17 = vector.shape_cast %16 : vector<1x16x16x8xbf16> to vector<256x8xbf16>
    %18 = vector.extract_strided_slice %0 {offsets = [0, 2, 2, 0], sizes = [1, 16, 16, 8], strides = [1, 1, 1, 1]} : vector<1x18x18x8xbf16> to vector<1x16x16x8xbf16>
    %19 = vector.shape_cast %18 : vector<1x16x16x8xbf16> to vector<256x8xbf16>
    %20 = vector.extract_strided_slice %1 {offsets = [0, 0, 0, 0], sizes = [1, 1, 8, 4], strides = [1, 1, 1, 1]} : vector<4x4x8x4xbf16> to vector<1x1x8x4xbf16>
    %21 = vector.shape_cast %20 : vector<1x1x8x4xbf16> to vector<8x4xbf16>
    %cst = arith.constant dense<0.000000e+00> : vector<256x4xf32>
    %22 = tpu.matmul %11, %21, %cst {dimension_numbers = #tpu.dot_dimension_numbers<[1], [0], [0], [1], [0, 0, 1, 1], [], []>} : vector<256x8xbf16>, vector<8x4xbf16>, vector<256x4xf32> -> vector<256x4xf32>
    %23 = vector.extract_strided_slice %1 {offsets = [0, 1, 0, 0], sizes = [1, 1, 8, 4], strides = [1, 1, 1, 1]} : vector<4x4x8x4xbf16> to vector<1x1x8x4xbf16>
    %24 = vector.shape_cast %23 : vector<1x1x8x4xbf16> to vector<8x4xbf16>
    %cst_7 = arith.constant dense<0.000000e+00> : vector<256x4xf32>
    %25 = tpu.matmul %9, %24, %cst_7 {dimension_numbers = #tpu.dot_dimension_numbers<[1], [0], [0], [1], [0, 0, 1, 1], [], []>} : vector<256x8xbf16>, vector<8x4xbf16>, vector<256x4xf32> -> vector<256x4xf32>
    %26 = arith.addf %22, %25 : vector<256x4xf32>
    %27 = vector.extract_strided_slice %1 {offsets = [0, 2, 0, 0], sizes = [1, 1, 8, 4], strides = [1, 1, 1, 1]} : vector<4x4x8x4xbf16> to vector<1x1x8x4xbf16>
    %28 = vector.shape_cast %27 : vector<1x1x8x4xbf16> to vector<8x4xbf16>
    %cst_8 = arith.constant dense<0.000000e+00> : vector<256x4xf32>
    %29 = tpu.matmul %5, %28, %cst_8 {dimension_numbers = #tpu.dot_dimension_numbers<[1], [0], [0], [1], [0, 0, 1, 1], [], []>} : vector<256x8xbf16>, vector<8x4xbf16>, vector<256x4xf32> -> vector<256x4xf32>
    %30 = arith.addf %26, %29 : vector<256x4xf32>
    %31 = vector.extract_strided_slice %1 {offsets = [0, 3, 0, 0], sizes = [1, 1, 8, 4], strides = [1, 1, 1, 1]} : vector<4x4x8x4xbf16> to vector<1x1x8x4xbf16>
    %32 = vector.shape_cast %31 : vector<1x1x8x4xbf16> to vector<8x4xbf16>
    %cst_9 = arith.constant dense<0.000000e+00> : vector<256x4xf32>
    %33 = tpu.matmul %3, %32, %cst_9 {dimension_numbers = #tpu.dot_dimension_numbers<[1], [0], [0], [1], [0, 0, 1, 1], [], []>} : vector<256x8xbf16>, vector<8x4xbf16>, vector<256x4xf32> -> vector<256x4xf32>
    %34 = arith.addf %30, %33 : vector<256x4xf32>
    %35 = vector.extract_strided_slice %1 {offsets = [1, 0, 0, 0], sizes = [1, 1, 8, 4], strides = [1, 1, 1, 1]} : vector<4x4x8x4xbf16> to vector<1x1x8x4xbf16>
    %36 = vector.shape_cast %35 : vector<1x1x8x4xbf16> to vector<8x4xbf16>
    %cst_10 = arith.constant dense<0.000000e+00> : vector<256x4xf32>
    %37 = tpu.matmul %13, %36, %cst_10 {dimension_numbers = #tpu.dot_dimension_numbers<[1], [0], [0], [1], [0, 0, 1, 1], [], []>} : vector<256x8xbf16>, vector<8x4xbf16>, vector<256x4xf32> -> vector<256x4xf32>
    %38 = vector.extract_strided_slice %1 {offsets = [1, 1, 0, 0], sizes = [1, 1, 8, 4], strides = [1, 1, 1, 1]} : vector<4x4x8x4xbf16> to vector<1x1x8x4xbf16>
    %39 = vector.shape_cast %38 : vector<1x1x8x4xbf16> to vector<8x4xbf16>
    %cst_11 = arith.constant dense<0.000000e+00> : vector<256x4xf32>
    %40 = tpu.matmul %11, %39, %cst_11 {dimension_numbers = #tpu.dot_dimension_numbers<[1], [0], [0], [1], [0, 0, 1, 1], [], []>} : vector<256x8xbf16>, vector<8x4xbf16>, vector<256x4xf32> -> vector<256x4xf32>
    %41 = arith.addf %37, %40 : vector<256x4xf32>
    %42 = vector.extract_strided_slice %1 {offsets = [1, 2, 0, 0], sizes = [1, 1, 8, 4], strides = [1, 1, 1, 1]} : vector<4x4x8x4xbf16> to vector<1x1x8x4xbf16>
    %43 = vector.shape_cast %42 : vector<1x1x8x4xbf16> to vector<8x4xbf16>
    %cst_12 = arith.constant dense<0.000000e+00> : vector<256x4xf32>
    %44 = tpu.matmul %7, %43, %cst_12 {dimension_numbers = #tpu.dot_dimension_numbers<[1], [0], [0], [1], [0, 0, 1, 1], [], []>} : vector<256x8xbf16>, vector<8x4xbf16>, vector<256x4xf32> -> vector<256x4xf32>
    %45 = arith.addf %41, %44 : vector<256x4xf32>
    %46 = vector.extract_strided_slice %1 {offsets = [1, 3, 0, 0], sizes = [1, 1, 8, 4], strides = [1, 1, 1, 1]} : vector<4x4x8x4xbf16> to vector<1x1x8x4xbf16>
    %47 = vector.shape_cast %46 : vector<1x1x8x4xbf16> to vector<8x4xbf16>
    %cst_13 = arith.constant dense<0.000000e+00> : vector<256x4xf32>
    %48 = tpu.matmul %5, %47, %cst_13 {dimension_numbers = #tpu.dot_dimension_numbers<[1], [0], [0], [1], [0, 0, 1, 1], [], []>} : vector<256x8xbf16>, vector<8x4xbf16>, vector<256x4xf32> -> vector<256x4xf32>
    %49 = arith.addf %45, %48 : vector<256x4xf32>
    %50 = vector.extract_strided_slice %1 {offsets = [2, 0, 0, 0], sizes = [1, 1, 8, 4], strides = [1, 1, 1, 1]} : vector<4x4x8x4xbf16> to vector<1x1x8x4xbf16>
    %51 = vector.shape_cast %50 : vector<1x1x8x4xbf16> to vector<8x4xbf16>
    %cst_14 = arith.constant dense<0.000000e+00> : vector<256x4xf32>
    %52 = tpu.matmul %17, %51, %cst_14 {dimension_numbers = #tpu.dot_dimension_numbers<[1], [0], [0], [1], [0, 0, 1, 1], [], []>} : vector<256x8xbf16>, vector<8x4xbf16>, vector<256x4xf32> -> vector<256x4xf32>
    %53 = vector.extract_strided_slice %1 {offsets = [2, 1, 0, 0], sizes = [1, 1, 8, 4], strides = [1, 1, 1, 1]} : vector<4x4x8x4xbf16> to vector<1x1x8x4xbf16>
    %54 = vector.shape_cast %53 : vector<1x1x8x4xbf16> to vector<8x4xbf16>
    %cst_15 = arith.constant dense<0.000000e+00> : vector<256x4xf32>
    %55 = tpu.matmul %15, %54, %cst_15 {dimension_numbers = #tpu.dot_dimension_numbers<[1], [0], [0], [1], [0, 0, 1, 1], [], []>} : vector<256x8xbf16>, vector<8x4xbf16>, vector<256x4xf32> -> vector<256x4xf32>
    %56 = arith.addf %52, %55 : vector<256x4xf32>
    %57 = vector.extract_strided_slice %1 {offsets = [2, 2, 0, 0], sizes = [1, 1, 8, 4], strides = [1, 1, 1, 1]} : vector<4x4x8x4xbf16> to vector<1x1x8x4xbf16>
    %58 = vector.shape_cast %57 : vector<1x1x8x4xbf16> to vector<8x4xbf16>
    %cst_16 = arith.constant dense<0.000000e+00> : vector<256x4xf32>
    %59 = tpu.matmul %11, %58, %cst_16 {dimension_numbers = #tpu.dot_dimension_numbers<[1], [0], [0], [1], [0, 0, 1, 1], [], []>} : vector<256x8xbf16>, vector<8x4xbf16>, vector<256x4xf32> -> vector<256x4xf32>
    %60 = arith.addf %56, %59 : vector<256x4xf32>
    %61 = vector.extract_strided_slice %1 {offsets = [2, 3, 0, 0], sizes = [1, 1, 8, 4], strides = [1, 1, 1, 1]} : vector<4x4x8x4xbf16> to vector<1x1x8x4xbf16>
    %62 = vector.shape_cast %61 : vector<1x1x8x4xbf16> to vector<8x4xbf16>
    %cst_17 = arith.constant dense<0.000000e+00> : vector<256x4xf32>
    %63 = tpu.matmul %9, %62, %cst_17 {dimension_numbers = #tpu.dot_dimension_numbers<[1], [0], [0], [1], [0, 0, 1, 1], [], []>} : vector<256x8xbf16>, vector<8x4xbf16>, vector<256x4xf32> -> vector<256x4xf32>
    %64 = arith.addf %60, %63 : vector<256x4xf32>
    %65 = vector.extract_strided_slice %1 {offsets = [3, 0, 0, 0], sizes = [1, 1, 8, 4], strides = [1, 1, 1, 1]} : vector<4x4x8x4xbf16> to vector<1x1x8x4xbf16>
    %66 = vector.shape_cast %65 : vector<1x1x8x4xbf16> to vector<8x4xbf16>
    %cst_18 = arith.constant dense<0.000000e+00> : vector<256x4xf32>
    %67 = tpu.matmul %19, %66, %cst_18 {dimension_numbers = #tpu.dot_dimension_numbers<[1], [0], [0], [1], [0, 0, 1, 1], [], []>} : vector<256x8xbf16>, vector<8x4xbf16>, vector<256x4xf32> -> vector<256x4xf32>
    %68 = vector.extract_strided_slice %1 {offsets = [3, 1, 0, 0], sizes = [1, 1, 8, 4], strides = [1, 1, 1, 1]} : vector<4x4x8x4xbf16> to vector<1x1x8x4xbf16>
    %69 = vector.shape_cast %68 : vector<1x1x8x4xbf16> to vector<8x4xbf16>
    %cst_19 = arith.constant dense<0.000000e+00> : vector<256x4xf32>
    %70 = tpu.matmul %17, %69, %cst_19 {dimension_numbers = #tpu.dot_dimension_numbers<[1], [0], [0], [1], [0, 0, 1, 1], [], []>} : vector<256x8xbf16>, vector<8x4xbf16>, vector<256x4xf32> -> vector<256x4xf32>
    %71 = arith.addf %67, %70 : vector<256x4xf32>
    %72 = vector.extract_strided_slice %1 {offsets = [3, 2, 0, 0], sizes = [1, 1, 8, 4], strides = [1, 1, 1, 1]} : vector<4x4x8x4xbf16> to vector<1x1x8x4xbf16>
    %73 = vector.shape_cast %72 : vector<1x1x8x4xbf16> to vector<8x4xbf16>
    %cst_20 = arith.constant dense<0.000000e+00> : vector<256x4xf32>
    %74 = tpu.matmul %13, %73, %cst_20 {dimension_numbers = #tpu.dot_dimension_numbers<[1], [0], [0], [1], [0, 0, 1, 1], [], []>} : vector<256x8xbf16>, vector<8x4xbf16>, vector<256x4xf32> -> vector<256x4xf32>
    %75 = arith.addf %71, %74 : vector<256x4xf32>
    %76 = vector.extract_strided_slice %1 {offsets = [3, 3, 0, 0], sizes = [1, 1, 8, 4], strides = [1, 1, 1, 1]} : vector<4x4x8x4xbf16> to vector<1x1x8x4xbf16>
    %77 = vector.shape_cast %76 : vector<1x1x8x4xbf16> to vector<8x4xbf16>
    %cst_21 = arith.constant dense<0.000000e+00> : vector<256x4xf32>
    %78 = tpu.matmul %11, %77, %cst_21 {dimension_numbers = #tpu.dot_dimension_numbers<[1], [0], [0], [1], [0, 0, 1, 1], [], []>} : vector<256x8xbf16>, vector<8x4xbf16>, vector<256x4xf32> -> vector<256x4xf32>
    %79 = arith.addf %75, %78 : vector<256x4xf32>
    %cst_22 = arith.constant 0.000000e+00 : f32
    %80 = vector.broadcast %cst_22 : f32 to vector<1x4xf32>
    %cst_23 = arith.constant 0.000000e+00 : f32
    %81 = vector.broadcast %cst_23 : f32 to vector<1x4xf32>
    %cst_24 = arith.constant dense<0.000000e+00> : vector<4xf32>
    %82 = vector.multi_reduction <add>, %34, %cst_24 [0] : vector<256x4xf32> to vector<4xf32>
    %83 = vector.shape_cast %82 : vector<4xf32> to vector<1x4xf32>
    %84 = arith.addf %80, %83 : vector<1x4xf32>
    %85 = arith.mulf %34, %34 : vector<256x4xf32>
    %cst_25 = arith.constant dense<0.000000e+00> : vector<4xf32>
    %86 = vector.multi_reduction <add>, %85, %cst_25 [0] : vector<256x4xf32> to vector<4xf32>
    %87 = vector.shape_cast %86 : vector<4xf32> to vector<1x4xf32>
    %88 = arith.addf %81, %87 : vector<1x4xf32>
    %cst_26 = arith.constant dense<0.000000e+00> : vector<4xf32>
    %89 = vector.multi_reduction <add>, %49, %cst_26 [0] : vector<256x4xf32> to vector<4xf32>
    %90 = vector.shape_cast %89 : vector<4xf32> to vector<1x4xf32>
    %91 = arith.addf %84, %90 : vector<1x4xf32>
    %92 = arith.mulf %49, %49 : vector<256x4xf32>
    %cst_27 = arith.constant dense<0.000000e+00> : vector<4xf32>
    %93 = vector.multi_reduction <add>, %92, %cst_27 [0] : vector<256x4xf32> to vector<4xf32>
    %94 = vector.shape_cast %93 : vector<4xf32> to vector<1x4xf32>
    %95 = arith.addf %88, %94 : vector<1x4xf32>
    %cst_28 = arith.constant dense<0.000000e+00> : vector<4xf32>
    %96 = vector.multi_reduction <add>, %64, %cst_28 [0] : vector<256x4xf32> to vector<4xf32>
    %97 = vector.shape_cast %96 : vector<4xf32> to vector<1x4xf32>
    %98 = arith.addf %91, %97 : vector<1x4xf32>
    %99 = arith.mulf %64, %64 : vector<256x4xf32>
    %cst_29 = arith.constant dense<0.000000e+00> : vector<4xf32>
    %100 = vector.multi_reduction <add>, %99, %cst_29 [0] : vector<256x4xf32> to vector<4xf32>
    %101 = vector.shape_cast %100 : vector<4xf32> to vector<1x4xf32>
    %102 = arith.addf %95, %101 : vector<1x4xf32>
    %cst_30 = arith.constant dense<0.000000e+00> : vector<4xf32>
    %103 = vector.multi_reduction <add>, %79, %cst_30 [0] : vector<256x4xf32> to vector<4xf32>
    %104 = vector.shape_cast %103 : vector<4xf32> to vector<1x4xf32>
    %105 = arith.addf %98, %104 : vector<1x4xf32>
    %106 = arith.mulf %79, %79 : vector<256x4xf32>
    %cst_31 = arith.constant dense<0.000000e+00> : vector<4xf32>
    %107 = vector.multi_reduction <add>, %106, %cst_31 [0] : vector<256x4xf32> to vector<4xf32>
    %108 = vector.shape_cast %107 : vector<4xf32> to vector<1x4xf32>
    %109 = arith.addf %102, %108 : vector<1x4xf32>
    %cst_32 = arith.constant 0.000000e+00 : f32
    %110 = vector.broadcast %cst_32 : f32 to vector<6x4xf32>
    %111 = tpu.concatenate %105, %109, %110 in 0 : vector<1x4xf32>, vector<1x4xf32>, vector<6x4xf32> -> vector<8x4xf32>
    %c0_33 = arith.constant 0 : index
    %c0_34 = arith.constant 0 : index
    %112 = vector.load %arg4[%c0_33, %c0_34] : memref<8x4xf32, #tpu.memory_space<vmem>>, vector<8x4xf32>
    tpu.vector_store %arg4[%c0_33, %c0_34], %111 {strides = array<i32>} : memref<8x4xf32, #tpu.memory_space<vmem>>, vector<8x4xf32>,
    %113 = arith.truncf %34 : vector<256x4xf32> to vector<256x4xbf16>
    %114 = arith.truncf %49 : vector<256x4xf32> to vector<256x4xbf16>
    %115 = arith.truncf %64 : vector<256x4xf32> to vector<256x4xbf16>
    %116 = arith.truncf %79 : vector<256x4xf32> to vector<256x4xbf16>
    %117 = tpu.concatenate %113, %114, %115, %116 in 1 : vector<256x4xbf16>, vector<256x4xbf16>, vector<256x4xbf16>, vector<256x4xbf16> -> vector<256x16xbf16>
    %118 = vector.shape_cast %117 : vector<256x16xbf16> to vector<1x256x16xbf16>
    %c0_35 = arith.constant 0 : index
    %c0_36 = arith.constant 0 : index
    %c0_37 = arith.constant 0 : index
    %119 = vector.load %arg3[%c0_35, %c0_36, %c0_37] : memref<1x256x16xbf16, #tpu.memory_space<vmem>>, vector<1x256x16xbf16>
    tpu.vector_store %arg3[%c0_35, %c0_36, %c0_37], %118 {strides = array<i32>} : memref<1x256x16xbf16, #tpu.memory_space<vmem>>, vector<1x256x16xbf16>,
    return
  }
  func.func @transform_0(%arg0: i32) -> (i32, i32, i32, i32) {
    %c0_i32 = arith.constant 0 : i32
    %c0_i32_0 = arith.constant 0 : i32
    %c0_i32_1 = arith.constant 0 : i32
    %c0_i32_2 = arith.constant 0 : i32
    return %arg0, %c0_i32, %c0_i32_0, %c0_i32_1 : i32, i32, i32, i32
  }
  func.func @transform_1(%arg0: i32) -> (i32, i32, i32, i32) {
    %c0_i32 = arith.constant 0 : i32
    %c0_i32_0 = arith.constant 0 : i32
    %c0_i32_1 = arith.constant 0 : i32
    %c0_i32_2 = arith.constant 0 : i32
    %c0_i32_3 = arith.constant 0 : i32
    return %c0_i32, %c0_i32_0, %c0_i32_1, %c0_i32_2 : i32, i32, i32, i32
  }
  func.func @transform_2(%arg0: i32) -> (i32, i32, i32) {
    %c0_i32 = arith.constant 0 : i32
    %c0_i32_0 = arith.constant 0 : i32
    %c0_i32_1 = arith.constant 0 : i32
    return %arg0, %c0_i32, %c0_i32_0 : i32, i32, i32
  }
  func.func @transform_3(%arg0: i32) -> (i32, i32) {
    %c0_i32 = arith.constant 0 : i32
    %c0_i32_0 = arith.constant 0 : i32
    return %arg0, %c0_i32 : i32, i32
  }
}

</mosaic_0001>

<bundles_post_ra>
// kernel: tpu_custom_call.1
= control target key start
LH: loop header
LB: loop body
LE: loop exit
PB: predicated region body
PF: predicated region fallthrough
CT: control target
= control target key end

     0   :  { %s6972_s12 = smov 0   ;;  %s9394_s0 = inlined_call_operand.vmem [shape: bf16[2,18,18,8], index: 0, kind: input, shape index: {}]   ;;  %s9395_s1 = inlined_call_operand.vmem [shape: bf16[4,4,8,4], index: 1, kind: input, shape index: {}]   ;;  %s9396_s2 = inlined_call_operand.vmem [shape: bf16[2,256,16], index: 2, kind: output, shape index: {0}]   ;;  %s9397_s3 = inlined_call_operand.vmem [shape: f32[16,4], index: 3, kind: output, shape index: {1}]  }
   0x1 LB: > { %s5323_s13 = sadd.s32 4294967295, %s6947_s12   ;;  %p5327_p0 = scmp.ge.s32.totalorder %s6947_s12, 1  ;;  %s6947_s12 = sphi %s6972_s12, %s14_s12  }
   0x2   : > { %p140_p1 = scmp.lt.s32.totalorder %s6947_s12, 3 }
   0x4   : > { %p141_p2 = pnand %p5327_p0, %p140_p1 }
   0x6   : > { %144 = sbr.rel (%p141_p2) target bundleno = 903 (0x387), region = 28 }
   0xd   : > { %v238_v0 = vld [vmem:[%s9395_s1 + $0x4] sm:$0xf]  ;;  %vm968_vm0 = vcmask 1043456   ;;  %p168_p3 = scmp.lt.s32.totalorder %s5323_s13, 1  ;;  %v237_v2 = vld [vmem:[%s9395_s1] sm:$0xf] }
   0xe   : > { %6895 = vmatprep.subr.msk.bf16.mxu0 %vm968_vm0, %v238_v0  ;;  %v970_v1 = vsel %vm968_vm0, %v238_v0, 0  ;;  %v242_v3 = vld [vmem:[%s9395_s1 + $0x14] sm:$0xf]  ;;  %v241_v4 = vld [vmem:[%s9395_s1 + $0x10] sm:$0xf]  ;;  %vm919_vm3 = vcmask 64512  }
   0xf   : > { %5968 = vmatpush3.bf16.msra.mxu0 %v970_v1  ;;  %s9632_s13 = smov (!%p168_p3, %s5323_s13), 1  ;;  %6899 = vmatprep.subr.msk.bf16.mxu1 %vm968_vm0, %v242_v3  ;;  %v1798_v5 = vsel %vm968_vm0, %v242_v3, 0  ;;  %v7002_v6 = vld [vmem:[%s9395_s1 + $0x8] sm:$0xf]  ;;  %v7008_v7 = vld [vmem:[%s9395_s1 + $0x18] sm:$0xf] }
  0x10   : > { %6896 = vmatprep.subr.msk.bf16.mxu0 %vm968_vm0, %v237_v2  ;;  %s6911_s24 = smul.u32 216, %s9632_s13  ;;  %6104 = vmatpush3.bf16.msra.mxu1 %v1798_v5  ;;  %vm253_vm1 = vsmask.f32 3328  ;;  %vm254_vm2 = vsmask.f32 7440  ;;  %v1230_v8 = vsel %vm968_vm0, %v237_v2, 0 }
  0x11   : > { %6900 = vmatprep.subr.msk.bf16.mxu1 %vm968_vm0, %v241_v4  ;;  %v7018_v9 = vsel %vm968_vm0, %v241_v4, 0  ;;  %v7022_v10 = vsel %vm968_vm0, %v7002_v6, 0  ;;  %v7026_v11 = vsel %vm968_vm0, %v7008_v7, 0  ;;  %vm7069_vm4 = vmor %vm253_vm1, %vm254_vm2  ;;  %vm688_vm5 = vcmask 1042432   ;;  %s6949_s25 = smov 4   ;;  %s6950_s26 = smov 8  }
  0x12   : > { %s7014_s29 = scalar_lea.vmem %s9394_s0, %s6911_s24  ;;  %9485 = vst [vmem:[#allocation2_spill] sm:$0xff] %v7026_v11  ;;  %vm689_vm6 = vcmask 1046532   ;;  %vm4077_vm8 = vcmask 31744   ;;  %s6951_s27 = smov 12   ;;  %vm4766_vm9 = vcmask 1040384   ;;  %vm4768_vm10 = vcmask 1041408  }
  0x13   : > { %v7029_v12 = vld [vmem:[%s7014_s29 + $0xc] sm:$0xf]  ;;  %v7032_v13 = vld [vmem:[%s7014_s29 + $0x10] sm:$0xf]  ;;  %v7035_v14 = vld [vmem:[%s7014_s29 + $0x18] sm:$0xf] }
  0x14   : > { %v281_v15 = vshrl.u32 %v7029_v12, 16  ;;  %v284_v16 = vshll.u32 %v7029_v12, 16  ;;  %v290_v17 = vshll.u32 %v7032_v13, 16  ;;  %v294_v18 = vshrl.u32 %v7032_v13, 16  ;;  %v7042_v19 = vld [vmem:[%s7014_s29 + $0x1c] sm:$0xf]  ;;  %vm7483_vm7 = vmor %vm688_vm5, %vm689_vm6 }
  0x15   : > { %v7048_v22 = vcombine.low %v7029_v12, %v7032_v13  ;;  %v7051_v23 = vld [vmem:[%s7014_s29 + $0x20] sm:$0x1]  ;;  %v305_v24 = vshrl.u32 %v7035_v14, 16  ;;  %v308_v30 = vshll.u32 %v7035_v14, 16  ;;  %v314_v31 = vshll.u32 %v7042_v19, 16  ;;  %s5331_s28 = sshll.u32 %s9632_s13, 3 }
  0x16   : > { %v283_v25 = vrot.slane %v281_v15, 4  ;;  %v286_v26 = vrot.slane %v284_v16, 5  ;;  %v7054_v27 = vrot.slane %v290_v17, 5  ;;  %v296_v28 = vrot.slane %v294_v18, 4  ;;  %v7065_v37 = vld [vmem:[%s7014_s29 + $0x24] sm:$0xf]  ;;  %s181_s4 = scalar_lea.vmem %s9397_s3, %s5331_s28 }
  0x17   : > { %9486 = vst [vmem:[#allocation3_spill] sm:$0xff] %v7048_v22  ;;  %5969 = vmatprep.mubr.msk.bf16.mxu0 %vm919_vm3, %v7048_v22  ;;  %v307_v29 = vrot.slane %v305_v24, 4  ;;  %v318_v32 = vshrl.u32 %v7042_v19, 16  ;;  %v324_v35 = vshll.u32 %v7051_v23, 16  ;;  %v310_v39 = vrot.slane %v308_v30, 5  ;;  %s5694_s5 = sshll.u32 %s9632_s13, 7 }
  0x18   : > { %v287_v33 = vor.u32 %v286_v26, %v283_v25  ;;  %v297_v34 = vor.u32 %v296_v28, %v7054_v27  ;;  %v316_v40 = vrot.slane %v314_v31, 5  ;;  %v9398_v42 = vrot.slane %v7042_v19, 5  ;;  %v7075_v43 = vld [vmem:[%s7014_s29 + $0x28] sm:$0xf]  ;;  %v7086_v48 = vld [vmem:[%s7014_s29 + $0x2c] sm:$0x1]  ;;  %s9248_s13 = scalar_lea.vmem %s9396_s2, %s5694_s5 }
  0x19   : > { %v320_v41 = vrot.slane %v318_v32, 4  ;;  %v326_v46 = vrot.slane %v324_v35, 5  ;;  %v7083_v47 = vcombine.low %v7035_v14, %v7042_v19  ;;  %v311_v49 = vor.u32 %v310_v39, %v307_v29  ;;  %v7103_v57 = vld [vmem:[%s7014_s29 + $0x30] sm:$0xf]  ;;  %v7107_v62 = vld [vmem:[%s7014_s29 + $0x34] sm:$0xf] }
  0x1a   : > { %v7077_v44 = vrot.slane %v287_v33, 4  ;;  %v7079_v45 = vrot.slane %v297_v34, 4  ;;  %v7090_v51 = vrot.slane %v9398_v42, 4  ;;  %v329_v52 = vshrl.u32 %v7065_v37, 16  ;;  %v7114_v3 = vld [vmem:[%s7014_s29 + $0x38] sm:$0x1] }
  0x1b   : > { %9489 = vst [vmem:[#allocation4_spill] sm:$0xff] %v7083_v47  ;;  %v321_v50 = vor.u32 %v320_v41, %v316_v40  ;;  %5970 = vmatmul.mubr.msk.bf16.vlgmr.msra.gmra.mrb[0].mxu0 %vm919_vm3, %v7083_v47  ;;  %v332_v54 = vshll.u32 %v7065_v37, 16  ;;  %v338_v55 = vshll.u32 %v7075_v43, 16  ;;  %v342_v56 = vshrl.u32 %v7075_v43, 16  ;;  %v7135_v30 = vld [vmem:[%s7014_s29 + $0x3c] sm:$0xf] }
  0x1c   : > { %v293_v53 = vsel %vm7069_vm4, %v7077_v44, %v7054_v27  ;;  %v312_v58 = vrot.slane %v311_v49, 4  ;;  %6002 = vmatpush3.bf16.msra.mxu0 %v1230_v8  ;;  %v331_v60 = vrot.slane %v329_v52, 4  ;;  %v348_v61 = vshll.u32 %v7086_v48, 16  ;;  %v7282_v42 = vld [vmem:[%s7014_s29 + $0x78] sm:$0xf] }
  0x1d   : > { %v322_v59 = vrot.slane %v321_v50, 4  ;;  %v334_v63 = vrot.slane %v332_v54, 5  ;;  %v340_v0 = vrot.slane %v338_v55, 5  ;;  %v344_v1 = vrot.slane %v342_v56, 4  ;;  %6897 = vmatprep.subr.msk.bf16.mxu0 %vm968_vm0, %v7002_v6  ;;  %v7129_v6 = vld [vmem:[%s7014_s29 + $0x14] sm:$0x1] }
  0x1e   : > { %v7111_v2 = vcombine.low %v7065_v37, %v7075_v43  ;;  %v317_v4 = vsel %vm7069_vm4, %v312_v58, %v316_v40  ;;  %v350_v8 = vrot.slane %v348_v61, 5  ;;  %v353_v15 = vshrl.u32 %v7103_v57, 16  ;;  %v7152_v54 = vld [vmem:[%s7014_s29 + $0x44] sm:$0x1] }
  0x1f   : > { %v327_v5 = vsel %vm7069_vm4, %v322_v59, %v326_v46  ;;  %v335_v17 = vor.u32 %v334_v63, %v331_v60  ;;  %v345_v18 = vor.u32 %v344_v1, %v340_v0  ;;  %v356_v24 = vshll.u32 %v7103_v57, 16  ;;  %v7143_v46 = vld [vmem:[%s7014_s29 + $0x40] sm:$0xf] }
  0x20   : > { %9490 = vst [vmem:[#allocation5_spill] sm:$0xff] %v7111_v2  ;;  %v7123_v16 = vcombine.low %v317_v4, %v327_v5  ;;  %5973 = vmatprep.mubr.msk.bf16.mxu0 %vm919_vm3, %v7111_v2  ;;  %v355_v25 = vrot.slane %v353_v15, 4  ;;  %v362_v26 = vshll.u32 %v7107_v62, 16  ;;  %v366_v28 = vshrl.u32 %v7107_v62, 16 }
  0x21   : > { %v372_v29 = vshll.u32 %v7114_v3, 16  ;;  %v336_v31 = vrot.slane %v335_v17, 4  ;;  %v346_v32 = vrot.slane %v345_v18, 4  ;;  %v358_v33 = vrot.slane %v356_v24, 5  ;;  %v7165_v17 = vld [vmem:[%s7014_s29 + $0x48] sm:$0xf] }
  0x22   : > { %v7139_v34 = vcombine.low %v7103_v57, %v7107_v62  ;;  %v364_v35 = vrot.slane %v362_v26, 5  ;;  %v368_v39 = vrot.slane %v366_v28, 4  ;;  %v300_v41 = vshll.u32 %v7129_v6, 16  ;;  %v7177_v28 = vld [vmem:[%s7014_s29 + $0x4c] sm:$0xf] }
  0x23   : > { %v374_v40 = vrot.slane %v372_v29, 5  ;;  %v341_v49 = vsel %vm7069_vm4, %v336_v31, %v340_v0  ;;  %v351_v50 = vsel %vm7069_vm4, %v346_v32, %v350_v8  ;;  %v359_v52 = vor.u32 %v358_v33, %v355_v25 }
  0x24   : > { %9491 = vst [vmem:[#allocation6_spill] sm:$0xff] %v7139_v34  ;;  %5974 = vmatmul.mubr.msk.bf16.gmra.mrb[4].mxu0 %vm919_vm3, %v7139_v34  ;;  %v377_v55 = vshrl.u32 %v7135_v30, 16  ;;  %v7155_v56 = vcombine.low %v341_v49, %v351_v50  ;;  %v369_v58 = vor.u32 %v368_v39, %v364_v35  ;;  %v302_v59 = vrot.slane %v300_v41, 5  ;;  %v7202_v50 = vld [vmem:[%s7014_s29 + $0x54] sm:$0xf] }
  0x25   : > { %v380_v60 = vshll.u32 %v7135_v30, 16  ;;  %v360_v61 = vrot.slane %v359_v52, 4  ;;  %v386_v0 = vshll.u32 %v7143_v46, 16  ;;  %v390_v1 = vshrl.u32 %v7143_v46, 16 }
  0x26   : > { %v379_v63 = vrot.slane %v377_v55, 4  ;;  %v370_v4 = vrot.slane %v369_v58, 4  ;;  %v303_v5 = vsel %vm7069_vm4, %v7079_v45, %v302_v59  ;;  %v396_v15 = vshll.u32 %v7152_v54, 16  ;;  %v7180_v45 = vld [vmem:[%s7014_s29 + $0x50] sm:$0x1] }
  0x27   : > { %v382_v8 = vrot.slane %v380_v60, 5  ;;  %v365_v18 = vsel %vm7069_vm4, %v360_v61, %v364_v35  ;;  %v7174_v24 = vcombine.low %v293_v53, %v303_v5  ;;  %v388_v25 = vrot.slane %v386_v0, 5  ;;  %v7212_v60 = vld [vmem:[%s7014_s29 + $0x58] sm:$0xf] }
  0x28   : > { %v392_v26 = vrot.slane %v390_v1, 4  ;;  %v375_v29 = vsel %vm7069_vm4, %v370_v4, %v374_v40  ;;  %v398_v32 = vrot.slane %v396_v15, 5  ;;  %v7186_v33 = vcombine.low %v7135_v30, %v7143_v46 }
  0x29   : > { %v383_v31 = vor.u32 %v382_v8, %v379_v63  ;;  %v7188_v35 = vcombine.low %v365_v18, %v375_v29  ;;  %6105 = vmatprep.mubr.msk.bf16.mxu1 %vm919_vm3, %v7174_v24  ;;  %v401_v44 = vshrl.u32 %v7165_v17, 16  ;;  %v404_v53 = vshll.u32 %v7165_v17, 16 }
  0x2a   : > { %9492 = vst [vmem:[#allocation7_spill] sm:$0xff] %v7186_v33  ;;  %v393_v27 = vor.u32 %v392_v26, %v388_v25  ;;  %6106 = vmatmul.mubr.msk.bf16.vlgmr.msra.gmra.mrb[0].mxu1 %vm919_vm3, %v7123_v16  ;;  %5977 = vmatprep.mubr.msk.bf16.mxu0 %vm919_vm3, %v7186_v33  ;;  %v410_v40 = vshll.u32 %v7177_v28, 16  ;;  %v414_v41 = vshrl.u32 %v7177_v28, 16  ;;  %v420_v49 = vshll.u32 %v7180_v45, 16 }
  0x2b   : > { %v384_v39 = vrot.slane %v383_v31, 4  ;;  %6138 = vmatpush3.bf16.msra.mxu1 %v7018_v9  ;;  %v403_v55 = vrot.slane %v401_v44, 4  ;;  %v406_v58 = vrot.slane %v404_v53, 5  ;;  %v7207_v59 = vcombine.low %v7165_v17, %v7177_v28  ;;  %6109 = vmatprep.mubr.msk.bf16.mxu1 %vm919_vm3, %v7155_v56  ;;  %v7217_v9 = vld [vmem:[%s7014_s29 + $0x5c] sm:$0x1] }
  0x2c   : > { %v394_v52 = vrot.slane %v393_v27, 4  ;;  %v412_v63 = vrot.slane %v410_v40, 5  ;;  %v416_v0 = vrot.slane %v414_v41, 4  ;;  %v422_v1 = vrot.slane %v420_v49, 5  ;;  %6901 = vmatprep.subr.msk.bf16.mxu1 %vm968_vm0, %v7008_v7  ;;  %v7232_v7 = vld [vmem:[%s7014_s29 + $0x60] sm:$0xf] }
  0x2d   : > { %9493 = vst [vmem:[#allocation8_spill] sm:$0xff] %v7207_v59  ;;  %v389_v61 = vsel %vm7069_vm4, %v384_v39, %v388_v25  ;;  %v407_v5 = vor.u32 %v406_v58, %v403_v55  ;;  %5978 = vmatmul.mubr.msk.bf16.gmra.mrb[8].mxu0 %vm919_vm3, %v7207_v59  ;;  %v425_v8 = vshrl.u32 %v7202_v50, 16  ;;  %v428_v15 = vshll.u32 %v7202_v50, 16  ;;  %v7236_v53 = vld [vmem:[%s7014_s29 + $0x64] sm:$0xf] }
  0x2e   : > { %v399_v4 = vsel %vm7069_vm4, %v394_v52, %v398_v32  ;;  %v417_v25 = vor.u32 %v416_v0, %v412_v63  ;;  %v434_v26 = vshll.u32 %v7212_v60, 16  ;;  %v438_v29 = vshrl.u32 %v7212_v60, 16 }
  0x2f   : > { %v7227_v18 = vcombine.low %v389_v61, %v399_v4  ;;  %v408_v31 = vrot.slane %v407_v5, 4  ;;  %v427_v32 = vrot.slane %v425_v8, 4  ;;  %v430_v27 = vrot.slane %v428_v15, 5  ;;  %v7245_v61 = vld [vmem:[%s7014_s29 + $0x68] sm:$0x1] }
  0x30   : > { %v444_v44 = vshll.u32 %v7217_v9, 16  ;;  %v418_v39 = vrot.slane %v417_v25, 4  ;;  %v436_v40 = vrot.slane %v434_v26, 5  ;;  %v440_v41 = vrot.slane %v438_v29, 4  ;;  %v7257_v15 = vld [vmem:[%s7014_s29 + $0x6c] sm:$0xf] }
  0x31   : > { %9494 = vst [vmem:[#allocation9_spill] sm:$0xff] %v7227_v18  ;;  %v7240_v49 = vcombine.low %v7202_v50, %v7212_v60  ;;  %v413_v52 = vsel %vm7069_vm4, %v408_v31, %v412_v63  ;;  %v431_v55 = vor.u32 %v430_v27, %v427_v32  ;;  %v449_v0 = vshrl.u32 %v7232_v7, 16 }
  0x32   : > { %v446_v58 = vrot.slane %v444_v44, 5  ;;  %v423_v4 = vsel %vm7069_vm4, %v418_v39, %v422_v1  ;;  %6110 = vmatmul.mubr.msk.bf16.gmra.mrb[4].mxu1 %vm919_vm3, %v7188_v35  ;;  %v441_v5 = vor.u32 %v440_v41, %v436_v40  ;;  %v452_v8 = vshll.u32 %v7232_v7, 16  ;;  %v7266_v39 = vld [vmem:[%s7014_s29 + $0x70] sm:$0xf] }
  0x33   : > { %9495 = vst [vmem:[#allocation10_spill] sm:$0xff] %v7240_v49  ;;  %5981 = vmatprep.mubr.msk.bf16.mxu0 %vm919_vm3, %v7240_v49  ;;  %v458_v63 = vshll.u32 %v7236_v53, 16  ;;  %v7259_v25 = vcombine.low %v413_v52, %v423_v4  ;;  %v432_v26 = vrot.slane %v431_v55, 4  ;;  %v451_v29 = vrot.slane %v449_v0, 4  ;;  %6113 = vmatprep.mubr.msk.bf16.mxu1 %vm919_vm3, %v7227_v18  ;;  %v7275_v0 = vld [vmem:[%s7014_s29 + $0x74] sm:$0x1] }
  0x34   : > { %v462_v1 = vshrl.u32 %v7236_v53, 16  ;;  %v442_v31 = vrot.slane %v441_v5, 4  ;;  %v454_v32 = vrot.slane %v452_v8, 5  ;;  %v468_v44 = vshll.u32 %v7245_v61, 16  ;;  %v7437_v18 = vld [vmem:[%s7014_s29 + $0xbc] sm:$0x1] }
  0x35   : > { %9496 = vst [vmem:[#allocation11_spill] sm:$0xff] %v7259_v25  ;;  %v460_v27 = vrot.slane %v458_v63, 5  ;;  %v437_v41 = vsel %vm7069_vm4, %v432_v26, %v436_v40  ;;  %v7272_v55 = vcombine.low %v7232_v7, %v7236_v53  ;;  %v473_v4 = vshrl.u32 %v7257_v15, 16  ;;  %9521 = vst [vmem:[#allocation36_spill] sm:$0xff] %v7437_v18 }
  0x36   : > { %v464_v52 = vrot.slane %v462_v1, 4  ;;  %v447_v5 = vsel %vm7069_vm4, %v442_v31, %v446_v58  ;;  %v455_v8 = vor.u32 %v454_v32, %v451_v29  ;;  %v470_v63 = vrot.slane %v468_v44, 5  ;;  %v7292_v31 = vld [vmem:[%s7014_s29 + $0x7c] sm:$0xf] }
  0x37   : > { %9497 = vst [vmem:[#allocation12_spill] sm:$0xff] %v7272_v55  ;;  %v476_v36 = vshll.u32 %v7257_v15, 16  ;;  %v7284_v40 = vcombine.low %v437_v41, %v447_v5  ;;  %5982 = vmatmul.mubr.msk.bf16.gmra.mrb[12].mxu0 %vm919_vm3, %v7272_v55  ;;  %v475_v1 = vrot.slane %v473_v4, 4  ;;  %v482_v20 = vshll.u32 %v7266_v39, 16  ;;  %v7304_v55 = vld [vmem:[%s7014_s29 + $0x80] sm:$0x1] }
  0x38   : > { %v465_v26 = vor.u32 %v464_v52, %v460_v27  ;;  %v456_v21 = vrot.slane %v455_v8, 4  ;;  %v486_v58 = vshrl.u32 %v7266_v39, 16  ;;  %v492_v29 = vshll.u32 %v7275_v0, 16 }
  0x39   : > { %9498 = vst [vmem:[#allocation13_spill] sm:$0xff] %v7284_v40  ;;  %v478_v49 = vrot.slane %v476_v36, 5  ;;  %v484_v44 = vrot.slane %v482_v20, 5  ;;  %v7296_v41 = vcombine.low %v7257_v15, %v7266_v39  ;;  %v497_v52 = vshrl.u32 %v7282_v42, 16 }
  0x3a   : > { %v466_v32 = vrot.slane %v465_v26, 4  ;;  %v461_v4 = vsel %vm7069_vm4, %v456_v21, %v460_v27  ;;  %6114 = vmatmul.mubr.msk.bf16.gmra.mrb[8].mxu1 %vm919_vm3, %v7259_v25  ;;  %v488_v5 = vrot.slane %v486_v58, 4  ;;  %v494_v8 = vrot.slane %v492_v29, 5  ;;  %v7315_v27 = vld [vmem:[%s7014_s29 + $0x84] sm:$0xf] }
  0x3b   : > { %9499 = vst [vmem:[#allocation14_spill] sm:$0xff] %v7296_v41  ;;  %v479_v36 = vor.u32 %v478_v49, %v475_v1  ;;  %5985 = vmatprep.mubr.msk.bf16.mxu0 %vm919_vm3, %v7296_v41  ;;  %v499_v26 = vrot.slane %v497_v52, 4  ;;  %v500_v59 = vshll.u32 %v7282_v42, 16  ;;  %v506_v21 = vshll.u32 %v7292_v31, 16  ;;  %6117 = vmatprep.mubr.msk.bf16.mxu1 %vm919_vm3, %v7284_v40  ;;  %v7321_v29 = vld [vmem:[%s7014_s29 + $0x88] sm:$0xf] }
  0x3c   : > { %v471_v20 = vsel %vm7069_vm4, %v466_v32, %v470_v63  ;;  %v489_v58 = vor.u32 %v488_v5, %v484_v44  ;;  %v510_v63 = vshrl.u32 %v7292_v31, 16  ;;  %9501 = vst [vmem:[#allocation16_spill] sm:$0xff] %v7321_v29  ;;  %v516_v41 = vshll.u32 %v7304_v55, 16  ;;  %v7347_v40 = vld [vmem:[%s7014_s29 + $0x94] sm:$0xf] }
  0x3d   : > { %v7317_v49 = vcombine.low %v461_v4, %v471_v20  ;;  %v480_v1 = vrot.slane %v479_v36, 4  ;;  %v502_v32 = vrot.slane %v500_v59, 5  ;;  %v508_v52 = vrot.slane %v506_v21, 5  ;;  %v7334_v59 = vld [vmem:[%s7014_s29 + $0x8c] sm:$0x1]  ;;  %9506 = vst [vmem:[#allocation21_spill] sm:$0xff] %v7347_v40 }
  0x3e   : > { %v7326_v33 = vcombine.low %v7282_v42, %v7292_v31  ;;  %v490_v20 = vrot.slane %v489_v58, 4  ;;  %v512_v34 = vrot.slane %v510_v63, 4  ;;  %v521_v36 = vshrl.u32 %v7315_v27, 16  ;;  %9503 = vst [vmem:[#allocation18_spill] sm:$0xff] %v7334_v59  ;;  %v7342_v63 = vld [vmem:[%s7014_s29 + $0x90] sm:$0xf] }
  0x3f   : > { %9500 = vst [vmem:[#allocation15_spill] sm:$0xff] %v7317_v49  ;;  %v485_v4 = vsel %vm7069_vm4, %v480_v1, %v484_v44  ;;  %v503_v5 = vor.u32 %v502_v32, %v499_v26  ;;  %v518_v2 = vrot.slane %v516_v41, 5  ;;  %v524_v21 = vshll.u32 %v7315_v27, 16  ;;  %9504 = vst [vmem:[#allocation19_spill] sm:$0xff] %v7342_v63 }
  0x40   : > { %9502 = vst [vmem:[#allocation17_spill] sm:$0xff] %v7326_v33  ;;  %5986 = vmatmul.mubr.msk.bf16.gmra.mrb[16].mxu0 %vm919_vm3, %v7326_v33  ;;  %v530_v47 = vshll.u32 %v7321_v29, 16  ;;  %v495_v22 = vsel %vm7069_vm4, %v490_v20, %v494_v8  ;;  %v513_v44 = vor.u32 %v512_v34, %v508_v52  ;;  %v523_v1 = vrot.slane %v521_v36, 4  ;;  %v7359_v36 = vld [vmem:[%s7014_s29 + $0x98] sm:$0x1] }
  0x41   : > { %v534_v58 = vshrl.u32 %v7321_v29, 16  ;;  %v7344_v41 = vcombine.low %v485_v4, %v495_v22  ;;  %v504_v26 = vrot.slane %v503_v5, 4  ;;  %v526_v32 = vrot.slane %v524_v21, 5  ;;  %9508 = vst [vmem:[#allocation23_spill] sm:$0xff] %v7359_v36 }
  0x42   : > { %v532_v33 = vrot.slane %v530_v47, 5  ;;  %v514_v25 = vrot.slane %v513_v44, 4  ;;  %6118 = vmatmul.mubr.msk.bf16.gmra.mrb[12].mxu1 %vm919_vm3, %v7317_v49  ;;  %v540_v34 = vshll.u32 %v7334_v59, 16  ;;  %v7354_v20 = vcombine.low %v7315_v27, %v7321_v29 }
  0x43   : > { %9505 = vst [vmem:[#allocation20_spill] sm:$0xff] %v7344_v41  ;;  %v536_v8 = vrot.slane %v534_v58, 4  ;;  %v509_v22 = vsel %vm7069_vm4, %v504_v26, %v508_v52  ;;  %v527_v4 = vor.u32 %v526_v32, %v523_v1  ;;  %v545_v47 = vshrl.u32 %v7342_v63, 16  ;;  %6121 = vmatprep.mubr.msk.bf16.mxu1 %vm919_vm3, %v7344_v41  ;;  %v7371_v1 = vld [vmem:[%s7014_s29 + $0x9c] sm:$0xf] }
  0x44   : > { %9507 = vst [vmem:[#allocation22_spill] sm:$0xff] %v7354_v20  ;;  %v548_v5 = vshll.u32 %v7342_v63, 16  ;;  %v519_v21 = vsel %vm7069_vm4, %v514_v25, %v518_v2  ;;  %v542_v58 = vrot.slane %v540_v34, 5  ;;  %5989 = vmatprep.mubr.msk.bf16.mxu0 %vm919_vm3, %v7354_v20  ;;  %v554_v52 = vshll.u32 %v7347_v40, 16  ;;  %9509 = vst [vmem:[#allocation24_spill] sm:$0xff] %v7371_v1 }
  0x45   : > { %v537_v44 = vor.u32 %v536_v8, %v532_v33  ;;  %v7373_v26 = vcombine.low %v509_v22, %v519_v21  ;;  %v528_v32 = vrot.slane %v527_v4, 4  ;;  %v547_v49 = vrot.slane %v545_v47, 4  ;;  %v7378_v8 = vld [vmem:[%s7014_s29 + $0xa0] sm:$0xf]  ;;  %v7387_v4 = vld [vmem:[%s7014_s29 + $0xa4] sm:$0x1] }
  0x46   : > { %v550_v59 = vrot.slane %v548_v5, 5  ;;  %v556_v29 = vrot.slane %v554_v52, 5  ;;  %v558_v2 = vshrl.u32 %v7347_v40, 16  ;;  %v564_v25 = vshll.u32 %v7359_v36, 16  ;;  %9511 = vst [vmem:[#allocation26_spill] sm:$0xff] %v7378_v8  ;;  %9513 = vst [vmem:[#allocation28_spill] sm:$0xff] %v7387_v4 }
  0x47   : > { %9510 = vst [vmem:[#allocation25_spill] sm:$0xff] %v7373_v26  ;;  %v538_v41 = vrot.slane %v537_v44, 4  ;;  %v533_v34 = vsel %vm7069_vm4, %v528_v32, %v532_v33  ;;  %v7384_v22 = vcombine.low %v7342_v63, %v7347_v40  ;;  %v569_v47 = vshrl.u32 %v7371_v1, 16  ;;  %v7394_v36 = vld [vmem:[%s7014_s29 + $0xa8] sm:$0xf] }
  0x48   : > { %v551_v20 = vor.u32 %v550_v59, %v547_v49  ;;  %v560_v21 = vrot.slane %v558_v2, 4  ;;  %v566_v44 = vrot.slane %v564_v25, 5  ;;  %v572_v52 = vshll.u32 %v7371_v1, 16  ;;  %9514 = vst [vmem:[#allocation29_spill] sm:$0xff] %v7394_v36  ;;  %v7406_v25 = vld [vmem:[%s7014_s29 + $0xac] sm:$0xf] }
  0x49   : > { %9512 = vst [vmem:[#allocation27_spill] sm:$0xff] %v7384_v22  ;;  %v543_v5 = vsel %vm7069_vm4, %v538_v41, %v542_v58  ;;  %5990 = vmatmul.mubr.msk.bf16.gmra.mrb[20].mxu0 %vm919_vm3, %v7384_v22  ;;  %v571_v59 = vrot.slane %v569_v47, 4  ;;  %v578_v32 = vshll.u32 %v7378_v8, 16  ;;  %v582_v58 = vshrl.u32 %v7378_v8, 16  ;;  %9516 = vst [vmem:[#allocation31_spill] sm:$0xff] %v7406_v25 }
  0x4a   : > { %v7396_v33 = vcombine.low %v533_v34, %v543_v5  ;;  %v552_v49 = vrot.slane %v551_v20, 4  ;;  %v561_v40 = vor.u32 %v560_v21, %v556_v29  ;;  %6122 = vmatmul.mubr.msk.bf16.gmra.mrb[16].mxu1 %vm919_vm3, %v7373_v26  ;;  %v574_v41 = vrot.slane %v572_v52, 5  ;;  %v7415_v5 = vld [vmem:[%s7014_s29 + $0xb0] sm:$0x1] }
  0x4b   : > { %v588_v2 = vshll.u32 %v7387_v4, 16  ;;  %v580_v34 = vrot.slane %v578_v32, 5  ;;  %v7412_v47 = vcombine.low %v7371_v1, %v7378_v8  ;;  %9518 = vst [vmem:[#allocation33_spill] sm:$0xff] %v7415_v5  ;;  %v593_v21 = vshrl.u32 %v7394_v36, 16 }
  0x4c   : > { %9515 = vst [vmem:[#allocation30_spill] sm:$0xff] %v7396_v33  ;;  %v557_v20 = vsel %vm7069_vm4, %v552_v49, %v556_v29  ;;  %6125 = vmatprep.mubr.msk.bf16.mxu1 %vm919_vm3, %v7396_v33  ;;  %v562_v52 = vrot.slane %v561_v40, 4  ;;  %v575_v22 = vor.u32 %v574_v41, %v571_v59  ;;  %v584_v26 = vrot.slane %v582_v58, 4  ;;  %v7429_v59 = vld [vmem:[%s7014_s29 + $0xb4] sm:$0xf] }
  0x4d   : > { %9517 = vst [vmem:[#allocation32_spill] sm:$0xff] %v7412_v47  ;;  %v590_v29 = vrot.slane %v588_v2, 5  ;;  %5993 = vmatprep.mubr.msk.bf16.mxu0 %vm919_vm3, %v7412_v47  ;;  %v595_v49 = vrot.slane %v593_v21, 4  ;;  %v596_v32 = vshll.u32 %v7394_v36, 16  ;;  %v602_v4 = vshll.u32 %v7406_v25, 16 }
  0x4e   : > { %v606_v8 = vshrl.u32 %v7406_v25, 16  ;;  %v567_v33 = vsel %vm7069_vm4, %v562_v52, %v566_v44  ;;  %v576_v1 = vrot.slane %v575_v22, 4  ;;  %v585_v63 = vor.u32 %v584_v26, %v580_v34  ;;  %v7432_v41 = vld [vmem:[%s7014_s29 + $0xb8] sm:$0xf] }
  0x4f   : > { %v612_v40 = vshll.u32 %v7415_v5, 16  ;;  %9519 = vst [vmem:[#allocation34_spill] sm:$0xff] %v7432_v41  ;;  %v7434_v58 = vcombine.low %v557_v20, %v567_v33  ;;  %v598_v2 = vrot.slane %v596_v32, 5  ;;  %v604_v21 = vrot.slane %v602_v4, 5 }
  0x50   : > { %v608_v47 = vrot.slane %v606_v8, 4  ;;  %v581_v11 = vsel %vm7069_vm4, %v576_v1, %v580_v34  ;;  %v586_v44 = vrot.slane %v585_v63, 4  ;;  %v7443_v26 = vcombine.low %v7394_v36, %v7406_v25  ;;  %v7457_v34 = vld [vmem:[%s7014_s29 + $0xc0] sm:$0xf]  ;;  %v7462_v25 = vld [vmem:[%s7014_s29 + $0xc4] sm:$0xf] }
  0x51   : > { %9520 = vst [vmem:[#allocation35_spill] sm:$0xff] %v7434_v58  ;;  %v614_v22 = vrot.slane %v612_v40, 5  ;;  %v599_v52 = vor.u32 %v598_v2, %v595_v49  ;;  %v617_v33 = vshrl.u32 %v7429_v59, 16  ;;  %v620_v20 = vshll.u32 %v7429_v59, 16  ;;  %9524 = vst [vmem:[#allocation39_spill] sm:$0xff] %v7462_v25 }
  0x52   : > { %9522 = vst [vmem:[#allocation37_spill] sm:$0xff] %v7443_v26  ;;  %v609_v5 = vor.u32 %v608_v47, %v604_v21  ;;  %v591_v8 = vsel %vm7069_vm4, %v586_v44, %v590_v29  ;;  %5994 = vmatmul.mubr.msk.bf16.gmra.mrb[24].mxu0 %vm919_vm3, %v7443_v26  ;;  %6126 = vmatmul.mubr.msk.bf16.gmra.mrb[20].mxu1 %vm919_vm3, %v7434_v58  ;;  %v626_v63 = vshll.u32 %v7432_v41, 16  ;;  %v630_v1 = vshrl.u32 %v7432_v41, 16 }
  0x53   : > { %v636_v4 = vshll.u32 %v7437_v18, 16  ;;  %v7459_v47 = vcombine.low %v581_v11, %v591_v8  ;;  %v600_v49 = vrot.slane %v599_v52, 4  ;;  %v619_v29 = vrot.slane %v617_v33, 4 }
  0x54   : > { %v610_v32 = vrot.slane %v609_v5, 4  ;;  %v622_v40 = vrot.slane %v620_v20, 5  ;;  %v628_v2 = vrot.slane %v626_v63, 5  ;;  %v632_v44 = vrot.slane %v630_v1, 4  ;;  %v7476_v5 = vld [vmem:[%s7014_s29 + $0xc8] sm:$0x1] }
  0x55   : > { %9523 = vst [vmem:[#allocation38_spill] sm:$0xff] %v7459_v47  ;;  %v638_v26 = vrot.slane %v636_v4, 5  ;;  %v605_v58 = vsel %vm7069_vm4, %v600_v49, %v604_v21  ;;  %v7470_v36 = vcombine.low %v7429_v59, %v7432_v41  ;;  %v804_v11 = vshrl.u32 %v7457_v34, 16  ;;  %6129 = vmatprep.mubr.msk.bf16.mxu1 %vm919_vm3, %v7459_v47 }
  0x56   : > { %v615_v18 = vsel %vm7069_vm4, %v610_v32, %v614_v22  ;;  %v623_v33 = vor.u32 %v622_v40, %v619_v29  ;;  %v633_v20 = vor.u32 %v632_v44, %v628_v2  ;;  %v807_v21 = vshll.u32 %v7457_v34, 16 }
  0x57   : > { %9525 = vst [vmem:[#allocation40_spill] sm:$0xff] %v7470_v36  ;;  %v7478_v52 = vcombine.low %v605_v58, %v615_v18  ;;  %5997 = vmatprep.mubr.msk.bf16.mxu0 %vm919_vm3, %v7470_v36  ;;  %v806_v8 = vrot.slane %v804_v11, 4  ;;  %v813_v63 = vshll.u32 %v7462_v25, 16  ;;  %v817_v1 = vshrl.u32 %v7462_v25, 16 }
  0x58   : > { %v7493_v18 = vcombine.low %v7457_v34, %v7462_v25  ;;  %v624_v58 = vrot.slane %v623_v33, 4  ;;  %v634_v4 = vrot.slane %v633_v20, 4  ;;  %v809_v49 = vrot.slane %v807_v21, 5 }
  0x59   : > { %v823_v32 = vshll.u32 %v7476_v5, 16  ;;  %v815_v29 = vrot.slane %v813_v63, 5  ;;  %v819_v40 = vrot.slane %v817_v1, 4  ;;  %v9529_v44 = vrot.slane %v7032_v13, 5 }
  0x5a   : > { %9528 = vst [vmem:[#allocation41_spill] sm:$0xff] %v7493_v18  ;;  %v9530_v36 = vrot.slane %v7029_v12, 9  ;;  %v629_v25 = vsel %vm7069_vm4, %v624_v58, %v628_v2  ;;  %v639_v33 = vsel %vm7069_vm4, %v634_v4, %v638_v26  ;;  %v810_v20 = vor.u32 %v809_v49, %v806_v8  ;;  %5998 = vmatmul.mubr.msk.bf16.gmra.mrb[28].mxu0 %vm919_vm3, %v7493_v18 }
  0x5b   : > { %v9531_v47 = vmov %v9529_v44  ;;  %6130 = vmatmul.mubr.msk.bf16.gmra.mrb[24].mxu1 %vm919_vm3, %v7478_v52  ;;  %v825_v12 = vrot.slane %v823_v32, 5  ;;  %v7512_v21 = vcombine.low %v629_v25, %v639_v33  ;;  %6003 = vmatprep.mubr.msk.bf16.mxu0 %vm919_vm3, %v7174_v24  ;;  %v703_v13 = vrot.slane %v7129_v6, 5 }
  0x5c   : > { %v701_v11 = vsel %vm7483_vm7, %v9530_v36, %v9529_v44  ;;  %v702_v41 = vrot.slane %v9531_v47, 4  ;;  %v820_v36 = vor.u32 %v819_v40, %v815_v29  ;;  %v9532_v47 = vrot.slane %v7042_v19, 5 }
  0x5d   : > { %v9533_v26 = vrot.slane %v7035_v14, 9  ;;  %v811_v8 = vrot.slane %v810_v20, 4  ;;  %v710_v63 = vrot.slane %v7051_v23, 5  ;;  %v5335_v1 = vrot.slane %v7065_v37, 9  ;;  %6133 = vmatprep.mubr.msk.bf16.mxu1 %vm919_vm3, %v7512_v21 }
  0x5e   : > { %v714_v25 = vrot.slane %v7075_v43, 5  ;;  %v821_v58 = vrot.slane %v820_v36, 4  ;;  %v704_v6 = vsel %vm7483_vm7, %v702_v41, %v703_v13  ;;  %v717_v19 = vrot.slane %v7086_v48, 5 }
  0x5f   : > { %v708_v2 = vsel %vm7483_vm7, %v9533_v26, %v9532_v47  ;;  %v5336_v14 = vrot.slane %v7103_v57, 9  ;;  %v816_v4 = vsel %vm7069_vm4, %v811_v8, %v815_v29  ;;  %v7534_v49 = vcombine.low %v701_v11, %v704_v6 }
  0x60   : > { %v711_v23 = vsel %vm7483_vm7, %v7090_v51, %v710_v63  ;;  %v715_v37 = vsel %vm7483_vm7, %v5335_v1, %v714_v25  ;;  %v826_v43 = vsel %vm7069_vm4, %v821_v58, %v825_v12  ;;  %v716_v48 = vrot.slane %v714_v25, 4 }
  0x61   : > { %v7543_v41 = vcombine.low %v708_v2, %v711_v23  ;;  %v721_v57 = vrot.slane %v7107_v62, 5  ;;  %v7546_v32 = vcombine.low %v816_v4, %v826_v43  ;;  %v724_v29 = vrot.slane %v7114_v3, 5  ;;  %v7559_v62 = vld [vmem:[%s9395_s1 + $0xc] sm:$0xf] }
  0x62   : > { %v5337_v40 = vrot.slane %v7135_v30, 9  ;;  %v728_v44 = vrot.slane %v7143_v46, 5  ;;  %v718_v51 = vsel %vm7483_vm7, %v716_v48, %v717_v19  ;;  %v731_v20 = vrot.slane %v7152_v54, 5  ;;  %6004 = vmatmul.mubr.msk.bf16.vlgmr.msra.gmra.mrb[0].mxu0 %vm919_vm3, %v7123_v16 }
  0x63   : > { %v722_v11 = vsel %vm7483_vm7, %v5336_v14, %v721_v57  ;;  %v723_v33 = vrot.slane %v721_v57, 4  ;;  %6134 = vmatmul.mubr.msk.bf16.gmra.mrb[28].mxu1 %vm919_vm3, %v7546_v32  ;;  %v7565_v3 = vcombine.low %v715_v37, %v718_v51  ;;  %v5338_v12 = vrot.slane %v7165_v17, 9  ;;  %6036 = vmatpush3.bf16.msra.mxu0 %v7022_v10  ;;  %v9534_v57 = vld [vmem:[#allocation2_spill] sm:$0xff]  ;;  %v9536_v51 = vld [vmem:[#allocation16_spill] sm:$0xff] }
  0x64   : > { %v729_v30 = vsel %vm7483_vm7, %v5337_v40, %v728_v44  ;;  %v730_v46 = vrot.slane %v728_v44, 4  ;;  %6007 = vmatprep.mubr.msk.bf16.mxu0 %vm919_vm3, %v7155_v56  ;;  %v735_v36 = vrot.slane %v7177_v28, 5  ;;  %v738_v13 = vrot.slane %v7180_v45, 5  ;;  %6139 = vmatprep.mubr.msk.bf16.mxu1 %vm919_vm3, %v7534_v49 }
  0x65   : > { %v725_v54 = vsel %vm7483_vm7, %v723_v33, %v724_v29  ;;  %v5339_v47 = vrot.slane %v7202_v50, 9  ;;  %v742_v17 = vrot.slane %v7212_v60, 5  ;;  %v745_v2 = vrot.slane %v7217_v9, 5  ;;  %6898 = vmatprep.subr.msk.bf16.mxu0 %vm968_vm0, %v7559_v62  ;;  %v9535_v29 = vld [vmem:[#allocation9_spill] sm:$0xff]  ;;  %v9537_v33 = vld [vmem:[#allocation18_spill] sm:$0xff] }
  0x66   : > { %v7580_v26 = vcombine.low %v722_v11, %v725_v54  ;;  %v732_v10 = vsel %vm7483_vm7, %v730_v46, %v731_v20  ;;  %v736_v45 = vsel %vm7483_vm7, %v5338_v12, %v735_v36  ;;  %v737_v50 = vrot.slane %v735_v36, 4  ;;  %v9539_v36 = vld [vmem:[#allocation21_spill] sm:$0xff] }
  0x67   : > { %v7588_v28 = vcombine.low %v729_v30, %v732_v10  ;;  %v5340_v8 = vrot.slane %v7232_v7, 9  ;;  %v743_v63 = vsel %vm7483_vm7, %v5339_v47, %v742_v17  ;;  %v744_v1 = vrot.slane %v742_v17, 4  ;;  %v9538_v30 = vld [vmem:[#allocation19_spill] sm:$0xff] }
  0x68   : > { %v749_v25 = vrot.slane %v7236_v53, 5  ;;  %v752_v60 = vrot.slane %v7245_v61, 5  ;;  %v739_v9 = vsel %vm7483_vm7, %v737_v50, %v738_v13  ;;  %v5341_v58 = vrot.slane %v7257_v15, 9  ;;  %v9540_v47 = vld [vmem:[#allocation23_spill] sm:$0xff]  ;;  %v9542_v50 = vld [vmem:[#allocation26_spill] sm:$0xff] }
  0x69   : > { %v756_v6 = vrot.slane %v7266_v39, 5  ;;  %v759_v19 = vrot.slane %v7275_v0, 5  ;;  %v7602_v14 = vcombine.low %v736_v45, %v739_v9  ;;  %v746_v7 = vsel %vm7483_vm7, %v744_v1, %v745_v2  ;;  %v7616_v39 = vld [vmem:[%s9395_s1 + $0x1c] sm:$0xf]  ;;  %v9541_v2 = vld [vmem:[#allocation24_spill] sm:$0xff] }
  0x6a   : > { %v750_v4 = vsel %vm7483_vm7, %v5340_v8, %v749_v25  ;;  %v751_v53 = vrot.slane %v749_v25, 4  ;;  %v7608_v23 = vcombine.low %v743_v63, %v746_v7  ;;  %v5342_v15 = vrot.slane %v7282_v42, 9  ;;  %6008 = vmatmul.mubr.msk.bf16.gmra.mrb[4].mxu0 %vm919_vm3, %v7188_v35  ;;  %v9543_v63 = vld [vmem:[#allocation28_spill] sm:$0xff] }
  0x6b   : > { %v757_v61 = vsel %vm7483_vm7, %v5341_v58, %v756_v6  ;;  %v758_v37 = vrot.slane %v756_v6, 4  ;;  %6140 = vmatmul.mubr.msk.bf16.vlgmr.msra.gmra.mrb[0].mxu1 %vm919_vm3, %v7543_v41  ;;  %v763_v43 = vrot.slane %v7292_v31, 5  ;;  %v766_v48 = vrot.slane %v7304_v55, 5  ;;  %6011 = vmatprep.mubr.msk.bf16.mxu0 %vm919_vm3, %v9535_v29 }
  0x6c   : > { %v753_v0 = vsel %vm7483_vm7, %v751_v53, %v752_v60  ;;  %v5343_v42 = vrot.slane %v7315_v27, 9  ;;  %6172 = vmatpush3.bf16.msra.mxu1 %v9534_v57  ;;  %v770_v11 = vrot.slane %v9536_v51, 5  ;;  %v773_v20 = vrot.slane %v9537_v33, 5  ;;  %6143 = vmatprep.mubr.msk.bf16.mxu1 %vm919_vm3, %v7565_v3 }
  0x6d   : > { %v7630_v40 = vcombine.low %v750_v4, %v753_v0  ;;  %v760_v44 = vsel %vm7483_vm7, %v758_v37, %v759_v19  ;;  %v764_v31 = vsel %vm7483_vm7, %v5342_v15, %v763_v43  ;;  %v765_v27 = vrot.slane %v763_v43, 4  ;;  %6902 = vmatprep.subr.msk.bf16.mxu1 %vm968_vm0, %v7616_v39  ;;  %v9544_v4 = vld [vmem:[#allocation29_spill] sm:$0xff]  ;;  %v9545_v37 = vld [vmem:[#allocation31_spill] sm:$0xff] }
  0x6e   : > { %v7638_v55 = vcombine.low %v757_v61, %v760_v44  ;;  %v5344_v46 = vrot.slane %v9538_v30, 9  ;;  %v771_v12 = vsel %vm7483_vm7, %v5343_v42, %v770_v11  ;;  %v772_v54 = vrot.slane %v770_v11, 4  ;;  %v9546_v0 = vld [vmem:[#allocation33_spill] sm:$0xff] }
  0x6f   : > { %v777_v13 = vrot.slane %v9539_v36, 5  ;;  %v780_v10 = vrot.slane %v9540_v47, 5  ;;  %v767_v17 = vsel %vm7483_vm7, %v765_v27, %v766_v48  ;;  %v5345_v45 = vrot.slane %v9541_v2, 9  ;;  %v9547_v48 = vld [vmem:[#allocation11_spill] sm:$0xff]  ;;  %v9548_v44 = vld [vmem:[#allocation13_spill] sm:$0xff]  ;;  %v9549_v27 = vld [vmem:[#allocation34_spill] sm:$0xff] }
  0x70   : > { %v784_v8 = vrot.slane %v9542_v50, 5  ;;  %v787_v1 = vrot.slane %v9543_v63, 5  ;;  %v7654_v25 = vcombine.low %v764_v31, %v767_v17  ;;  %v774_v60 = vsel %vm7483_vm7, %v772_v54, %v773_v20  ;;  %v9553_v63 = vld [vmem:[#allocation20_spill] sm:$0xff] }
  0x71   : > { %v778_v9 = vsel %vm7483_vm7, %v5344_v46, %v777_v13  ;;  %v779_v58 = vrot.slane %v777_v13, 4  ;;  %v7660_v6 = vcombine.low %v771_v12, %v774_v60  ;;  %v5346_v53 = vrot.slane %v9544_v4, 9  ;;  %v9550_v46 = vld [vmem:[#allocation36_spill] sm:$0xff] }
  0x72   : > { %v785_v19 = vsel %vm7483_vm7, %v5345_v45, %v784_v8  ;;  %v786_v7 = vrot.slane %v784_v8, 4  ;;  %v791_v15 = vrot.slane %v9545_v37, 5  ;;  %v794_v43 = vrot.slane %v9546_v0, 5  ;;  %6012 = vmatmul.mubr.msk.bf16.gmra.mrb[8].mxu0 %vm919_vm3, %v9547_v48  ;;  %v9552_v45 = vld [vmem:[#allocation15_spill] sm:$0xff] }
  0x73   : > { %v781_v61 = vsel %vm7483_vm7, %v779_v58, %v780_v10  ;;  %6144 = vmatmul.mubr.msk.bf16.gmra.mrb[4].mxu1 %vm919_vm3, %v7580_v26  ;;  %6015 = vmatprep.mubr.msk.bf16.mxu0 %vm919_vm3, %v9548_v44  ;;  %v5347_v31 = vrot.slane %v7429_v59, 9  ;;  %v798_v30 = vrot.slane %v9549_v27, 5  ;;  %v801_v12 = vrot.slane %v9550_v46, 5  ;;  %v9551_v10 = vld [vmem:[#allocation39_spill] sm:$0xff] }
  0x74   : > { %v7673_v42 = vcombine.low %v778_v9, %v781_v61  ;;  %v788_v57 = vsel %vm7483_vm7, %v786_v7, %v787_v1  ;;  %6147 = vmatprep.mubr.msk.bf16.mxu1 %vm919_vm3, %v7588_v28  ;;  %v792_v11 = vsel %vm7483_vm7, %v5346_v53, %v791_v15  ;;  %v793_v33 = vrot.slane %v791_v15, 4  ;;  %v9555_v7 = vld [vmem:[#allocation30_spill] sm:$0xff] }
  0x75   : > { %v7681_v51 = vcombine.low %v785_v19, %v788_v57  ;;  %v799_v36 = vsel %vm7483_vm7, %v5347_v31, %v798_v30  ;;  %v800_v13 = vrot.slane %v798_v30, 4  ;;  %v5348_v47 = vrot.slane %v7457_v34, 9  ;;  %v7712_v34 = vld [vmem:[%s7014_s29] sm:$0xf]  ;;  %v9554_v19 = vld [vmem:[#allocation25_spill] sm:$0xff] }
  0x76   : > { %v795_v20 = vsel %vm7483_vm7, %v793_v33, %v794_v43  ;;  %v832_v17 = vrot.slane %v9551_v10, 5  ;;  %v835_v59 = vrot.slane %v7476_v5, 5  ;;  %v7715_v5 = vld [vmem:[%s7014_s29 + $0x4] sm:$0xf]  ;;  %v257_v4 = vshrl.u32 %v7712_v34, 16  ;;  %v9556_v33 = vld [vmem:[#allocation35_spill] sm:$0xff] }
  0x77   : > { %v7690_v54 = vcombine.low %v792_v11, %v795_v20  ;;  %v802_v2 = vsel %vm7483_vm7, %v800_v13, %v801_v12  ;;  %v5431_v60 = vcombine.low %v7712_v34, %v7715_v5  ;;  %v260_v53 = vshll.u32 %v7712_v34, 16  ;;  %v185_v11 = vld [vmem:[%s7014_s29 + $0x8] sm:$0x1]  ;;  %v9557_v20 = vld [vmem:[#allocation38_spill] sm:$0xff] }
  0x78   : > { %v7703_v50 = vcombine.low %v799_v36, %v802_v2  ;;  %v833_v8 = vsel %vm7483_vm7, %v5348_v47, %v832_v17  ;;  %v834_v1 = vrot.slane %v832_v17, 4  ;;  %v266_v61 = vshll.u32 %v7715_v5, 16 }
  0x79   : > { %v270_v37 = vshrl.u32 %v7715_v5, 16  ;;  %v259_v15 = vrot.slane %v257_v4, 4  ;;  %v262_v0 = vrot.slane %v260_v53, 5  ;;  %v276_v30 = vshll.u32 %v185_v11, 16 }
  0x7a   : > { %6016 = vmatmul.mubr.msk.bf16.gmra.mrb[12].mxu0 %vm919_vm3, %v9552_v45  ;;  %v836_v9 = vsel %vm7483_vm7, %v834_v1, %v835_v59  ;;  %v268_v43 = vrot.slane %v266_v61, 5  ;;  %v693_v10 = vrot.slane %v7715_v5, 5  ;;  %v5332_v2 = vrot.slane %v7712_v34, 9  ;;  %v246_v61 = vld [vmem:[%s9395_s1 + $0x24] sm:$0xf] }
  0x7b   : > { %6148 = vmatmul.mubr.msk.bf16.gmra.mrb[8].mxu1 %vm919_vm3, %v7602_v14  ;;  %6019 = vmatprep.mubr.msk.bf16.mxu0 %vm919_vm3, %v9553_v63  ;;  %v7721_v58 = vcombine.low %v833_v8, %v836_v9  ;;  %v272_v57 = vrot.slane %v270_v37, 4  ;;  %v263_v31 = vor.u32 %v262_v0, %v259_v15  ;;  %v278_v36 = vrot.slane %v276_v30, 5  ;;  %v250_v37 = vld [vmem:[%s9395_s1 + $0x34] sm:$0xf]  ;;  %v245_v15 = vld [vmem:[%s9395_s1 + $0x20] sm:$0xf] }
  0x7c   : > { %6151 = vmatprep.mubr.msk.bf16.mxu1 %vm919_vm3, %v7608_v23  ;;  %v695_v59 = vrot.slane %v693_v10, 4  ;;  %v696_v8 = vrot.slane %v185_v11, 5  ;;  %v694_v1 = vsel %vm7483_vm7, %v5332_v2, %v693_v10  ;;  %v1602_v4 = vsel %vm968_vm0, %v7559_v62, 0  ;;  %v9558_v0 = vld [vmem:[#allocation3_spill] sm:$0xff]  ;;  %v249_v5 = vld [vmem:[%s9395_s1 + $0x30] sm:$0xf] }
  0x7d   : > { %v273_v27 = vor.u32 %v272_v57, %v268_v43  ;;  %v264_v46 = vrot.slane %v263_v31, 4  ;;  %v2424_v62 = vsel %vm968_vm0, %v7616_v39, 0  ;;  %v2626_v39 = vsel %vm968_vm0, %v246_v61, 0  ;;  %v9561_v57 = vld [vmem:[#allocation6_spill] sm:$0xff]  ;;  %v9562_v11 = vld [vmem:[#allocation7_spill] sm:$0xff]  ;;  %v9563_v31 = vld [vmem:[#allocation8_spill] sm:$0xff] }
  0x7e   : > { %v697_v9 = vsel %vm7483_vm7, %v695_v59, %v696_v8  ;;  %v3352_v34 = vsel %vm968_vm0, %v250_v37, 0  ;;  %v9565_v30 = vld [vmem:[#allocation12_spill] sm:$0xff]  ;;  %v9571_v10 = vld [vmem:[#allocation37_spill] sm:$0xff]  ;;  %v2796_v2 = vsel %vm968_vm0, %v245_v15, 0  ;;  %v247_v59 = vld [vmem:[%s9395_s1 + $0x28] sm:$0xf] }
  0x7f   : > { %v274_v12 = vrot.slane %v273_v27, 4  ;;  %v269_v13 = vsel %vm7069_vm4, %v264_v46, %v268_v43  ;;  %v5496_v53 = vcombine.low %v694_v1, %v697_v9  ;;  %v9559_v43 = vld [vmem:[#allocation4_spill] sm:$0xff]  ;;  %v9564_v27 = vld [vmem:[#allocation10_spill] sm:$0xff]  ;;  %v3522_v8 = vsel %vm968_vm0, %v249_v5, 0  ;;  %v251_v1 = vld [vmem:[%s9395_s1 + $0x38] sm:$0xf] }
  0x80   : > { %v9566_v46 = vld [vmem:[#allocation14_spill] sm:$0xff]  ;;  %v7970_v9 = vld [vmem:[%s7014_s29 + $0xcc] sm:$0xf]  ;;  %v3686_v38 = vsel %vm968_vm0, %v251_v1, 0  ;;  %vm5059_vm11 = vcmask 97280   ;;  %vm5204_vm12 = vcmask 125952  }
  0x81   : > { %v279_v47 = vsel %vm7069_vm4, %v274_v12, %v278_v36  ;;  %v9567_v12 = vld [vmem:[#allocation17_spill] sm:$0xff]  ;;  %v9568_v36 = vld [vmem:[#allocation22_spill] sm:$0xff] }
  0x82   : > { %6020 = vmatmul.mubr.msk.bf16.gmra.mrb[16].mxu0 %vm919_vm3, %v9554_v19  ;;  %v5414_v17 = vcombine.low %v269_v13, %v279_v47  ;;  %v9569_v13 = vld [vmem:[#allocation27_spill] sm:$0xff]  ;;  %v9570_v47 = vld [vmem:[#allocation32_spill] sm:$0xff] }
  0x83   : > { %6152 = vmatmul.mubr.msk.bf16.gmra.mrb[12].mxu1 %vm919_vm3, %v7630_v40  ;;  %6023 = vmatprep.mubr.msk.bf16.mxu0 %vm919_vm3, %v9555_v7 }
  0x84   : > { %6155 = vmatprep.mubr.msk.bf16.mxu1 %vm919_vm3, %v7638_v55 }
  0x8a   : > { %6024 = vmatmul.mubr.msk.bf16.gmra.mrb[20].mxu0 %vm919_vm3, %v9556_v33 }
  0x8b   : > { %6156 = vmatmul.mubr.msk.bf16.gmra.mrb[16].mxu1 %vm919_vm3, %v7654_v25  ;;  %6027 = vmatprep.mubr.msk.bf16.mxu0 %vm919_vm3, %v9557_v20 }
  0x8c   : > { %6159 = vmatprep.mubr.msk.bf16.mxu1 %vm919_vm3, %v7660_v6 }
  0x92   : > { %6028 = vmatmul.mubr.msk.bf16.gmra.mrb[24].mxu0 %vm919_vm3, %v7478_v52 }
  0x93   : > { %6160 = vmatmul.mubr.msk.bf16.gmra.mrb[20].mxu1 %vm919_vm3, %v7673_v42  ;;  %6031 = vmatprep.mubr.msk.bf16.mxu0 %vm919_vm3, %v7512_v21 }
  0x94   : > { %6163 = vmatprep.mubr.msk.bf16.mxu1 %vm919_vm3, %v7681_v51 }
  0x9a   : > { %6032 = vmatmul.mubr.msk.bf16.gmra.mrb[28].mxu0 %vm919_vm3, %v7546_v32 }
  0x9b   : > { %6164 = vmatmul.mubr.msk.bf16.gmra.mrb[24].mxu1 %vm919_vm3, %v7690_v54  ;;  %6037 = vmatprep.mubr.msk.bf16.mxu0 %vm919_vm3, %v5414_v17 }
  0x9c   : > { %6167 = vmatprep.mubr.msk.bf16.mxu1 %vm919_vm3, %v7703_v50 }
  0xa2   : > { %6038 = vmatmul.mubr.msk.bf16.vlgmr.msra.gmra.mrb[0].mxu0 %vm919_vm3, %v7174_v24 }
  0xa3   : > { %6168 = vmatmul.mubr.msk.bf16.gmra.mrb[28].mxu1 %vm919_vm3, %v7721_v58  ;;  %6070 = vmatpush3.bf16.msra.mxu0 %v1602_v4  ;;  %v7973_v4 = vld [vmem:[%s7014_s29 + $0xd0] sm:$0xf] }
  0xa4   : > { %6041 = vmatprep.mubr.msk.bf16.mxu0 %vm919_vm3, %v7123_v16  ;;  %6173 = vmatprep.mubr.msk.bf16.mxu1 %vm919_vm3, %v5496_v53  ;;  %v838_v53 = vshrl.u32 %v7970_v9, 16 }
  0xa5   : > { %6903 = vmatprep.subr.msk.bf16.mxu0 %vm968_vm0, %v246_v61  ;;  %v841_v61 = vshll.u32 %v7970_v9, 16 }
  0xaa   : > { %6042 = vmatmul.mubr.msk.bf16.gmra.mrb[4].mxu0 %vm919_vm3, %v7155_v56 }
  0xab   : > { %6174 = vmatmul.mubr.msk.bf16.vlgmr.msra.gmra.mrb[0].mxu1 %vm919_vm3, %v7534_v49  ;;  %6045 = vmatprep.mubr.msk.bf16.mxu0 %vm919_vm3, %v7188_v35 }
  0xac   : > { %6206 = vmatpush3.bf16.msra.mxu1 %v2424_v62  ;;  %6177 = vmatprep.mubr.msk.bf16.mxu1 %vm919_vm3, %v7543_v41  ;;  %v851_v62 = vshrl.u32 %v7973_v4, 16 }
  0xad   : > { %6907 = vmatprep.subr.msk.bf16.mxu1 %vm968_vm0, %v250_v37  ;;  %v847_v37 = vshll.u32 %v7973_v4, 16 }
  0xb2   : > { %6046 = vmatmul.mubr.msk.bf16.gmra.mrb[8].mxu0 %vm919_vm3, %v9535_v29 }
  0xb3   : > { %6178 = vmatmul.mubr.msk.bf16.gmra.mrb[4].mxu1 %vm919_vm3, %v7565_v3  ;;  %6049 = vmatprep.mubr.msk.bf16.mxu0 %vm919_vm3, %v9547_v48 }
  0xb4   : > { %6181 = vmatprep.mubr.msk.bf16.mxu1 %vm919_vm3, %v7580_v26 }
  0xba   : > { %6050 = vmatmul.mubr.msk.bf16.gmra.mrb[12].mxu0 %vm919_vm3, %v9548_v44 }
  0xbb   : > { %6182 = vmatmul.mubr.msk.bf16.gmra.mrb[8].mxu1 %vm919_vm3, %v7588_v28  ;;  %6053 = vmatprep.mubr.msk.bf16.mxu0 %vm919_vm3, %v9552_v45 }
  0xbc   : > { %6185 = vmatprep.mubr.msk.bf16.mxu1 %vm919_vm3, %v7602_v14 }
  0xc2   : > { %6054 = vmatmul.mubr.msk.bf16.gmra.mrb[16].mxu0 %vm919_vm3, %v9553_v63 }
  0xc3   : > { %6186 = vmatmul.mubr.msk.bf16.gmra.mrb[12].mxu1 %vm919_vm3, %v7608_v23  ;;  %6057 = vmatprep.mubr.msk.bf16.mxu0 %vm919_vm3, %v9554_v19 }
  0xc4   : > { %6189 = vmatprep.mubr.msk.bf16.mxu1 %vm919_vm3, %v7630_v40 }
  0xca   : > { %6058 = vmatmul.mubr.msk.bf16.gmra.mrb[20].mxu0 %vm919_vm3, %v9555_v7 }
  0xcb   : > { %6190 = vmatmul.mubr.msk.bf16.gmra.mrb[16].mxu1 %vm919_vm3, %v7638_v55  ;;  %6061 = vmatprep.mubr.msk.bf16.mxu0 %vm919_vm3, %v9556_v33 }
  0xcc   : > { %6193 = vmatprep.mubr.msk.bf16.mxu1 %vm919_vm3, %v7654_v25 }
  0xd2   : > { %6062 = vmatmul.mubr.msk.bf16.gmra.mrb[24].mxu0 %vm919_vm3, %v9557_v20 }
  0xd3   : > { %6194 = vmatmul.mubr.msk.bf16.gmra.mrb[20].mxu1 %vm919_vm3, %v7660_v6  ;;  %6065 = vmatprep.mubr.msk.bf16.mxu0 %vm919_vm3, %v7478_v52 }
  0xd4   : > { %6197 = vmatprep.mubr.msk.bf16.mxu1 %vm919_vm3, %v7673_v42 }
  0xda   : > { %6066 = vmatmul.mubr.msk.bf16.gmra.mrb[28].mxu0 %vm919_vm3, %v7512_v21 }
  0xdb   : > { %6198 = vmatmul.mubr.msk.bf16.gmra.mrb[24].mxu1 %vm919_vm3, %v7681_v51  ;;  %6071 = vmatprep.mubr.msk.bf16.mxu0 %vm919_vm3, %v5431_v60  ;;  %v9560_v60 = vld [vmem:[#allocation5_spill] sm:$0xff] }
  0xdc   : > { %6201 = vmatprep.mubr.msk.bf16.mxu1 %vm919_vm3, %v7690_v54 }
  0xe2   : > { %6072 = vmatmul.mubr.msk.bf16.vlgmr.msra.gmra.mrb[0].mxu0 %vm919_vm3, %v9558_v0 }
  0xe3   : > { %6202 = vmatmul.mubr.msk.bf16.gmra.mrb[28].mxu1 %vm919_vm3, %v7703_v50  ;;  %6240 = vmatpush3.bf16.msra.mxu0 %v2626_v39  ;;  %v840_v39 = vrot.slane %v838_v53, 4 }
  0xe4   : > { %6075 = vmatprep.mubr.msk.bf16.mxu0 %vm919_vm3, %v9559_v43  ;;  %6207 = vmatprep.mubr.msk.bf16.mxu1 %vm919_vm3, %v5414_v17  ;;  %v9572_v17 = vld [vmem:[#allocation40_spill] sm:$0xff] }
  0xe5   : > { %6904 = vmatprep.subr.msk.bf16.mxu0 %vm968_vm0, %v245_v15  ;;  %v843_v15 = vrot.slane %v841_v61, 5  ;;  %v5529_v61 = vcombine.low %v7970_v9, %v7973_v4 }
  0xea   : > { %6076 = vmatmul.mubr.msk.bf16.gmra.mrb[4].mxu0 %vm919_vm3, %v9560_v60 }
  0xeb   : > { %6208 = vmatmul.mubr.msk.bf16.vlgmr.msra.gmra.mrb[0].mxu1 %vm919_vm3, %v7174_v24  ;;  %6079 = vmatprep.mubr.msk.bf16.mxu0 %vm919_vm3, %v9561_v57 }
  0xec   : > { %6376 = vmatpush3.bf16.msra.mxu1 %v3352_v34  ;;  %6211 = vmatprep.mubr.msk.bf16.mxu1 %vm919_vm3, %v7123_v16  ;;  %v849_v34 = vrot.slane %v847_v37, 5 }
  0xed   : > { %6908 = vmatprep.subr.msk.bf16.mxu1 %vm968_vm0, %v249_v5  ;;  %v853_v5 = vrot.slane %v851_v62, 4 }
  0xf2   : > { %6080 = vmatmul.mubr.msk.bf16.gmra.mrb[8].mxu0 %vm919_vm3, %v9562_v11 }
  0xf3   : > { %6212 = vmatmul.mubr.msk.bf16.gmra.mrb[4].mxu1 %vm919_vm3, %v7155_v56  ;;  %6083 = vmatprep.mubr.msk.bf16.mxu0 %vm919_vm3, %v9563_v31 }
  0xf4   : > { %6215 = vmatprep.mubr.msk.bf16.mxu1 %vm919_vm3, %v7188_v35 }
  0xfa   : > { %6084 = vmatmul.mubr.msk.bf16.gmra.mrb[12].mxu0 %vm919_vm3, %v9564_v27 }
  0xfb   : > { %6216 = vmatmul.mubr.msk.bf16.gmra.mrb[8].mxu1 %vm919_vm3, %v9535_v29  ;;  %6087 = vmatprep.mubr.msk.bf16.mxu0 %vm919_vm3, %v9565_v30 }
  0xfc   : > { %6219 = vmatprep.mubr.msk.bf16.mxu1 %vm919_vm3, %v9547_v48 }
 0x102   : > { %6088 = vmatmul.mubr.msk.bf16.gmra.mrb[16].mxu0 %vm919_vm3, %v9566_v46 }
 0x103   : > { %6220 = vmatmul.mubr.msk.bf16.gmra.mrb[12].mxu1 %vm919_vm3, %v9548_v44  ;;  %6091 = vmatprep.mubr.msk.bf16.mxu0 %vm919_vm3, %v9567_v12 }
 0x104   : > { %6223 = vmatprep.mubr.msk.bf16.mxu1 %vm919_vm3, %v9552_v45 }
 0x10a   : > { %6092 = vmatmul.mubr.msk.bf16.gmra.mrb[20].mxu0 %vm919_vm3, %v9568_v36 }
 0x10b   : > { %6224 = vmatmul.mubr.msk.bf16.gmra.mrb[16].mxu1 %vm919_vm3, %v9553_v63  ;;  %6095 = vmatprep.mubr.msk.bf16.mxu0 %vm919_vm3, %v9569_v13 }
 0x10c   : > { %6227 = vmatprep.mubr.msk.bf16.mxu1 %vm919_vm3, %v9554_v19 }
 0x112   : > { %6096 = vmatmul.mubr.msk.bf16.gmra.mrb[24].mxu0 %vm919_vm3, %v9570_v47 }
 0x113   : > { %6228 = vmatmul.mubr.msk.bf16.gmra.mrb[20].mxu1 %vm919_vm3, %v9555_v7  ;;  %6099 = vmatprep.mubr.msk.bf16.mxu0 %vm919_vm3, %v9571_v10 }
 0x114   : > { %6231 = vmatprep.mubr.msk.bf16.mxu1 %vm919_vm3, %v9556_v33 }
 0x11a   : > { %6100 = vmatmul.mubr.msk.bf16.gmra.mrb[28].mxu0 %vm919_vm3, %v9572_v17 }
 0x11b   : > { %6232 = vmatmul.mubr.msk.bf16.gmra.mrb[24].mxu1 %vm919_vm3, %v9557_v20  ;;  %6241 = vmatprep.mubr.msk.bf16.mxu0 %vm919_vm3, %v9559_v43 }
 0x11c   : > { %6235 = vmatprep.mubr.msk.bf16.mxu1 %vm919_vm3, %v7478_v52 }
 0x122   : > { %6242 = vmatmul.mubr.msk.bf16.vlgmr.msra.gmra.mrb[32].mxu0 %vm919_vm3, %v9560_v60 }
 0x123   : > { %6236 = vmatmul.mubr.msk.bf16.gmra.mrb[28].mxu1 %vm919_vm3, %v7512_v21  ;;  %6274 = vmatpush3.bf16.msra.mxu0 %v2796_v2  ;;  %v7988_v2 = vld [vmem:[%s7014_s29 + $0xd4] sm:$0x1] }
 0x124   : > { %6245 = vmatprep.mubr.msk.bf16.mxu0 %vm919_vm3, %v9561_v57  ;;  %6377 = vmatprep.mubr.msk.bf16.mxu1 %vm919_vm3, %v7123_v16  ;;  %v857_v53 = vshll.u32 %v7988_v2, 16 }
 0x125   : > { %6905 = vmatprep.subr.msk.bf16.mxu0 %vm968_vm0, %v247_v59 }
 0x12a   : > { %6246 = vmatmul.mubr.msk.bf16.gmra.mrb[36].mxu0 %vm919_vm3, %v9562_v11 }
 0x12b   : > { %6378 = vmatmul.mubr.msk.bf16.vlgmr.msra.gmra.mrb[32].mxu1 %vm919_vm3, %v7155_v56  ;;  %6249 = vmatprep.mubr.msk.bf16.mxu0 %vm919_vm3, %v9563_v31 }
 0x12c   : > { %6410 = vmatpush3.bf16.msra.mxu1 %v3522_v8  ;;  %6381 = vmatprep.mubr.msk.bf16.mxu1 %vm919_vm3, %v7188_v35  ;;  %v844_v8 = vor.u32 %v843_v15, %v840_v39 }
 0x12d   : > { %6909 = vmatprep.subr.msk.bf16.mxu1 %vm968_vm0, %v251_v1  ;;  %v5349_v1 = vrot.slane %v7970_v9, 9 }
 0x12e   : > { %v845_v62 = vrot.slane %v844_v8, 4  ;;  %v248_v8 = vld [vmem:[%s9395_s1 + $0x2c] sm:$0xf] }
 0x130   : > { %v850_v39 = vsel %vm7069_vm4, %v845_v62, %v849_v34 }
 0x132   : > { %6250 = vmatmul.mubr.msk.bf16.gmra.mrb[40].mxu0 %vm919_vm3, %v9564_v27 }
 0x133   : > { %6382 = vmatmul.mubr.msk.bf16.gmra.mrb[36].mxu1 %vm919_vm3, %v9535_v29  ;;  %6253 = vmatprep.mubr.msk.bf16.mxu0 %vm919_vm3, %v9565_v30 }
 0x134   : > { %6385 = vmatprep.mubr.msk.bf16.mxu1 %vm919_vm3, %v9547_v48 }
 0x13a   : > { %6254 = vmatmul.mubr.msk.bf16.gmra.mrb[44].mxu0 %vm919_vm3, %v9566_v46 }
 0x13b   : > { %6386 = vmatmul.mubr.msk.bf16.gmra.mrb[40].mxu1 %vm919_vm3, %v9548_v44  ;;  %6257 = vmatprep.mubr.msk.bf16.mxu0 %vm919_vm3, %v9567_v12 }
 0x13c   : > { %6389 = vmatprep.mubr.msk.bf16.mxu1 %vm919_vm3, %v9552_v45 }
 0x142   : > { %6258 = vmatmul.mubr.msk.bf16.gmra.mrb[48].mxu0 %vm919_vm3, %v9568_v36 }
 0x143   : > { %6390 = vmatmul.mubr.msk.bf16.gmra.mrb[44].mxu1 %vm919_vm3, %v9553_v63  ;;  %6261 = vmatprep.mubr.msk.bf16.mxu0 %vm919_vm3, %v9569_v13 }
 0x144   : > { %6393 = vmatprep.mubr.msk.bf16.mxu1 %vm919_vm3, %v9554_v19 }
 0x14a   : > { %6262 = vmatmul.mubr.msk.bf16.gmra.mrb[52].mxu0 %vm919_vm3, %v9570_v47  ;;  %v859_v47 = vrot.slane %v857_v53, 5  ;;  %v869_v53 = vrot.slane %v7988_v2, 5  ;;  %v3156_v2 = vsel %vm968_vm0, %v248_v8, 0 }
 0x14b   : > { %6394 = vmatmul.mubr.msk.bf16.gmra.mrb[48].mxu1 %vm919_vm3, %v9555_v7  ;;  %6265 = vmatprep.mubr.msk.bf16.mxu0 %vm919_vm3, %v9571_v10  ;;  %v854_v10 = vor.u32 %v853_v5, %v849_v34 }
 0x14c   : > { %6397 = vmatprep.mubr.msk.bf16.mxu1 %vm919_vm3, %v9556_v33 }
 0x14d   : > { %v855_v37 = vrot.slane %v854_v10, 4  ;;  %v2960_v10 = vsel %vm968_vm0, %v247_v59, 0  ;;  %v866_v59 = vrot.slane %v7973_v4, 5 }
 0x14f   : > { %v860_v15 = vsel %vm7069_vm4, %v855_v37, %v859_v47  ;;  %v252_v47 = vld [vmem:[%s9395_s1 + $0x3c] sm:$0xf]  ;;  %v868_v34 = vrot.slane %v866_v59, 4 }
 0x150   : > { %v5546_v5 = vcombine.low %v850_v39, %v860_v15  ;;  %v3882_v62 = vsel %vm968_vm0, %v252_v47, 0 }
 0x151   : > { %v870_v9 = vsel %vm7483_vm7, %v868_v34, %v869_v53 }
 0x152   : > { %6266 = vmatmul.mubr.msk.bf16.gmra.mrb[56].mxu0 %vm919_vm3, %v9572_v17 }
 0x153   : > { %6398 = vmatmul.mubr.msk.bf16.gmra.mrb[52].mxu1 %vm919_vm3, %v9557_v20  ;;  %6269 = vmatprep.mubr.msk.bf16.mxu0 %vm919_vm3, %v7493_v18 }
 0x154   : > { %6401 = vmatprep.mubr.msk.bf16.mxu1 %vm919_vm3, %v7478_v52 }
 0x15a   : > { %6270 = vmatmul.mubr.msk.bf16.gmra.mrb[60].mxu0 %vm919_vm3, %v5529_v61  ;;  %v867_v61 = vsel %vm7483_vm7, %v5349_v1, %v866_v59 }
 0x15b   : > { %6402 = vmatmul.mubr.msk.bf16.gmra.mrb[56].mxu1 %vm919_vm3, %v7512_v21  ;;  %6275 = vmatprep.mubr.msk.bf16.mxu0 %vm919_vm3, %v7123_v16  ;;  %v5611_v4 = vcombine.low %v867_v61, %v870_v9 }
 0x15c   : > { %6405 = vmatprep.mubr.msk.bf16.mxu1 %vm919_vm3, %v7546_v32 }
 0x162   : > { %6276 = vmatmul.mubr.msk.bf16.vlgmr.msra.gmra.mrb[32].mxu0 %vm919_vm3, %v7155_v56 }
 0x163   : > { %6406 = vmatmul.mubr.msk.bf16.gmra.mrb[60].mxu1 %vm919_vm3, %v5546_v5  ;;  %6308 = vmatpush3.bf16.msra.mxu0 %v2960_v10 }
 0x164   : > { %6279 = vmatprep.mubr.msk.bf16.mxu0 %vm919_vm3, %v7188_v35  ;;  %6411 = vmatprep.mubr.msk.bf16.mxu1 %vm919_vm3, %v7543_v41 }
 0x165   : > { %6906 = vmatprep.subr.msk.bf16.mxu0 %vm968_vm0, %v248_v8 }
 0x16a   : > { %6280 = vmatmul.mubr.msk.bf16.gmra.mrb[36].mxu0 %vm919_vm3, %v9535_v29 }
 0x16b   : > { %6412 = vmatmul.mubr.msk.bf16.vlgmr.msra.gmra.mrb[32].mxu1 %vm919_vm3, %v7565_v3  ;;  %6283 = vmatprep.mubr.msk.bf16.mxu0 %vm919_vm3, %v9547_v48 }
 0x16c   : > { %6444 = vmatpush3.bf16.msra.mxu1 %v3686_v38  ;;  %6415 = vmatprep.mubr.msk.bf16.mxu1 %vm919_vm3, %v7580_v26 }
 0x16d   : > { %6910 = vmatprep.subr.msk.bf16.mxu1 %vm968_vm0, %v252_v47 }
 0x172   : > { %6284 = vmatmul.mubr.msk.bf16.gmra.mrb[40].mxu0 %vm919_vm3, %v9548_v44 }
 0x173   : > { %6416 = vmatmul.mubr.msk.bf16.gmra.mrb[36].mxu1 %vm919_vm3, %v7588_v28  ;;  %6287 = vmatprep.mubr.msk.bf16.mxu0 %vm919_vm3, %v9552_v45 }
 0x174   : > { %6419 = vmatprep.mubr.msk.bf16.mxu1 %vm919_vm3, %v7602_v14 }
 0x17a   : > { %6288 = vmatmul.mubr.msk.bf16.gmra.mrb[44].mxu0 %vm919_vm3, %v9553_v63 }
 0x17b   : > { %6420 = vmatmul.mubr.msk.bf16.gmra.mrb[40].mxu1 %vm919_vm3, %v7608_v23  ;;  %6291 = vmatprep.mubr.msk.bf16.mxu0 %vm919_vm3, %v9554_v19 }
 0x17c   : > { %6423 = vmatprep.mubr.msk.bf16.mxu1 %vm919_vm3, %v7630_v40 }
 0x182   : > { %6292 = vmatmul.mubr.msk.bf16.gmra.mrb[48].mxu0 %vm919_vm3, %v9555_v7 }
 0x183   : > { %6424 = vmatmul.mubr.msk.bf16.gmra.mrb[44].mxu1 %vm919_vm3, %v7638_v55  ;;  %6295 = vmatprep.mubr.msk.bf16.mxu0 %vm919_vm3, %v9556_v33 }
 0x184   : > { %6427 = vmatprep.mubr.msk.bf16.mxu1 %vm919_vm3, %v7654_v25 }
 0x18a   : > { %6296 = vmatmul.mubr.msk.bf16.gmra.mrb[52].mxu0 %vm919_vm3, %v9557_v20 }
 0x18b   : > { %6428 = vmatmul.mubr.msk.bf16.gmra.mrb[48].mxu1 %vm919_vm3, %v7660_v6  ;;  %6299 = vmatprep.mubr.msk.bf16.mxu0 %vm919_vm3, %v7478_v52 }
 0x18c   : > { %6431 = vmatprep.mubr.msk.bf16.mxu1 %vm919_vm3, %v7673_v42 }
 0x192   : > { %6300 = vmatmul.mubr.msk.bf16.gmra.mrb[56].mxu0 %vm919_vm3, %v7512_v21 }
 0x193   : > { %6432 = vmatmul.mubr.msk.bf16.gmra.mrb[52].mxu1 %vm919_vm3, %v7681_v51  ;;  %6303 = vmatprep.mubr.msk.bf16.mxu0 %vm919_vm3, %v7546_v32 }
 0x194   : > { %6435 = vmatprep.mubr.msk.bf16.mxu1 %vm919_vm3, %v7690_v54 }
 0x19a   : > { %6304 = vmatmul.mubr.msk.bf16.gmra.mrb[60].mxu0 %vm919_vm3, %v5546_v5 }
 0x19b   : > { %6436 = vmatmul.mubr.msk.bf16.gmra.mrb[56].mxu1 %vm919_vm3, %v7703_v50  ;;  %6309 = vmatprep.mubr.msk.bf16.mxu0 %vm919_vm3, %v7174_v24 }
 0x19c   : > { %6439 = vmatprep.mubr.msk.bf16.mxu1 %vm919_vm3, %v7721_v58 }
 0x1a2   : > { %6310 = vmatmul.mubr.msk.bf16.vlgmr.msra.gmra.mrb[32].mxu0 %vm919_vm3, %v7123_v16 }
 0x1a3   : > { %6440 = vmatmul.mubr.msk.bf16.gmra.mrb[60].mxu1 %vm919_vm3, %v5611_v4  ;;  %6342 = vmatpush3.bf16.msra.mxu0 %v3156_v2 }
 0x1a4   : > { %6313 = vmatprep.mubr.msk.bf16.mxu0 %vm919_vm3, %v7155_v56  ;;  %6445 = vmatprep.mubr.msk.bf16.mxu1 %vm919_vm3, %v7534_v49 }
 0x1aa   : > { %6314 = vmatmul.mubr.msk.bf16.gmra.mrb[36].mxu0 %vm919_vm3, %v7188_v35 }
 0x1ab   : > { %6446 = vmatmul.mubr.msk.bf16.vlgmr.msra.gmra.mrb[32].mxu1 %vm919_vm3, %v7543_v41  ;;  %6317 = vmatprep.mubr.msk.bf16.mxu0 %vm919_vm3, %v9535_v29 }
 0x1ac   : > { %6478 = vmatpush3.bf16.msra.mxu1 %v3882_v62  ;;  %6449 = vmatprep.mubr.msk.bf16.mxu1 %vm919_vm3, %v7565_v3 }
 0x1b2   : > { %6318 = vmatmul.mubr.msk.bf16.gmra.mrb[40].mxu0 %vm919_vm3, %v9547_v48 }
 0x1b3   : > { %6450 = vmatmul.mubr.msk.bf16.gmra.mrb[36].mxu1 %vm919_vm3, %v7580_v26  ;;  %6321 = vmatprep.mubr.msk.bf16.mxu0 %vm919_vm3, %v9548_v44 }
 0x1b4   : > { %6453 = vmatprep.mubr.msk.bf16.mxu1 %vm919_vm3, %v7588_v28 }
 0x1b5   : > { %v8116_v22 = vpop.f32.mrb[0].mxu0 }
 0x1b6   : > { %9573 = vst [vmem:[#allocation2_spill] sm:$0xff] %v8116_v22  ;;  %v8118_v49 = vpop.f32.mrb[1].mxu0  ;;  %v4150_v37 = vmul.f32 %v8116_v22, %v8116_v22  ;;  %v4081_v38 = vsel %vm4077_vm8, %v8116_v22, 0.0 }
 0x1b7   : > { %9574 = vst [vmem:[#allocation9_spill] sm:$0xff] %v8118_v49  ;;  %v4148_v41 = vmul.f32 %v8118_v49, %v8118_v49  ;;  %v8122_v3 = vpop.f32.mrb[2].mxu0  ;;  %v4078_v28 = vsel %vm4077_vm8, %v8118_v49, 0.0 }
 0x1b8   : > { %9575 = vst [vmem:[#allocation16_spill] sm:$0xff] %v8122_v3  ;;  %v8128_v39 = vpop.f32.mrb[3].mxu0  ;;  %v4151_v59 = vmul.f32 %v8122_v3, %v8122_v3  ;;  %v4083_v61 = vsel %vm4077_vm8, %v8122_v3, 0.0 }
 0x1b9   : > { %9576 = vst [vmem:[#allocation18_spill] sm:$0xff] %v8128_v39  ;;  %v4079_v15 = vsel %vm4077_vm8, %v8128_v39, 0.0  ;;  %v4149_v5 = vmul.f32 %v8128_v39, %v8128_v39  ;;  %v4180_v47 = vsel %vm4077_vm8, %v4148_v41, 0.0 }
 0x1ba   : > { %v4080_v8 = vadd.f32 %v4079_v15, %v4078_v28  ;;  %6322 = vmatmul.mubr.msk.bf16.gmra.mrb[44].mxu0 %vm919_vm3, %v9552_v45 }
 0x1bb   : > { %6454 = vmatmul.mubr.msk.bf16.gmra.mrb[40].mxu1 %vm919_vm3, %v7602_v14  ;;  %v4181_v1 = vsel %vm4077_vm8, %v4149_v5, 0.0  ;;  %6325 = vmatprep.mubr.msk.bf16.mxu0 %vm919_vm3, %v9553_v63  ;;  %v4183_v14 = vsel %vm4077_vm8, %v4150_v37, 0.0 }
 0x1bc   : > { %6457 = vmatprep.mubr.msk.bf16.mxu1 %vm919_vm3, %v7608_v23  ;;  %v4082_v34 = vadd.f32 %v4081_v38, %v4080_v8  ;;  %v4182_v53 = vadd.f32 %v4181_v1, %v4180_v47  ;;  %v4185_v23 = vsel %vm4077_vm8, %v4151_v59, 0.0 }
 0x1bd   : > { %v8155_v9 = vpop.f32.mrb[4].mxu0 }
 0x1be   : > { %9577 = vst [vmem:[#allocation19_spill] sm:$0xff] %v8155_v9  ;;  %v6209_v4 = vpop.f32.mrb[0].mxu1  ;;  %v4184_v2 = vadd.f32 %v4183_v14, %v4182_v53  ;;  %v4154_v62 = vmul.f32 %v8155_v9, %v8155_v9  ;;  %v8159_v41 = vpop.f32.mrb[5].mxu0  ;;  %v4084_v28 = vadd.f32 %v4083_v61, %v4082_v34  ;;  %v4089_v47 = vsel %vm4077_vm8, %v8155_v9, 0.0 }
 0x1bf   : > { %9578 = vst [vmem:[#allocation21_spill] sm:$0xff] %v8159_v41  ;;  %v8161_v15 = vpop.f32.mrb[1].mxu1  ;;  %v4085_v37 = vsel %vm4077_vm8, %v8159_v41, 0.0  ;;  %v4152_v5 = vmul.f32 %v8159_v41, %v8159_v41  ;;  %v8168_v8 = vpop.f32.mrb[6].mxu0  ;;  %v4253_v61 = vsel %vm4077_vm8, %v6209_v4, 0.0  ;;  %v4322_v10 = vmul.f32 %v6209_v4, %v6209_v4 }
 0x1c0   : > { %9579 = vst [vmem:[#allocation23_spill] sm:$0xff] %v8168_v8  ;;  %v6210_v38 = vpop.f32.mrb[2].mxu1  ;;  %v4086_v1 = vadd.f32 %v4085_v37, %v4084_v28  ;;  %v4186_v53 = vadd.f32 %v4185_v23, %v4184_v2  ;;  %v8172_v14 = vpop.f32.mrb[7].mxu0  ;;  %v4191_v49 = vsel %vm4077_vm8, %v4154_v62, 0.0  ;;  %v4320_v22 = vmul.f32 %v8161_v15, %v8161_v15 }
 0x1c1   : > { %9580 = vst [vmem:[#allocation24_spill] sm:$0xff] %v8172_v14  ;;  %v8174_v34 = vpop.f32.mrb[3].mxu1  ;;  %v4187_v59 = vsel %vm4077_vm8, %v4152_v5, 0.0  ;;  %v4087_v2 = vsel %vm4077_vm8, %v8172_v14, 0.0  ;;  %v4091_v28 = vsel %vm4077_vm8, %v8168_v8, 0.0  ;;  %v4153_v62 = vmul.f32 %v8172_v14, %v8172_v14 }
 0x1c2   : > { %v4188_v39 = vadd.f32 %v4187_v59, %v4186_v53  ;;  %6326 = vmatmul.mubr.msk.bf16.gmra.mrb[48].mxu0 %vm919_vm3, %v9554_v19  ;;  %v4088_v23 = vadd.f32 %v4087_v2, %v4086_v1  ;;  %v4155_v5 = vmul.f32 %v8168_v8, %v8168_v8  ;;  %v4323_v53 = vmul.f32 %v6210_v38, %v6210_v38 }
 0x1c3   : > { %6458 = vmatmul.mubr.msk.bf16.gmra.mrb[44].mxu1 %vm919_vm3, %v7630_v40  ;;  %6329 = vmatprep.mubr.msk.bf16.mxu0 %vm919_vm3, %v9555_v7  ;;  %v4250_v40 = vsel %vm4077_vm8, %v8161_v15, 0.0  ;;  %v4251_v1 = vsel %vm4077_vm8, %v8174_v34, 0.0  ;;  %v4189_v2 = vsel %vm4077_vm8, %v4153_v62, 0.0  ;;  %v4321_v26 = vmul.f32 %v8174_v34, %v8174_v34 }
 0x1c4   : > { %6461 = vmatprep.mubr.msk.bf16.mxu1 %vm919_vm3, %v7638_v55  ;;  %v4090_v59 = vadd.f32 %v4089_v47, %v4088_v23  ;;  %v4252_v37 = vadd.f32 %v4251_v1, %v4250_v40  ;;  %v4355_v14 = vsel %vm4077_vm8, %v4322_v10, 0.0  ;;  %v4190_v9 = vadd.f32 %v4189_v2, %v4188_v39 }
 0x1c5   : > { %v8208_v41 = vpop.f32.mrb[8].mxu0  ;;  %v4787_v8 = vpack.c.bf16 %v8174_v34, %v8161_v15  ;;  %v4788_v3 = vpack.c.bf16 %v6210_v38, %v6209_v4  ;;  %v4352_v23 = vsel %vm4077_vm8, %v4320_v22, 0.0  ;;  %v4353_v40 = vsel %vm4077_vm8, %v4321_v26, 0.0 }
 0x1c6   : > { %9581 = vst [vmem:[#allocation26_spill] sm:$0xff] %v8208_v41  ;;  %v8210_v55 = vpop.f32.mrb[4].mxu1  ;;  %v8215_v18 = vpop.f32.mrb[9].mxu0  ;;  %v4254_v62 = vadd.f32 %v4253_v61, %v4252_v37  ;;  %v4158_v1 = vmul.f32 %v8208_v41, %v8208_v41  ;;  %v4192_v39 = vadd.f32 %v4191_v49, %v4190_v9  ;;  %v4354_v2 = vadd.f32 %v4353_v40, %v4352_v23 }
 0x1c7   : > { %9582 = vst [vmem:[#allocation28_spill] sm:$0xff] %v8215_v18  ;;  %v8217_v47 = vpop.f32.mrb[5].mxu1  ;;  %v8223_v17 = vpop.f32.mrb[10].mxu0  ;;  %4853 = vrot.lane.b32.xlu0 %v4788_v3, %s6949_s25  ;;  %v4092_v4 = vadd.f32 %v4091_v28, %v4090_v59  ;;  %v4093_v15 = vsel %vm4077_vm8, %v8215_v18, 0.0  ;;  %v4193_v26 = vsel %vm4077_vm8, %v4155_v5, 0.0  ;;  %v4255_v61 = vsel %vm4077_vm8, %v6210_v38, 0.0 }
 0x1c8   : > { %9583 = vst [vmem:[#allocation29_spill] sm:$0xff] %v8223_v17  ;;  %v8225_v10 = vpop.f32.mrb[6].mxu1  ;;  %v8230_v22 = vpop.f32.mrb[11].mxu0  ;;  %v4357_v37 = vsel %vm4077_vm8, %v4323_v53, 0.0  ;;  %v4156_v49 = vmul.f32 %v8215_v18, %v8215_v18  ;;  %v4356_v9 = vadd.f32 %v4355_v14, %v4354_v2  ;;  %v4097_v3 = vsel %vm4077_vm8, %v8208_v41, 0.0 }
 0x1c9   : > { %9584 = vst [vmem:[#allocation31_spill] sm:$0xff] %v8230_v22  ;;  %v8232_v34 = vpop.f32.mrb[7].mxu1  ;;  %v4094_v28 = vadd.f32 %v4093_v15, %v4092_v4  ;;  %v4194_v59 = vadd.f32 %v4193_v26, %v4192_v39  ;;  %v4199_v5 = vsel %vm4077_vm8, %v4158_v1, 0.0  ;;  %v4261_v53 = vsel %vm4077_vm8, %v8210_v55, 0.0 }
 0x1ca   : > { %6330 = vmatmul.mubr.msk.bf16.gmra.mrb[52].mxu0 %vm919_vm3, %v9556_v33  ;;  %v4195_v38 = vsel %vm4077_vm8, %v4156_v49, 0.0  ;;  %v4257_v40 = vsel %vm4077_vm8, %v8217_v47, 0.0  ;;  %v4324_v1 = vmul.f32 %v8217_v47, %v8217_v47  ;;  %v4159_v39 = vmul.f32 %v8223_v17, %v8223_v17 }
 0x1cb   : > { %6462 = vmatmul.mubr.msk.bf16.gmra.mrb[48].mxu1 %vm919_vm3, %v7654_v25  ;;  %6333 = vmatprep.mubr.msk.bf16.mxu0 %vm919_vm3, %v9557_v20  ;;  %v4196_v23 = vadd.f32 %v4195_v38, %v4194_v59  ;;  %v4256_v25 = vadd.f32 %v4255_v61, %v4254_v62  ;;  %v4358_v2 = vadd.f32 %v4357_v37, %v4356_v9  ;;  %v4095_v4 = vsel %vm4077_vm8, %v8230_v22, 0.0 }
 0x1cc   : > { %6465 = vmatprep.mubr.msk.bf16.mxu1 %vm919_vm3, %v7660_v6  ;;  %4851 = vrot.lane.b32.xlu0 %v4787_v8, %s6949_s25  ;;  %v4157_v6 = vmul.f32 %v8230_v22, %v8230_v22  ;;  %v4359_v26 = vsel %vm4077_vm8, %v4324_v1, 0.0  ;;  %v4096_v61 = vadd.f32 %v4095_v4, %v4094_v28  ;;  %v4326_v9 = vmul.f32 %v8210_v55, %v8210_v55 }
 0x1cd   : > { %v8266_v15 = vpop.f32.mrb[12].mxu0  ;;  %v4258_v62 = vadd.f32 %v4257_v40, %v4256_v25  ;;  %v4099_v38 = vsel %vm4077_vm8, %v8223_v17, 0.0  ;;  %v4360_v14 = vadd.f32 %v4359_v26, %v4358_v2  ;;  %v4259_v4 = vsel %vm4077_vm8, %v8232_v34, 0.0 }
 0x1ce   : > { %9585 = vst [vmem:[#allocation33_spill] sm:$0xff] %v8266_v15  ;;  %v8268_v8 = vpop.f32.mrb[8].mxu1  ;;  %v8273_v59 = vpop.f32.mrb[13].mxu0  ;;  %v4197_v41 = vsel %vm4077_vm8, %v4157_v6, 0.0  ;;  %v4098_v28 = vadd.f32 %v4097_v3, %v4096_v61  ;;  %v4325_v49 = vmul.f32 %v8232_v34, %v8232_v34  ;;  %v4327_v2 = vmul.f32 %v8225_v10, %v8225_v10 }
 0x1cf   : > { %9586 = vst [vmem:[#allocation11_spill] sm:$0xff] %v8273_v59  ;;  %v8275_v37 = vpop.f32.mrb[9].mxu1  ;;  %v8282_v25 = vpop.f32.mrb[14].mxu0  ;;  %v4198_v1 = vadd.f32 %v4197_v41, %v4196_v23  ;;  %v4260_v6 = vadd.f32 %v4259_v4, %v4258_v62  ;;  %v4789_v26 = vpack.c.bf16 %v8232_v34, %v8217_v47  ;;  %v4790_v41 = vpack.c.bf16 %v8225_v10, %v8210_v55 }
 0x1d0   : > { %9587 = vst [vmem:[#allocation13_spill] sm:$0xff] %v8282_v25  ;;  %v8284_v40 = vpop.f32.mrb[10].mxu1  ;;  %v8290_v18 = vpop.f32.mrb[15].mxu0  ;;  %v4201_v3 = vsel %vm4077_vm8, %v4159_v39, 0.0  ;;  %v4361_v61 = vsel %vm4077_vm8, %v4325_v49, 0.0  ;;  %v4162_v17 = vmul.f32 %v8266_v15, %v8266_v15  ;;  %v4100_v47 = vadd.f32 %v4099_v38, %v4098_v28 }
 0x1d1   : > { %9588 = vst [vmem:[#allocation34_spill] sm:$0xff] %v8290_v18  ;;  %v8292_v22 = vpop.f32.mrb[11].mxu1  ;;  %v4200_v23 = vadd.f32 %v4199_v5, %v4198_v1  ;;  %v4262_v62 = vadd.f32 %v4261_v53, %v4260_v6  ;;  %v4362_v4 = vadd.f32 %v4361_v61, %v4360_v14  ;;  %4857 = vrot.lane.b32.xlu1 %v4790_v41, %s6949_s25  ;;  %v4101_v55 = vsel %vm4077_vm8, %v8273_v59, 0.0 }
 0x1d2   : > { %6334 = vmatmul.mubr.msk.bf16.gmra.mrb[56].mxu0 %vm919_vm3, %v7478_v52  ;;  %v4363_v34 = vsel %vm4077_vm8, %v4326_v9, 0.0  ;;  %v4160_v5 = vmul.f32 %v8273_v59, %v8273_v59  ;;  %v4365_v53 = vsel %vm4077_vm8, %v4327_v2, 0.0  ;;  %v4102_v49 = vadd.f32 %v4101_v55, %v4100_v47 }
 0x1d3   : > { %6466 = vmatmul.mubr.msk.bf16.gmra.mrb[52].mxu1 %vm919_vm3, %v7673_v42  ;;  %6337 = vmatprep.mubr.msk.bf16.mxu0 %vm919_vm3, %v7512_v21  ;;  %v4202_v39 = vadd.f32 %v4201_v3, %v4200_v23  ;;  %v4263_v42 = vsel %vm4077_vm8, %v8225_v10, 0.0  ;;  %v4364_v14 = vadd.f32 %v4363_v34, %v4362_v4  ;;  %v4105_v9 = vsel %vm4077_vm8, %v8266_v15, 0.0 }
 0x1d4   : > { %6469 = vmatprep.mubr.msk.bf16.mxu1 %vm919_vm3, %v7681_v51  ;;  %v4203_v1 = vsel %vm4077_vm8, %v4160_v5, 0.0  ;;  %v4264_v51 = vadd.f32 %v4263_v42, %v4262_v62  ;;  %v4207_v2 = vsel %vm4077_vm8, %v4162_v17, 0.0  ;;  %v4265_v23 = vsel %vm4077_vm8, %v8275_v37, 0.0 }
 0x1d5   : > { %v8321_v38 = vpop.f32.mrb[16].mxu0  ;;  %v4204_v3 = vadd.f32 %v4203_v1, %v4202_v39  ;;  %4855 = vrot.lane.b32.xlu1 %v4789_v26, %s6949_s25  ;;  %v4328_v61 = vmul.f32 %v8275_v37, %v8275_v37  ;;  %v4330_v62 = vmul.f32 %v8268_v8, %v8268_v8  ;;  %v4366_v34 = vadd.f32 %v4365_v53, %v4364_v14 }
 0x1d6   : > { %v8323_v28 = vpop.f32.mrb[12].mxu1  ;;  %v8330_v41 = vpop.f32.mrb[17].mxu0  ;;  %v4266_v55 = vadd.f32 %v4265_v23, %v4264_v51  ;;  %v4103_v17 = vsel %vm4077_vm8, %v8290_v18, 0.0  ;;  %v4161_v1 = vmul.f32 %v8290_v18, %v8290_v18  ;;  %v4107_v51 = vsel %vm4077_vm8, %v8282_v25, 0.0 }
 0x1d7   : > { %9589 = vst [vmem:[#allocation36_spill] sm:$0xff] %v8330_v41  ;;  %v8332_v10 = vpop.f32.mrb[13].mxu1  ;;  %v8340_v4 = vpop.f32.mrb[18].mxu0  ;;  %v4367_v39 = vsel %vm4077_vm8, %v4328_v61, 0.0  ;;  %v4104_v42 = vadd.f32 %v4103_v17, %v4102_v49  ;;  %v4163_v53 = vmul.f32 %v8282_v25, %v8282_v25  ;;  %v4792_v23 = vpack.c.bf16 %v8284_v40, %v8268_v8 }
 0x1d8   : > { %v8342_v47 = vpop.f32.mrb[14].mxu1  ;;  %v8348_v5 = vpop.f32.mrb[19].mxu0  ;;  %v4368_v14 = vadd.f32 %v4367_v39, %v4366_v34  ;;  %v4205_v61 = vsel %vm4077_vm8, %v4161_v1, 0.0  ;;  %v4267_v17 = vsel %vm4077_vm8, %v8292_v22, 0.0  ;;  %v4329_v6 = vmul.f32 %v8292_v22, %v8292_v22 }
 0x1d9   : > { %9590 = vst [vmem:[#allocation39_spill] sm:$0xff] %v8348_v5  ;;  %v8350_v26 = vpop.f32.mrb[15].mxu1  ;;  %v4106_v49 = vadd.f32 %v4105_v9, %v4104_v42  ;;  %v4206_v34 = vadd.f32 %v4205_v61, %v4204_v3  ;;  %v4331_v39 = vmul.f32 %v8284_v40, %v8284_v40  ;;  %v4791_v9 = vpack.c.bf16 %v8292_v22, %v8275_v37 }
 0x1da   : > { %6338 = vmatmul.mubr.msk.bf16.gmra.mrb[60].mxu0 %vm919_vm3, %v7546_v32  ;;  %4861 = vrot.lane.b32.xlu1 %v4792_v23, %s6949_s25  ;;  %v4269_v42 = vsel %vm4077_vm8, %v8268_v8, 0.0  ;;  %v4369_v1 = vsel %vm4077_vm8, %v4329_v6, 0.0  ;;  %v4109_v22 = vsel %vm4077_vm8, %v8330_v41, 0.0  ;;  %v4371_v6 = vsel %vm4077_vm8, %v4330_v62, 0.0 }
 0x1db   : > { %6470 = vmatmul.mubr.msk.bf16.gmra.mrb[56].mxu1 %vm919_vm3, %v7690_v54  ;;  %6343 = vmatprep.mubr.msk.bf16.mxu0 %vm919_vm3, %v9558_v0  ;;  %v4268_v54 = vadd.f32 %v4267_v17, %v4266_v55  ;;  %v4166_v0 = vmul.f32 %v8321_v38, %v8321_v38  ;;  %v4108_v59 = vadd.f32 %v4107_v51, %v4106_v49  ;;  %v4209_v51 = vsel %vm4077_vm8, %v4163_v53, 0.0 }
 0x1dc   : > { %6473 = vmatprep.mubr.msk.bf16.mxu1 %vm919_vm3, %v7703_v50  ;;  %v4208_v61 = vadd.f32 %v4207_v2, %v4206_v34  ;;  %v4370_v17 = vadd.f32 %v4369_v1, %v4368_v14  ;;  %4859 = vrot.lane.b32.xlu0 %v4791_v9, %s6949_s25  ;;  %v4164_v49 = vmul.f32 %v8330_v41, %v8330_v41  ;;  %v4271_v34 = vsel %vm4077_vm8, %v8284_v40, 0.0 }
 0x1dd   : > { %v8386_v50 = vpop.f32.mrb[20].mxu0  ;;  %v4270_v55 = vadd.f32 %v4269_v42, %v4268_v54  ;;  %v4110_v23 = vadd.f32 %v4109_v22, %v4108_v59  ;;  %v4373_v54 = vsel %vm4077_vm8, %v4331_v39, 0.0  ;;  %v4113_v59 = vsel %vm4077_vm8, %v8321_v38, 0.0 }
 0x1de   : > { %v8388_v3 = vpop.f32.mrb[16].mxu1  ;;  %v8393_v37 = vpop.f32.mrb[21].mxu0  ;;  %v4372_v9 = vadd.f32 %v4371_v6, %v4370_v17  ;;  %v4210_v42 = vadd.f32 %v4209_v51, %v4208_v61  ;;  %v4211_v53 = vsel %vm4077_vm8, %v4164_v49, 0.0  ;;  %v4215_v15 = vsel %vm4077_vm8, %v4166_v0, 0.0 }
 0x1df   : > { %9591 = vst [vmem:[#allocation15_spill] sm:$0xff] %v8393_v37  ;;  %v8395_v8 = vpop.f32.mrb[17].mxu1  ;;  %v8401_v2 = vpop.f32.mrb[22].mxu0  ;;  %v4272_v18 = vadd.f32 %v4271_v34, %v4270_v55  ;;  %v4273_v39 = vsel %vm4077_vm8, %v8332_v10, 0.0  ;;  %v4332_v61 = vmul.f32 %v8332_v10, %v8332_v10  ;;  %v4334_v17 = vmul.f32 %v8323_v28, %v8323_v28 }
 0x1e0   : > { %v8403_v14 = vpop.f32.mrb[18].mxu1  ;;  %v8408_v1 = vpop.f32.mrb[23].mxu0  ;;  %v4212_v40 = vadd.f32 %v4211_v53, %v4210_v42  ;;  %v4374_v55 = vadd.f32 %v4373_v54, %v4372_v9  ;;  %v4111_v0 = vsel %vm4077_vm8, %v8348_v5, 0.0  ;;  %v4167_v34 = vmul.f32 %v8340_v4, %v8340_v4 }
 0x1e1   : > { %9592 = vst [vmem:[#allocation20_spill] sm:$0xff] %v8408_v1  ;;  %v8410_v62 = vpop.f32.mrb[19].mxu1  ;;  %v4274_v6 = vadd.f32 %v4273_v39, %v4272_v18  ;;  %v4375_v51 = vsel %vm4077_vm8, %v4332_v61, 0.0  ;;  %v4115_v18 = vsel %vm4077_vm8, %v8340_v4, 0.0  ;;  %v4275_v53 = vsel %vm4077_vm8, %v8350_v26, 0.0 }
 0x1e2   : > { %6344 = vmatmul.mubr.msk.bf16.vlgmr.msra.gmra.mrb[32].mxu0 %vm919_vm3, %v9559_v43  ;;  %v4112_v43 = vadd.f32 %v4111_v0, %v4110_v23  ;;  %v4376_v54 = vadd.f32 %v4375_v51, %v4374_v55  ;;  %v4333_v39 = vmul.f32 %v8350_v26, %v8350_v26  ;;  %v4335_v51 = vmul.f32 %v8342_v47, %v8342_v47 }
 0x1e3   : > { %6474 = vmatmul.mubr.msk.bf16.gmra.mrb[60].mxu1 %vm919_vm3, %v7721_v58  ;;  %6347 = vmatprep.mubr.msk.bf16.mxu0 %vm919_vm3, %v9560_v60  ;;  %v4165_v58 = vmul.f32 %v8348_v5, %v8348_v5  ;;  %v4794_v60 = vpack.c.bf16 %v8342_v47, %v8323_v28  ;;  %v4276_v49 = vadd.f32 %v4275_v53, %v4274_v6  ;;  %v4277_v22 = vsel %vm4077_vm8, %v8323_v28, 0.0 }
 0x1e4   : > { %6479 = vmatprep.mubr.msk.bf16.mxu1 %vm919_vm3, %v7174_v24  ;;  %v4114_v23 = vadd.f32 %v4113_v59, %v4112_v43  ;;  %v4793_v59 = vpack.c.bf16 %v8350_v26, %v8332_v10  ;;  %v4377_v25 = vsel %vm4077_vm8, %v4333_v39, 0.0  ;;  %v4117_v53 = vsel %vm4077_vm8, %v8393_v37, 0.0 }
 0x1e5   : > { %v8445_v24 = vpop.f32.mrb[24].mxu0  ;;  %v4213_v42 = vsel %vm4077_vm8, %v4165_v58, 0.0  ;;  %4865 = vrot.lane.b32.xlu1 %v4794_v60, %s6949_s25  ;;  %v4278_v26 = vadd.f32 %v4277_v22, %v4276_v49  ;;  %v4378_v60 = vadd.f32 %v4377_v25, %v4376_v54  ;;  %v4379_v28 = vsel %vm4077_vm8, %v4334_v17, 0.0 }
 0x1e6   : > { %v8447_v9 = vpop.f32.mrb[20].mxu1  ;;  %v8454_v61 = vpop.f32.mrb[25].mxu0  ;;  %v4214_v55 = vadd.f32 %v4213_v42, %v4212_v40  ;;  %v4170_v40 = vmul.f32 %v8386_v50, %v8386_v50  ;;  %v4116_v42 = vadd.f32 %v4115_v18, %v4114_v23  ;;  %4863 = vrot.lane.b32.xlu0 %v4793_v59, %s6949_s25  ;;  %v4217_v39 = vsel %vm4077_vm8, %v4167_v34, 0.0 }
 0x1e7   : > { %v8456_v0 = vpop.f32.mrb[21].mxu1  ;;  %v8463_v43 = vpop.f32.mrb[26].mxu0  ;;  %v4168_v18 = vmul.f32 %v8393_v37, %v8393_v37  ;;  %v4381_v25 = vsel %vm4077_vm8, %v4335_v51, 0.0  ;;  %v4380_v22 = vadd.f32 %v4379_v28, %v4378_v60  ;;  %v4121_v17 = vsel %vm4077_vm8, %v8386_v50, 0.0 }
 0x1e8   : > { %v8465_v58 = vpop.f32.mrb[22].mxu1  ;;  %v8472_v41 = vpop.f32.mrb[27].mxu0  ;;  %v4216_v10 = vadd.f32 %v4215_v15, %v4214_v55  ;;  %v4118_v5 = vadd.f32 %v4117_v53, %v4116_v42  ;;  %v4279_v15 = vsel %vm4077_vm8, %v8342_v47, 0.0  ;;  %v4223_v47 = vsel %vm4077_vm8, %v4170_v40, 0.0 }
 0x1e9   : > { %v8474_v6 = vpop.f32.mrb[23].mxu1  ;;  %v4280_v34 = vadd.f32 %v4279_v15, %v4278_v26  ;;  %v4281_v23 = vsel %vm4077_vm8, %v8395_v8, 0.0  ;;  %v4338_v51 = vmul.f32 %v8388_v3, %v8388_v3  ;;  %v4382_v42 = vadd.f32 %v4381_v25, %v4380_v22 }
 0x1ea   : > { %6348 = vmatmul.mubr.msk.bf16.gmra.mrb[36].mxu0 %vm919_vm3, %v9561_v57  ;;  %v4218_v49 = vadd.f32 %v4217_v39, %v4216_v10  ;;  %v4219_v57 = vsel %vm4077_vm8, %v4168_v18, 0.0  ;;  %v4119_v10 = vsel %vm4077_vm8, %v8408_v1, 0.0  ;;  %v4169_v28 = vmul.f32 %v8408_v1, %v8408_v1 }
 0x1eb   : > { %6480 = vmatmul.mubr.msk.bf16.vlgmr.msra.gmra.mrb[32].mxu1 %vm919_vm3, %v7123_v16  ;;  %6351 = vmatprep.mubr.msk.bf16.mxu0 %vm919_vm3, %v9562_v11  ;;  %v4336_v11 = vmul.f32 %v8395_v8, %v8395_v8  ;;  %v4282_v59 = vadd.f32 %v4281_v23, %v4280_v34  ;;  %v4120_v53 = vadd.f32 %v4119_v10, %v4118_v5  ;;  %v4283_v10 = vsel %vm4077_vm8, %v8410_v62, 0.0 }
 0x1ec   : > { %6483 = vmatprep.mubr.msk.bf16.mxu1 %vm919_vm3, %v7155_v56  ;;  %v4220_v54 = vadd.f32 %v4219_v57, %v4218_v49  ;;  %v4171_v25 = vmul.f32 %v8401_v2, %v8401_v2  ;;  %v4339_v49 = vmul.f32 %v8403_v14, %v8403_v14  ;;  %v4796_v5 = vpack.c.bf16 %v8403_v14, %v8388_v3 }
 0x1ed   : > { %v8504_v55 = vpop.f32.mrb[28].mxu0  ;;  %v4383_v60 = vsel %vm4077_vm8, %v4336_v11, 0.0  ;;  %v4122_v23 = vadd.f32 %v4121_v17, %v4120_v53  ;;  %v4221_v11 = vsel %vm4077_vm8, %v4169_v28, 0.0  ;;  %v4337_v39 = vmul.f32 %v8410_v62, %v8410_v62 }
 0x1ee   : > { %v8506_v56 = vpop.f32.mrb[24].mxu1  ;;  %v8512_v40 = vpop.f32.mrb[29].mxu0  ;;  %v4384_v22 = vadd.f32 %v4383_v60, %v4382_v42  ;;  %v4123_v42 = vsel %vm4077_vm8, %v8401_v2, 0.0  ;;  %v4222_v60 = vadd.f32 %v4221_v11, %v4220_v54  ;;  %v4284_v16 = vadd.f32 %v4283_v10, %v4282_v59  ;;  %4869 = vrot.lane.b32.xlu1 %v4796_v5, %s6949_s25 }
 0x1ef   : > { %v8514_v26 = vpop.f32.mrb[25].mxu1  ;;  %v8521_v18 = vpop.f32.mrb[30].mxu0  ;;  %v4795_v37 = vpack.c.bf16 %v8410_v62, %v8395_v8  ;;  %v4285_v17 = vsel %vm4077_vm8, %v8388_v3, 0.0  ;;  %v4385_v53 = vsel %vm4077_vm8, %v4337_v39, 0.0  ;;  %v4174_v28 = vmul.f32 %v8445_v24, %v8445_v24 }
 0x1f0   : > { %v8523_v15 = vpop.f32.mrb[26].mxu1  ;;  %v8531_v57 = vpop.f32.mrb[31].mxu0  ;;  %v4124_v1 = vadd.f32 %v4123_v42, %v4122_v23  ;;  %v4224_v8 = vadd.f32 %v4223_v47, %v4222_v60  ;;  %v4286_v62 = vadd.f32 %v4285_v17, %v4284_v16  ;;  %v4386_v54 = vadd.f32 %v4385_v53, %v4384_v22 }
 0x1f1   : > { %v8533_v34 = vpop.f32.mrb[27].mxu1  ;;  %4867 = vrot.lane.b32.xlu0 %v4795_v37, %s6949_s25  ;;  %v4387_v3 = vsel %vm4077_vm8, %v4338_v51, 0.0  ;;  %v4225_v59 = vsel %vm4077_vm8, %v4171_v25, 0.0  ;;  %v4287_v16 = vsel %vm4077_vm8, %v8403_v14, 0.0  ;;  %v4389_v37 = vsel %vm4077_vm8, %v4339_v49, 0.0 }
 0x1f2   : > { %6352 = vmatmul.mubr.msk.bf16.gmra.mrb[40].mxu0 %vm919_vm3, %v9563_v31  ;;  %v4125_v31 = vsel %vm4077_vm8, %v8454_v61, 0.0  ;;  %v4388_v47 = vadd.f32 %v4387_v3, %v4386_v54  ;;  %v4226_v22 = vadd.f32 %v4225_v59, %v4224_v8  ;;  %v4288_v25 = vadd.f32 %v4287_v16, %v4286_v62 }
 0x1f3   : > { %6484 = vmatmul.mubr.msk.bf16.gmra.mrb[36].mxu1 %vm919_vm3, %v7188_v35  ;;  %6355 = vmatprep.mubr.msk.bf16.mxu0 %vm919_vm3, %v9564_v27  ;;  %v4126_v39 = vadd.f32 %v4125_v31, %v4124_v1  ;;  %v4172_v35 = vmul.f32 %v8454_v61, %v8454_v61  ;;  %v4784_v1 = vpack.c.bf16 %v8463_v43, %v8445_v24  ;;  %v4231_v11 = vsel %vm4077_vm8, %v4174_v28, 0.0 }
 0x1f4   : > { %6487 = vmatprep.mubr.msk.bf16.mxu1 %vm919_vm3, %v9535_v29  ;;  %v4129_v29 = vsel %vm4077_vm8, %v8445_v24, 0.0  ;;  %v4289_v49 = vsel %vm4077_vm8, %v8456_v0, 0.0  ;;  %v4340_v10 = vmul.f32 %v8456_v0, %v8456_v0  ;;  %v4342_v60 = vmul.f32 %v8447_v9, %v8447_v9 }
 0x1f5   : > { %v4227_v51 = vsel %vm4077_vm8, %v4172_v35, 0.0  ;;  %v4290_v17 = vadd.f32 %v4289_v49, %v4288_v25  ;;  %v4390_v53 = vadd.f32 %v4389_v37, %v4388_v47  ;;  %v4127_v8 = vsel %vm4077_vm8, %v8472_v41, 0.0 }
 0x1f6   : > { %v8565_v27 = vpop.f32.mrb[28].mxu1  ;;  %v4228_v14 = vadd.f32 %v4227_v51, %v4226_v22  ;;  %v4391_v62 = vsel %vm4077_vm8, %v4340_v10, 0.0  ;;  %v4128_v28 = vadd.f32 %v4127_v8, %v4126_v39  ;;  %v4173_v54 = vmul.f32 %v8472_v41, %v8472_v41 }
 0x1f7   : > { %v8570_v5 = vpop.f32.mrb[29].mxu1  ;;  %v4783_v31 = vpack.c.bf16 %v8472_v41, %v8454_v61  ;;  %v4293_v3 = vsel %vm4077_vm8, %v8447_v9, 0.0  ;;  %v4175_v59 = vmul.f32 %v8463_v43, %v8463_v43  ;;  %v4392_v35 = vadd.f32 %v4391_v62, %v4390_v53 }
 0x1f8   : > { %v8577_v23 = vpop.f32.mrb[30].mxu1  ;;  %v4798_v16 = vpack.c.bf16 %v8465_v58, %v8447_v9  ;;  %v4130_v39 = vadd.f32 %v4129_v29, %v4128_v28  ;;  %v4229_v37 = vsel %vm4077_vm8, %v4173_v54, 0.0  ;;  %v4341_v47 = vmul.f32 %v8474_v6, %v8474_v6 }
 0x1f9   : > { %v8584_v42 = vpop.f32.mrb[31].mxu1  ;;  %v4131_v9 = vsel %vm4077_vm8, %v8463_v43, 0.0  ;;  %v4230_v22 = vadd.f32 %v4229_v37, %v4228_v14  ;;  %v4395_v29 = vsel %vm4077_vm8, %v4342_v60, 0.0  ;;  %v4343_v51 = vmul.f32 %v8465_v58, %v8465_v58 }
 0x1fa   : > { %6356 = vmatmul.mubr.msk.bf16.gmra.mrb[44].mxu0 %vm919_vm3, %v9565_v30  ;;  %v4291_v30 = vsel %vm4077_vm8, %v8474_v6, 0.0  ;;  %4873 = vrot.lane.b32.xlu1 %v4798_v16, %s6949_s25  ;;  %v4393_v25 = vsel %vm4077_vm8, %v4341_v47, 0.0  ;;  %v4132_v49 = vadd.f32 %v4131_v9, %v4130_v39  ;;  %v4133_v14 = vsel %vm4077_vm8, %v8512_v40, 0.0 }
 0x1fb   : > { %6488 = vmatmul.mubr.msk.bf16.gmra.mrb[40].mxu1 %vm919_vm3, %v9547_v48  ;;  %6359 = vmatprep.mubr.msk.bf16.mxu0 %vm919_vm3, %v9566_v46  ;;  %v4292_v48 = vadd.f32 %v4291_v30, %v4290_v17  ;;  %v4797_v46 = vpack.c.bf16 %v8474_v6, %v8456_v0  ;;  %v4232_v10 = vadd.f32 %v4231_v11, %v4230_v22  ;;  %v4233_v0 = vsel %vm4077_vm8, %v4175_v59, 0.0 }
 0x1fc   : > { %6491 = vmatprep.mubr.msk.bf16.mxu1 %vm919_vm3, %v9548_v44  ;;  %v4394_v53 = vadd.f32 %v4393_v25, %v4392_v35  ;;  %v4178_v6 = vmul.f32 %v8504_v55, %v8504_v55  ;;  %v4134_v60 = vadd.f32 %v4133_v14, %v4132_v49  ;;  %v4176_v17 = vmul.f32 %v8512_v40, %v8512_v40 }
 0x1fd   : > { %v4294_v44 = vadd.f32 %v4293_v3, %v4292_v48  ;;  %4871 = vrot.lane.b32.xlu0 %v4797_v46, %s6949_s25  ;;  %v4295_v8 = vsel %vm4077_vm8, %v8465_v58, 0.0  ;;  %v4234_v62 = vadd.f32 %v4233_v0, %v4232_v10  ;;  %v4397_v28 = vsel %vm4077_vm8, %v4343_v51, 0.0 }
 0x1fe   : > { %v4396_v11 = vadd.f32 %v4395_v29, %v4394_v53  ;;  %v4235_v54 = vsel %vm4077_vm8, %v4176_v17, 0.0  ;;  %v4137_v35 = vsel %vm4077_vm8, %v8504_v55, 0.0  ;;  %v4297_v58 = vsel %vm4077_vm8, %v8514_v26, 0.0 }
 0x1ff   : > { %v4296_v59 = vadd.f32 %v4295_v8, %v4294_v44  ;;  %v4236_v16 = vadd.f32 %v4235_v54, %v4234_v62  ;;  %v4344_v39 = vmul.f32 %v8514_v26, %v8514_v26  ;;  %v4239_v37 = vsel %vm4077_vm8, %v4178_v6, 0.0 }
 0x200   : > { %v4135_v47 = vsel %vm4077_vm8, %v8531_v57, 0.0  ;;  %v4177_v48 = vmul.f32 %v8531_v57, %v8531_v57  ;;  %v4179_v46 = vmul.f32 %v8521_v18, %v8521_v18  ;;  %v4800_v51 = vpack.c.bf16 %v8523_v15, %v8506_v56 }
 0x201   : > { %v4298_v30 = vadd.f32 %v4297_v58, %v4296_v59  ;;  %v4399_v9 = vsel %vm4077_vm8, %v4344_v39, 0.0  ;;  %v4136_v22 = vadd.f32 %v4135_v47, %v4134_v60  ;;  %v4299_v49 = vsel %vm4077_vm8, %v8533_v34, 0.0 }
 0x202   : > { %6360 = vmatmul.mubr.msk.bf16.gmra.mrb[48].mxu0 %vm919_vm3, %v9567_v12  ;;  %v4398_v12 = vadd.f32 %v4397_v28, %v4396_v11  ;;  %v4237_v25 = vsel %vm4077_vm8, %v4177_v48, 0.0  ;;  %v4345_v10 = vmul.f32 %v8533_v34, %v8533_v34  ;;  %v4139_v44 = vsel %vm4077_vm8, %v8521_v18, 0.0  ;;  %4877 = vrot.lane.b32.xlu1 %v4800_v51, %s6949_s25 }
 0x203   : > { %6492 = vmatmul.mubr.msk.bf16.gmra.mrb[44].mxu1 %vm919_vm3, %v9552_v45  ;;  %6363 = vmatprep.mubr.msk.bf16.mxu0 %vm919_vm3, %v9568_v36  ;;  %v4346_v36 = vmul.f32 %v8506_v56, %v8506_v56  ;;  %v4238_v53 = vadd.f32 %v4237_v25, %v4236_v16  ;;  %v4300_v14 = vadd.f32 %v4299_v49, %v4298_v30  ;;  %v4301_v6 = vsel %vm4077_vm8, %v8506_v56, 0.0 }
 0x204   : > { %6495 = vmatprep.mubr.msk.bf16.mxu1 %vm919_vm3, %v9553_v63  ;;  %v4400_v29 = vadd.f32 %v4399_v9, %v4398_v12  ;;  %v4138_v63 = vadd.f32 %v4137_v35, %v4136_v22  ;;  %v4799_v0 = vpack.c.bf16 %v8533_v34, %v8514_v26  ;;  %v4347_v17 = vmul.f32 %v8523_v15, %v8523_v15  ;;  %v9593_v35 = vld [vmem:[#allocation32_spill] sm:$0xff] }
 0x205   : > { %v4401_v8 = vsel %vm4077_vm8, %v4345_v10, 0.0  ;;  %v4403_v11 = vsel %vm4077_vm8, %v4346_v36, 0.0  ;;  %v4240_v62 = vadd.f32 %v4239_v37, %v4238_v53  ;;  %v4302_v28 = vadd.f32 %v4301_v6, %v4300_v14  ;;  %v9594_v53 = vld [vmem:[#allocation37_spill] sm:$0xff] }
 0x206   : > { %v4140_v60 = vadd.f32 %v4139_v44, %v4138_v63  ;;  %v4402_v54 = vadd.f32 %v4401_v8, %v4400_v29  ;;  %4875 = vrot.lane.b32.xlu0 %v4799_v0, %s6949_s25  ;;  %v4241_v26 = vsel %vm4077_vm8, %v4179_v46, 0.0  ;;  %v4303_v56 = vsel %vm4077_vm8, %v8523_v15, 0.0 }
 0x207   : > { %v4305_v34 = vsel %vm4077_vm8, %v8570_v5, 0.0  ;;  %v4348_v59 = vmul.f32 %v8570_v5, %v8570_v5  ;;  %v4242_v58 = vadd.f32 %v4241_v26, %v4240_v62  ;;  %v4304_v39 = vadd.f32 %v4303_v56, %v4302_v28  ;;  %v9596_v56 = vld [vmem:[#allocation41_spill] sm:$0xff] }
 0x208   : > { %v4141_v16 = vrot.slane %v4140_v60, 4  ;;  %v4405_v15 = vsel %vm4077_vm8, %v4347_v17, 0.0  ;;  %v4802_v30 = vpack.c.bf16 %v8577_v23, %v8565_v27  ;;  %v4350_v22 = vmul.f32 %v8565_v27, %v8565_v27 }
 0x209   : > { %v4407_v37 = vsel %vm4077_vm8, %v4348_v59, 0.0  ;;  %v4243_v12 = vrot.slane %v4242_v58, 4  ;;  %v4306_v47 = vadd.f32 %v4305_v34, %v4304_v39  ;;  %v4349_v48 = vmul.f32 %v8584_v42, %v8584_v42 }
 0x20a   : > { %6364 = vmatmul.mubr.msk.bf16.gmra.mrb[52].mxu0 %vm919_vm3, %v9569_v13  ;;  %v4404_v13 = vadd.f32 %v4403_v11, %v4402_v54  ;;  %4881 = vrot.lane.b32.xlu1 %v4802_v30, %s6949_s25  ;;  %v4142_v36 = vadd.f32 %v4141_v16, %v4140_v60  ;;  %v4309_v51 = vsel %vm4077_vm8, %v8565_v27, 0.0  ;;  %v4351_v63 = vmul.f32 %v8577_v23, %v8577_v23  ;;  %v9595_v27 = vld [vmem:[#allocation40_spill] sm:$0xff] }
 0x20b   : > { %6496 = vmatmul.mubr.msk.bf16.gmra.mrb[48].mxu1 %vm919_vm3, %v9554_v19  ;;  %6367 = vmatprep.mubr.msk.bf16.mxu0 %vm919_vm3, %v9593_v35  ;;  %v4307_v19 = vsel %vm4077_vm8, %v8584_v42, 0.0  ;;  %v4409_v25 = vsel %vm4077_vm8, %v4349_v48, 0.0  ;;  %v4244_v49 = vadd.f32 %v4243_v12, %v4242_v58 }
 0x20c   : > { %6499 = vmatprep.mubr.msk.bf16.mxu1 %vm919_vm3, %v9555_v7  ;;  %v4406_v9 = vadd.f32 %v4405_v15, %v4404_v13  ;;  %v4801_v7 = vpack.c.bf16 %v8584_v42, %v8570_v5  ;;  %v4308_v29 = vadd.f32 %v4307_v19, %v4306_v47  ;;  %v4411_v5 = vsel %vm4077_vm8, %v4350_v22, 0.0 }
 0x20d   : > { %v4311_v42 = vsel %vm4077_vm8, %v8577_v23, 0.0  ;;  %v4143_v14 = vrot.slane %v4142_v36, 2  ;;  %v4413_v60 = vsel %vm4077_vm8, %v4351_v63, 0.0  ;;  %v4245_v17 = vrot.slane %v4244_v49, 2  ;;  %v9598_v63 = vld [vmem:[#allocation39_spill] sm:$0xff] }
 0x20e   : > { %v4408_v46 = vadd.f32 %v4407_v37, %v4406_v9  ;;  %4879 = vrot.lane.b32.xlu0 %v4801_v7, %s6949_s25  ;;  %v4310_v10 = vadd.f32 %v4309_v51, %v4308_v29 }
 0x20f   : > { %v4144_v62 = vadd.f32 %v4143_v14, %v4142_v36  ;;  %v4246_v54 = vadd.f32 %v4245_v17, %v4244_v49 }
 0x210   : > { %v4410_v44 = vadd.f32 %v4409_v25, %v4408_v46  ;;  %v4312_v0 = vadd.f32 %v4311_v42, %v4310_v10  ;;  %v9599_v25 = vld [vmem:[#allocation36_spill] sm:$0xff] }
 0x211   : > { %v4145_v34 = vrot.slane %v4144_v62, 1  ;;  %v4247_v35 = vrot.slane %v4246_v54, 1  ;;  %v9600_v49 = vpack.c.bf16 %v9598_v63, %v9599_v25 }
 0x212   : > { %6368 = vmatmul.mubr.msk.bf16.gmra.mrb[56].mxu0 %vm919_vm3, %v9594_v53  ;;  %v4412_v6 = vadd.f32 %v4411_v5, %v4410_v44  ;;  %v4313_v8 = vrot.slane %v4312_v0, 4  ;;  %v9601_v53 = vpack.c.bf16 %v8401_v2, %v8386_v50 }
 0x213   : > { %6500 = vmatmul.mubr.msk.bf16.gmra.mrb[52].mxu1 %vm919_vm3, %v9556_v33  ;;  %6371 = vmatprep.mubr.msk.bf16.mxu0 %vm919_vm3, %v9595_v27  ;;  %v4146_v13 = vadd.f32 %v4145_v34, %v4144_v62  ;;  %v4248_v37 = vadd.f32 %v4247_v35, %v4246_v54  ;;  %v9602_v27 = vld [vmem:[#allocation20_spill] sm:$0xff] }
 0x214   : > { %6503 = vmatprep.mubr.msk.bf16.mxu1 %vm919_vm3, %v9557_v20  ;;  %v4414_v11 = vadd.f32 %v4413_v60, %v4412_v6  ;;  %v4314_v28 = vadd.f32 %v4313_v8, %v4312_v0 }
 0x216   : > { %v4415_v23 = vrot.slane %v4414_v11, 4  ;;  %v4315_v26 = vrot.slane %v4314_v28, 2 }
 0x218   : > { %v4416_v33 = vadd.f32 %v4415_v23, %v4414_v11  ;;  %v4316_v59 = vadd.f32 %v4315_v26, %v4314_v28 }
 0x21a   : > { %6372 = vmatmul.mubr.msk.bf16.gmra.mrb[60].mxu0 %vm919_vm3, %v9596_v56  ;;  %v4417_v20 = vrot.slane %v4416_v33, 2  ;;  %v4317_v16 = vrot.slane %v4316_v59, 1 }
 0x21b   : > { %6504 = vmatmul.mubr.msk.bf16.gmra.mrb[56].mxu1 %vm919_vm3, %v7478_v52 }
 0x21c   : > { %6507 = vmatprep.mubr.msk.bf16.mxu1 %vm919_vm3, %v7512_v21  ;;  %v4418_v58 = vadd.f32 %v4417_v20, %v4416_v33  ;;  %v4318_v39 = vadd.f32 %v4317_v16, %v4316_v59 }
 0x21e   : > { %v4419_v15 = vrot.slane %v4418_v58, 1  ;;  %v8734_v30 = vadd.f32 %v4318_v39, %v4146_v13 }
 0x220   : > { %v4420_v19 = vadd.f32 %v4419_v15, %v4418_v58 }
 0x222   : > { %v8738_v52 = vadd.f32 %v4420_v19, %v4248_v37 }
 0x223   : > { %6508 = vmatmul.mubr.msk.bf16.gmra.mrb[60].mxu1 %vm919_vm3, %v7546_v32  ;;  %v9597_v32 = vpack.c.bf16 %v8340_v4, %v8321_v38  ;;  %v9603_v38 = vld [vmem:[#allocation15_spill] sm:$0xff] }
 0x224   : > { %v9604_v4 = vpack.c.bf16 %v9602_v27, %v9603_v38 }
 0x239   : > { %v8742_v47 = vpop.permute.xlu0 %4853 }
 0x23e   : > { %v8746_v9 = vpop.permute.xlu0 %4851 }
 0x243   : > { %v8740_v12 = vpop.permute.xlu1 %4857 }
 0x247   : > { %v8744_v21 = vpop.permute.xlu1 %4855 }
 0x24c   : > { %v8748_v22 = vpop.permute.xlu1 %4861 }
 0x24e   : > { %v8750_v48 = vpop.permute.xlu0 %4859 }
 0x257   : > { %v8752_v7 = vpop.permute.xlu1 %4865 }
 0x258   : > { %v8754_v36 = vpop.permute.xlu0 %4863 }
 0x260   : > { %v4870_v46 = vpop.permute.xlu1 %4869 }
 0x261   : > { %v8760_v29 = vsel %vm4077_vm8, %v9597_v32, %v4870_v46 }
 0x263   : > { %v4868_v51 = vpop.permute.xlu0 %4867 }
 0x264   : > { %v8766_v10 = vsel %vm4077_vm8, %v9600_v49, %v4868_v51 }
 0x26c   : > { %v4874_v44 = vpop.permute.xlu1 %4873 }
 0x26d   : > { %v8772_v5 = vsel %vm4077_vm8, %v9601_v53, %v4874_v44 }
 0x26f   : > { %v4872_v42 = vpop.permute.xlu0 %4871 }
 0x270   : > { %v8778_v14 = vsel %vm4077_vm8, %v9604_v4, %v4872_v42 }
 0x274   : > { %v4878_v0 = vpop.permute.xlu1 %4877 }
 0x275   : > { %v8784_v6 = vsel %vm4077_vm8, %v4784_v1, %v4878_v0 }
 0x278   : > { %v4876_v60 = vpop.permute.xlu0 %4875 }
 0x279   : > { %v8790_v50 = vsel %vm4077_vm8, %v4783_v31, %v4876_v60 }
 0x2b5   : > { %v6345_v2 = vpop.f32.mrb[32].mxu0 }
 0x2b6   : > { %v3192_v17 = vpop.f32.mrb[33].mxu0  ;;  %v4494_v62 = vmul.f32 %v6345_v2, %v6345_v2  ;;  %v4425_v41 = vsel %vm4077_vm8, %v6345_v2, 0.0 }
 0x2b7   : > { %v4492_v8 = vmul.f32 %v3192_v17, %v3192_v17  ;;  %v6346_v11 = vpop.f32.mrb[34].mxu0  ;;  %v4422_v54 = vsel %vm4077_vm8, %v3192_v17, 0.0 }
 0x2b8   : > { %v4804_v28 = vpack.c.bf16 %v6346_v11, %v6345_v2  ;;  %v3195_v23 = vpop.f32.mrb[35].mxu0  ;;  %v4495_v31 = vmul.f32 %v6346_v11, %v6346_v11  ;;  %v4527_v59 = vsel %vm4077_vm8, %v4494_v62, 0.0  ;;  %v4427_v20 = vsel %vm4077_vm8, %v6346_v11, 0.0 }
 0x2b9   : > { %v4423_v24 = vsel %vm4077_vm8, %v3195_v23, 0.0  ;;  %v4493_v43 = vmul.f32 %v3195_v23, %v3195_v23  ;;  %v4803_v1 = vpack.c.bf16 %v3195_v23, %v3192_v17  ;;  %v4524_v61 = vsel %vm4077_vm8, %v4492_v8, 0.0 }
 0x2ba   : > { %v4424_v26 = vadd.f32 %v4423_v24, %v4422_v54  ;;  %4901 = vrot.lane.b32.xlu1 %v4804_v28, %s6950_s26  ;;  %v4529_v37 = vsel %vm4077_vm8, %v4495_v31, 0.0 }
 0x2bb   : > { %v4525_v33 = vsel %vm4077_vm8, %v4493_v43, 0.0  ;;  %4899 = vrot.lane.b32.xlu0 %v4803_v1, %s6950_s26 }
 0x2bc   : > { %v4426_v56 = vadd.f32 %v4425_v41, %v4424_v26  ;;  %v4526_v34 = vadd.f32 %v4525_v33, %v4524_v61 }
 0x2bd   : > { %v6349_v35 = vpop.f32.mrb[36].mxu0 }
 0x2be   : > { %v6481_v16 = vpop.f32.mrb[32].mxu1  ;;  %v4528_v58 = vadd.f32 %v4527_v59, %v4526_v34  ;;  %v3208_v13 = vpop.f32.mrb[37].mxu0  ;;  %v4428_v39 = vadd.f32 %v4427_v20, %v4426_v56  ;;  %v4498_v63 = vmul.f32 %v6349_v35, %v6349_v35  ;;  %v4433_v42 = vsel %vm4077_vm8, %v6349_v35, 0.0 }
 0x2bf   : > { %v3918_v15 = vpop.f32.mrb[33].mxu1  ;;  %v4429_v19 = vsel %vm4077_vm8, %v3208_v13, 0.0  ;;  %v4496_v46 = vmul.f32 %v3208_v13, %v3208_v13  ;;  %v6350_v32 = vpop.f32.mrb[38].mxu0  ;;  %v4597_v38 = vsel %vm4077_vm8, %v6481_v16, 0.0  ;;  %v4666_v60 = vmul.f32 %v6481_v16, %v6481_v16 }
 0x2c0   : > { %v6482_v51 = vpop.f32.mrb[34].mxu1  ;;  %v4430_v25 = vadd.f32 %v4429_v19, %v4428_v39  ;;  %v4530_v49 = vadd.f32 %v4529_v37, %v4528_v58  ;;  %v3211_v44 = vpop.f32.mrb[39].mxu0  ;;  %v4806_v4 = vpack.c.bf16 %v6350_v32, %v6349_v35  ;;  %v4499_v2 = vmul.f32 %v6350_v32, %v6350_v32 }
 0x2c1   : > { %v3921_v53 = vpop.f32.mrb[35].mxu1  ;;  %v4531_v27 = vsel %vm4077_vm8, %v4496_v46, 0.0  ;;  %v4431_v17 = vsel %vm4077_vm8, %v3211_v44, 0.0  ;;  %v4664_v8 = vmul.f32 %v3918_v15, %v3918_v15  ;;  %v4497_v62 = vmul.f32 %v3211_v44, %v3211_v44 }
 0x2c2   : > { %v4532_v0 = vadd.f32 %v4531_v27, %v4530_v49  ;;  %v4432_v11 = vadd.f32 %v4431_v17, %v4430_v25  ;;  %v4805_v28 = vpack.c.bf16 %v3211_v44, %v3208_v13  ;;  %4905 = vrot.lane.b32.xlu1 %v4806_v4, %s6950_s26  ;;  %v4535_v23 = vsel %vm4077_vm8, %v4498_v63, 0.0 }
 0x2c3   : > { %v4594_v54 = vsel %vm4077_vm8, %v3918_v15, 0.0  ;;  %v4667_v24 = vmul.f32 %v6482_v51, %v6482_v51  ;;  %v4820_v43 = vpack.c.bf16 %v6482_v51, %v6481_v16  ;;  %v4533_v26 = vsel %vm4077_vm8, %v4497_v62, 0.0 }
 0x2c4   : > { %v4434_v1 = vadd.f32 %v4433_v42, %v4432_v11  ;;  %v4595_v41 = vsel %vm4077_vm8, %v3921_v53, 0.0  ;;  %v4665_v61 = vmul.f32 %v3921_v53, %v3921_v53  ;;  %4903 = vrot.lane.b32.xlu0 %v4805_v28, %s6950_s26  ;;  %v4435_v33 = vsel %vm4077_vm8, %v6350_v32, 0.0 }
 0x2c5   : > { %v6353_v31 = vpop.f32.mrb[40].mxu0  ;;  %v4534_v56 = vadd.f32 %v4533_v26, %v4532_v0  ;;  %v4596_v34 = vadd.f32 %v4595_v41, %v4594_v54  ;;  %v4819_v59 = vpack.c.bf16 %v3921_v53, %v3918_v15  ;;  %v4699_v58 = vsel %vm4077_vm8, %v4666_v60, 0.0 }
 0x2c6   : > { %v8814_v20 = vpop.f32.mrb[36].mxu1  ;;  %v3224_v35 = vpop.f32.mrb[41].mxu0  ;;  %v4537_v16 = vsel %vm4077_vm8, %v4499_v2, 0.0  ;;  %v4696_v13 = vsel %vm4077_vm8, %v4664_v8, 0.0  ;;  %v4697_v39 = vsel %vm4077_vm8, %v4665_v61, 0.0  ;;  %4949 = vrot.lane.b32.xlu1 %v4820_v43, %s6951_s27  ;;  %v4599_v15 = vsel %vm4077_vm8, %v6482_v51, 0.0 }
 0x2c7   : > { %v8821_v37 = vpop.f32.mrb[37].mxu1  ;;  %v6354_v19 = vpop.f32.mrb[42].mxu0  ;;  %v4536_v46 = vadd.f32 %v4535_v23, %v4534_v56  ;;  %v4598_v32 = vadd.f32 %v4597_v38, %v4596_v34  ;;  %v4698_v63 = vadd.f32 %v4697_v39, %v4696_v13  ;;  %v4701_v44 = vsel %vm4077_vm8, %v4667_v24, 0.0 }
 0x2c8   : > { %v3227_v25 = vpop.f32.mrb[43].mxu0  ;;  %v6486_v49 = vpop.f32.mrb[38].mxu1  ;;  %v4436_v53 = vadd.f32 %v4435_v33, %v4434_v1  ;;  %v4437_v42 = vsel %vm4077_vm8, %v3224_v35, 0.0  ;;  %v4500_v27 = vmul.f32 %v3224_v35, %v3224_v35  ;;  %4947 = vrot.lane.b32.xlu0 %v4819_v59, %s6951_s27  ;;  %v4502_v60 = vmul.f32 %v6353_v31, %v6353_v31 }
 0x2c9   : > { %v3937_v4 = vpop.f32.mrb[39].mxu1  ;;  %v4700_v0 = vadd.f32 %v4699_v58, %v4698_v63  ;;  %v4538_v2 = vadd.f32 %v4537_v16, %v4536_v46  ;;  %v4600_v17 = vadd.f32 %v4599_v15, %v4598_v32  ;;  %v4601_v38 = vsel %vm4077_vm8, %v8821_v37, 0.0 }
 0x2ca   : > { %v4438_v8 = vadd.f32 %v4437_v42, %v4436_v53  ;;  %v4539_v51 = vsel %vm4077_vm8, %v4500_v27, 0.0  ;;  %v4668_v11 = vmul.f32 %v8821_v37, %v8821_v37  ;;  %v4670_v62 = vmul.f32 %v8814_v20, %v8814_v20 }
 0x2cb   : > { %v4540_v28 = vadd.f32 %v4539_v51, %v4538_v2  ;;  %v4602_v23 = vadd.f32 %v4601_v38, %v4600_v17  ;;  %v4702_v54 = vadd.f32 %v4701_v44, %v4700_v0  ;;  %v4503_v43 = vmul.f32 %v6354_v19, %v6354_v19 }
 0x2cc   : > { %v4703_v24 = vsel %vm4077_vm8, %v4668_v11, 0.0  ;;  %v4808_v1 = vpack.c.bf16 %v6354_v19, %v6353_v31  ;;  %v4439_v26 = vsel %vm4077_vm8, %v3227_v25, 0.0  ;;  %v4501_v56 = vmul.f32 %v3227_v25, %v3227_v25 }
 0x2cd   : > { %v8836_v41 = vpop.f32.mrb[44].mxu0  ;;  %v4704_v61 = vadd.f32 %v4703_v24, %v4702_v54  ;;  %v4440_v33 = vadd.f32 %v4439_v26, %v4438_v8  ;;  %v4807_v34 = vpack.c.bf16 %v3227_v25, %v3224_v35  ;;  %v4441_v16 = vsel %vm4077_vm8, %v6353_v31, 0.0 }
 0x2ce   : > { %v8838_v59 = vpop.f32.mrb[40].mxu1  ;;  %v8840_v58 = vpop.f32.mrb[45].mxu0  ;;  %v4605_v13 = vsel %vm4077_vm8, %v8814_v20, 0.0  ;;  %v4671_v39 = vmul.f32 %v6486_v49, %v6486_v49  ;;  %v4822_v46 = vpack.c.bf16 %v6486_v49, %v8814_v20  ;;  %4909 = vrot.lane.b32.xlu1 %v4808_v1, %s6950_s26  ;;  %v4541_v35 = vsel %vm4077_vm8, %v4501_v56, 0.0 }
 0x2cf   : > { %v8847_v15 = vpop.f32.mrb[41].mxu1  ;;  %v8849_v32 = vpop.f32.mrb[46].mxu0  ;;  %v4442_v63 = vadd.f32 %v4441_v16, %v4440_v33  ;;  %v4603_v25 = vsel %vm4077_vm8, %v3937_v4, 0.0  ;;  %v4669_v44 = vmul.f32 %v3937_v4, %v3937_v4  ;;  %4907 = vrot.lane.b32.xlu0 %v4807_v34, %s6950_s26  ;;  %v4543_v42 = vsel %vm4077_vm8, %v4502_v60, 0.0 }
 0x2d0   : > { %v3243_v31 = vpop.f32.mrb[47].mxu0  ;;  %v8854_v53 = vpop.f32.mrb[42].mxu1  ;;  %v4542_v20 = vadd.f32 %v4541_v35, %v4540_v28  ;;  %v4604_v27 = vadd.f32 %v4603_v25, %v4602_v23  ;;  %v4821_v0 = vpack.c.bf16 %v3937_v4, %v8821_v37  ;;  %v4707_v17 = vsel %vm4077_vm8, %v4670_v62, 0.0 }
 0x2d1   : > { %v8858_v2 = vpop.f32.mrb[43].mxu1  ;;  %v4443_v8 = vsel %vm4077_vm8, %v6354_v19, 0.0  ;;  %v4545_v51 = vsel %vm4077_vm8, %v4503_v43, 0.0  ;;  %v4705_v38 = vsel %vm4077_vm8, %v4669_v44, 0.0  ;;  %v4607_v54 = vsel %vm4077_vm8, %v6486_v49, 0.0 }
 0x2d2   : > { %v4544_v11 = vadd.f32 %v4543_v42, %v4542_v20  ;;  %v4606_v24 = vadd.f32 %v4605_v13, %v4604_v27  ;;  %v4706_v1 = vadd.f32 %v4705_v38, %v4704_v61  ;;  %4953 = vrot.lane.b32.xlu1 %v4822_v46, %s6951_s27  ;;  %v4709_v60 = vsel %vm4077_vm8, %v4671_v39, 0.0 }
 0x2d3   : > { %v4444_v37 = vadd.f32 %v4443_v8, %v4442_v63  ;;  %v4445_v4 = vsel %vm4077_vm8, %v8840_v58, 0.0  ;;  %v4504_v19 = vmul.f32 %v8840_v58, %v8840_v58  ;;  %4951 = vrot.lane.b32.xlu0 %v4821_v0, %s6951_s27  ;;  %v4506_v28 = vmul.f32 %v8836_v41, %v8836_v41 }
 0x2d4   : > { %v4708_v62 = vadd.f32 %v4707_v17, %v4706_v1  ;;  %v4546_v49 = vadd.f32 %v4545_v51, %v4544_v11  ;;  %v4608_v23 = vadd.f32 %v4607_v54, %v4606_v24  ;;  %v4609_v33 = vsel %vm4077_vm8, %v8847_v15, 0.0 }
 0x2d5   : > { %v8874_v43 = vpop.f32.mrb[48].mxu0  ;;  %v4446_v26 = vadd.f32 %v4445_v4, %v4444_v37  ;;  %v4547_v61 = vsel %vm4077_vm8, %v4504_v19, 0.0  ;;  %v4672_v56 = vmul.f32 %v8847_v15, %v8847_v15  ;;  %v4674_v13 = vmul.f32 %v8838_v59, %v8838_v59 }
 0x2d6   : > { %v8881_v34 = vpop.f32.mrb[44].mxu1  ;;  %v8883_v16 = vpop.f32.mrb[49].mxu0  ;;  %v4548_v39 = vadd.f32 %v4547_v61, %v4546_v49  ;;  %v4610_v46 = vadd.f32 %v4609_v33, %v4608_v23  ;;  %v4710_v63 = vadd.f32 %v4709_v60, %v4708_v62  ;;  %v4507_v42 = vmul.f32 %v8849_v32, %v8849_v32 }
 0x2d7   : > { %v8887_v35 = vpop.f32.mrb[45].mxu1  ;;  %v8889_v25 = vpop.f32.mrb[50].mxu0  ;;  %v4711_v44 = vsel %vm4077_vm8, %v4672_v56, 0.0  ;;  %v4810_v20 = vpack.c.bf16 %v8849_v32, %v8836_v41  ;;  %v4447_v27 = vsel %vm4077_vm8, %v3243_v31, 0.0  ;;  %v4505_v38 = vmul.f32 %v3243_v31, %v3243_v31 }
 0x2d8   : > { %v8897_v0 = vpop.f32.mrb[51].mxu0  ;;  %v8899_v17 = vpop.f32.mrb[46].mxu1  ;;  %v4712_v8 = vadd.f32 %v4711_v44, %v4710_v63  ;;  %v4448_v51 = vadd.f32 %v4447_v27, %v4446_v26  ;;  %v4809_v11 = vpack.c.bf16 %v3243_v31, %v8840_v58  ;;  %v4449_v24 = vsel %vm4077_vm8, %v8836_v41, 0.0 }
 0x2d9   : > { %v8902_v54 = vpop.f32.mrb[47].mxu1  ;;  %v4613_v1 = vsel %vm4077_vm8, %v8838_v59, 0.0  ;;  %v4675_v60 = vmul.f32 %v8854_v53, %v8854_v53  ;;  %v4824_v37 = vpack.c.bf16 %v8854_v53, %v8838_v59  ;;  %4913 = vrot.lane.b32.xlu1 %v4810_v20, %s6950_s26  ;;  %v4549_v19 = vsel %vm4077_vm8, %v4505_v38, 0.0 }
 0x2da   : > { %v4450_v4 = vadd.f32 %v4449_v24, %v4448_v51  ;;  %v4611_v58 = vsel %vm4077_vm8, %v8858_v2, 0.0  ;;  %v4673_v41 = vmul.f32 %v8858_v2, %v8858_v2  ;;  %4911 = vrot.lane.b32.xlu0 %v4809_v11, %s6950_s26  ;;  %v4551_v31 = vsel %vm4077_vm8, %v4506_v28, 0.0 }
 0x2db   : > { %v4550_v62 = vadd.f32 %v4549_v19, %v4548_v39  ;;  %v4612_v49 = vadd.f32 %v4611_v58, %v4610_v46  ;;  %v4823_v59 = vpack.c.bf16 %v8858_v2, %v8847_v15  ;;  %v4715_v23 = vsel %vm4077_vm8, %v4674_v13, 0.0 }
 0x2dc   : > { %v4451_v26 = vsel %vm4077_vm8, %v8849_v32, 0.0  ;;  %v4553_v61 = vsel %vm4077_vm8, %v4507_v42, 0.0  ;;  %v4713_v33 = vsel %vm4077_vm8, %v4673_v41, 0.0  ;;  %v4615_v28 = vsel %vm4077_vm8, %v8854_v53, 0.0 }
 0x2dd   : > { %v8927_v56 = vpop.f32.mrb[52].mxu0  ;;  %v4552_v63 = vadd.f32 %v4551_v31, %v4550_v62  ;;  %v4614_v39 = vadd.f32 %v4613_v1, %v4612_v49  ;;  %v4714_v46 = vadd.f32 %v4713_v33, %v4712_v8  ;;  %4957 = vrot.lane.b32.xlu1 %v4824_v37, %s6951_s27  ;;  %v4717_v32 = vsel %vm4077_vm8, %v4675_v60, 0.0 }
 0x2de   : > { %v8932_v15 = vpop.f32.mrb[48].mxu1  ;;  %v8934_v2 = vpop.f32.mrb[53].mxu0  ;;  %v4452_v13 = vadd.f32 %v4451_v26, %v4450_v4  ;;  %v4453_v44 = vsel %vm4077_vm8, %v8883_v16, 0.0  ;;  %v4508_v42 = vmul.f32 %v8883_v16, %v8883_v16  ;;  %4955 = vrot.lane.b32.xlu0 %v4823_v59, %s6951_s27  ;;  %v4510_v8 = vmul.f32 %v8874_v43, %v8874_v43 }
 0x2df   : > { %v8942_v53 = vpop.f32.mrb[49].mxu1  ;;  %v8944_v20 = vpop.f32.mrb[54].mxu0  ;;  %v4716_v27 = vadd.f32 %v4715_v23, %v4714_v46  ;;  %v4554_v51 = vadd.f32 %v4553_v61, %v4552_v63  ;;  %v4616_v38 = vadd.f32 %v4615_v28, %v4614_v39  ;;  %v4617_v37 = vsel %vm4077_vm8, %v8887_v35, 0.0 }
 0x2e0   : > { %v8948_v11 = vpop.f32.mrb[55].mxu0  ;;  %v8950_v24 = vpop.f32.mrb[50].mxu1  ;;  %v4454_v1 = vadd.f32 %v4453_v44, %v4452_v13  ;;  %v4555_v60 = vsel %vm4077_vm8, %v4508_v42, 0.0  ;;  %v4676_v4 = vmul.f32 %v8887_v35, %v8887_v35  ;;  %v4678_v58 = vmul.f32 %v8881_v34, %v8881_v34 }
 0x2e1   : > { %v8957_v19 = vpop.f32.mrb[51].mxu1  ;;  %v4556_v41 = vadd.f32 %v4555_v60, %v4554_v51  ;;  %v4618_v31 = vadd.f32 %v4617_v37, %v4616_v38  ;;  %v4718_v62 = vadd.f32 %v4717_v32, %v4716_v27  ;;  %v4511_v59 = vmul.f32 %v8889_v25, %v8889_v25 }
 0x2e2   : > { %v4719_v49 = vsel %vm4077_vm8, %v4676_v4, 0.0  ;;  %v4812_v23 = vpack.c.bf16 %v8889_v25, %v8874_v43  ;;  %v4455_v26 = vsel %vm4077_vm8, %v8897_v0, 0.0  ;;  %v4509_v63 = vmul.f32 %v8897_v0, %v8897_v0 }
 0x2e3   : > { %v4720_v61 = vadd.f32 %v4719_v49, %v4718_v62  ;;  %v4456_v33 = vadd.f32 %v4455_v26, %v4454_v1  ;;  %v4811_v28 = vpack.c.bf16 %v8897_v0, %v8883_v16  ;;  %v4457_v39 = vsel %vm4077_vm8, %v8874_v43, 0.0 }
 0x2e4   : > { %v4621_v46 = vsel %vm4077_vm8, %v8881_v34, 0.0  ;;  %v4679_v32 = vmul.f32 %v8899_v17, %v8899_v17  ;;  %v4826_v13 = vpack.c.bf16 %v8899_v17, %v8881_v34  ;;  %4917 = vrot.lane.b32.xlu1 %v4812_v23, %s6950_s26  ;;  %v4557_v27 = vsel %vm4077_vm8, %v4509_v63, 0.0 }
 0x2e5   : > { %v8981_v44 = vpop.f32.mrb[56].mxu0  ;;  %v4458_v42 = vadd.f32 %v4457_v39, %v4456_v33  ;;  %v4619_v16 = vsel %vm4077_vm8, %v8902_v54, 0.0  ;;  %v4677_v43 = vmul.f32 %v8902_v54, %v8902_v54  ;;  %4915 = vrot.lane.b32.xlu0 %v4811_v28, %s6950_s26  ;;  %v4559_v34 = vsel %vm4077_vm8, %v4510_v8, 0.0 }
 0x2e6   : > { %v8989_v0 = vpop.f32.mrb[52].mxu1  ;;  %v8991_v51 = vpop.f32.mrb[57].mxu0  ;;  %v4558_v38 = vadd.f32 %v4557_v27, %v4556_v41  ;;  %v4620_v1 = vadd.f32 %v4619_v16, %v4618_v31  ;;  %v4825_v60 = vpack.c.bf16 %v8902_v54, %v8887_v35  ;;  %v4723_v62 = vsel %vm4077_vm8, %v4678_v58, 0.0 }
 0x2e7   : > { %v8996_v37 = vpop.f32.mrb[53].mxu1  ;;  %v8998_v4 = vpop.f32.mrb[58].mxu0  ;;  %v4459_v49 = vsel %vm4077_vm8, %v8889_v25, 0.0  ;;  %v4561_v23 = vsel %vm4077_vm8, %v4511_v59, 0.0  ;;  %v4721_v26 = vsel %vm4077_vm8, %v4677_v43, 0.0  ;;  %v4623_v35 = vsel %vm4077_vm8, %v8899_v17, 0.0 }
 0x2e8   : > { %v9005_v33 = vpop.f32.mrb[59].mxu0  ;;  %v9007_v8 = vpop.f32.mrb[54].mxu1  ;;  %v4560_v41 = vadd.f32 %v4559_v34, %v4558_v38  ;;  %v4622_v54 = vadd.f32 %v4621_v46, %v4620_v1  ;;  %v4722_v31 = vadd.f32 %v4721_v26, %v4720_v61  ;;  %4961 = vrot.lane.b32.xlu1 %v4826_v13, %s6951_s27  ;;  %v4725_v25 = vsel %vm4077_vm8, %v4679_v32, 0.0 }
 0x2e9   : > { %v9012_v58 = vpop.f32.mrb[55].mxu1  ;;  %v4460_v63 = vadd.f32 %v4459_v49, %v4458_v42  ;;  %v4461_v59 = vsel %vm4077_vm8, %v8934_v2, 0.0  ;;  %v4512_v28 = vmul.f32 %v8934_v2, %v8934_v2  ;;  %4959 = vrot.lane.b32.xlu0 %v4825_v60, %s6951_s27  ;;  %v4514_v17 = vmul.f32 %v8927_v56, %v8927_v56 }
 0x2ea   : > { %v4724_v39 = vadd.f32 %v4723_v62, %v4722_v31  ;;  %v4562_v61 = vadd.f32 %v4561_v23, %v4560_v41  ;;  %v4624_v46 = vadd.f32 %v4623_v35, %v4622_v54  ;;  %v4625_v32 = vsel %vm4077_vm8, %v8942_v53, 0.0 }
 0x2eb   : > { %v4462_v13 = vadd.f32 %v4461_v59, %v4460_v63  ;;  %v4563_v27 = vsel %vm4077_vm8, %v4512_v28, 0.0  ;;  %v4680_v42 = vmul.f32 %v8942_v53, %v8942_v53  ;;  %v4682_v16 = vmul.f32 %v8932_v15, %v8932_v15 }
 0x2ec   : > { %v4564_v43 = vadd.f32 %v4563_v27, %v4562_v61  ;;  %v4626_v34 = vadd.f32 %v4625_v32, %v4624_v46  ;;  %v4726_v38 = vadd.f32 %v4725_v25, %v4724_v39  ;;  %v4515_v62 = vmul.f32 %v8944_v20, %v8944_v20 }
 0x2ed   : > { %v9029_v1 = vpop.f32.mrb[60].mxu0  ;;  %v4727_v60 = vsel %vm4077_vm8, %v4680_v42, 0.0  ;;  %v4814_v49 = vpack.c.bf16 %v8944_v20, %v8927_v56  ;;  %v4463_v23 = vsel %vm4077_vm8, %v8948_v11, 0.0  ;;  %v4513_v31 = vmul.f32 %v8948_v11, %v8948_v11 }
 0x2ee   : > { %v9038_v26 = vpop.f32.mrb[56].mxu1  ;;  %v9040_v41 = vpop.f32.mrb[61].mxu0  ;;  %v4728_v35 = vadd.f32 %v4727_v60, %v4726_v38  ;;  %v4464_v54 = vadd.f32 %v4463_v23, %v4462_v13  ;;  %v4813_v25 = vpack.c.bf16 %v8948_v11, %v8934_v2  ;;  %v4465_v28 = vsel %vm4077_vm8, %v8927_v56, 0.0 }
 0x2ef   : > { %v9046_v63 = vpop.f32.mrb[57].mxu1  ;;  %v9048_v59 = vpop.f32.mrb[62].mxu0  ;;  %v4629_v39 = vsel %vm4077_vm8, %v8932_v15, 0.0  ;;  %v4683_v61 = vmul.f32 %v8950_v24, %v8950_v24  ;;  %v4828_v46 = vpack.c.bf16 %v8950_v24, %v8932_v15  ;;  %4921 = vrot.lane.b32.xlu1 %v4814_v49, %s6950_s26  ;;  %v4565_v27 = vsel %vm4077_vm8, %v4513_v31, 0.0 }
 0x2f0   : > { %v9059_v13 = vpop.f32.mrb[63].mxu0  ;;  %v9061_v2 = vpop.f32.mrb[58].mxu1  ;;  %v4466_v11 = vadd.f32 %v4465_v28, %v4464_v54  ;;  %v4627_v56 = vsel %vm4077_vm8, %v8957_v19, 0.0  ;;  %v4681_v32 = vmul.f32 %v8957_v19, %v8957_v19  ;;  %4919 = vrot.lane.b32.xlu0 %v4813_v25, %s6950_s26  ;;  %v4567_v15 = vsel %vm4077_vm8, %v4514_v17, 0.0 }
 0x2f1   : > { %v9069_v42 = vpop.f32.mrb[59].mxu1  ;;  %v4566_v38 = vadd.f32 %v4565_v27, %v4564_v43  ;;  %v4628_v60 = vadd.f32 %v4627_v56, %v4626_v34  ;;  %v4827_v49 = vpack.c.bf16 %v8957_v19, %v8942_v53  ;;  %v4731_v23 = vsel %vm4077_vm8, %v4682_v16, 0.0 }
 0x2f2   : > { %v4467_v54 = vsel %vm4077_vm8, %v8944_v20, 0.0  ;;  %v4569_v31 = vsel %vm4077_vm8, %v4515_v62, 0.0  ;;  %v4729_v28 = vsel %vm4077_vm8, %v4681_v32, 0.0  ;;  %v4631_v25 = vsel %vm4077_vm8, %v8950_v24, 0.0 }
 0x2f3   : > { %v4568_v45 = vadd.f32 %v4567_v15, %v4566_v38  ;;  %v4630_v3 = vadd.f32 %v4629_v39, %v4628_v60  ;;  %v4730_v17 = vadd.f32 %v4729_v28, %v4728_v35  ;;  %4965 = vrot.lane.b32.xlu1 %v4828_v46, %s6951_s27  ;;  %v4733_v43 = vsel %vm4077_vm8, %v4683_v61, 0.0 }
 0x2f4   : > { %v4468_v53 = vadd.f32 %v4467_v54, %v4466_v11  ;;  %v4469_v19 = vsel %vm4077_vm8, %v8991_v51, 0.0  ;;  %v4516_v20 = vmul.f32 %v8991_v51, %v8991_v51  ;;  %4963 = vrot.lane.b32.xlu0 %v4827_v49, %s6951_s27  ;;  %v4518_v34 = vmul.f32 %v8981_v44, %v8981_v44 }
 0x2f5   : > { %v4732_v16 = vadd.f32 %v4731_v23, %v4730_v17  ;;  %v4570_v24 = vadd.f32 %v4569_v31, %v4568_v45  ;;  %v4632_v62 = vadd.f32 %v4631_v25, %v4630_v3  ;;  %v4633_v46 = vsel %vm4077_vm8, %v8996_v37, 0.0 }
 0x2f6   : > { %v9090_v35 = vpop.f32.mrb[60].mxu1  ;;  %v4470_v39 = vadd.f32 %v4469_v19, %v4468_v53  ;;  %v4571_v61 = vsel %vm4077_vm8, %v4516_v20, 0.0  ;;  %v4684_v11 = vmul.f32 %v8996_v37, %v8996_v37  ;;  %v4686_v56 = vmul.f32 %v8989_v0, %v8989_v0 }
 0x2f7   : > { %v9097_v27 = vpop.f32.mrb[61].mxu1  ;;  %v4572_v32 = vadd.f32 %v4571_v61, %v4570_v24  ;;  %v4634_v15 = vadd.f32 %v4633_v46, %v4632_v62  ;;  %v4734_v45 = vadd.f32 %v4733_v43, %v4732_v16  ;;  %v4519_v60 = vmul.f32 %v8998_v4, %v8998_v4 }
 0x2f8   : > { %v9101_v3 = vpop.f32.mrb[62].mxu1  ;;  %v4735_v38 = vsel %vm4077_vm8, %v4684_v11, 0.0  ;;  %v4816_v49 = vpack.c.bf16 %v8998_v4, %v8981_v44  ;;  %v4471_v23 = vsel %vm4077_vm8, %v9005_v33, 0.0  ;;  %v4517_v25 = vmul.f32 %v9005_v33, %v9005_v33 }
 0x2f9   : > { %v9110_v54 = vpop.f32.mrb[63].mxu1  ;;  %v4736_v31 = vadd.f32 %v4735_v38, %v4734_v45  ;;  %v4472_v28 = vadd.f32 %v4471_v23, %v4470_v39  ;;  %v4815_v17 = vpack.c.bf16 %v9005_v33, %v8991_v51  ;;  %v4473_v43 = vsel %vm4077_vm8, %v8981_v44, 0.0 }
 0x2fa   : > { %v4637_v53 = vsel %vm4077_vm8, %v8989_v0, 0.0  ;;  %v4687_v19 = vmul.f32 %v9007_v8, %v9007_v8  ;;  %v4830_v20 = vpack.c.bf16 %v9007_v8, %v8989_v0  ;;  %4925 = vrot.lane.b32.xlu1 %v4816_v49, %s6950_s26  ;;  %v4573_v24 = vsel %vm4077_vm8, %v4517_v25, 0.0 }
 0x2fb   : > { %v4474_v16 = vadd.f32 %v4473_v43, %v4472_v28  ;;  %v4635_v51 = vsel %vm4077_vm8, %v9012_v58, 0.0  ;;  %v4685_v44 = vmul.f32 %v9012_v58, %v9012_v58  ;;  %4923 = vrot.lane.b32.xlu0 %v4815_v17, %s6950_s26  ;;  %v4575_v33 = vsel %vm4077_vm8, %v4518_v34, 0.0 }
 0x2fc   : > { %v4574_v62 = vadd.f32 %v4573_v24, %v4572_v32  ;;  %v4636_v39 = vadd.f32 %v4635_v51, %v4634_v15  ;;  %v4829_v0 = vpack.c.bf16 %v9012_v58, %v8996_v37  ;;  %v4739_v61 = vsel %vm4077_vm8, %v4686_v56, 0.0 }
 0x2fd   : > { %v4475_v46 = vsel %vm4077_vm8, %v8998_v4, 0.0  ;;  %v4577_v11 = vsel %vm4077_vm8, %v4519_v60, 0.0  ;;  %v4737_v45 = vsel %vm4077_vm8, %v4685_v44, 0.0  ;;  %v4639_v49 = vsel %vm4077_vm8, %v9007_v8, 0.0 }
 0x2fe   : > { %v4576_v38 = vadd.f32 %v4575_v33, %v4574_v62  ;;  %v4638_v23 = vadd.f32 %v4637_v53, %v4636_v39  ;;  %v4738_v34 = vadd.f32 %v4737_v45, %v4736_v31  ;;  %4969 = vrot.lane.b32.xlu1 %v4830_v20, %s6951_s27  ;;  %v4741_v32 = vsel %vm4077_vm8, %v4687_v19, 0.0 }
 0x2ff   : > { %v4476_v37 = vadd.f32 %v4475_v46, %v4474_v16  ;;  %v4477_v58 = vsel %vm4077_vm8, %v9040_v41, 0.0  ;;  %v4520_v4 = vmul.f32 %v9040_v41, %v9040_v41  ;;  %4967 = vrot.lane.b32.xlu0 %v4829_v0, %s6951_s27  ;;  %v4481_v15 = vsel %vm4077_vm8, %v9029_v1, 0.0 }
 0x300   : > { %v4740_v56 = vadd.f32 %v4739_v61, %v4738_v34  ;;  %v4578_v8 = vadd.f32 %v4577_v11, %v4576_v38  ;;  %v4640_v60 = vadd.f32 %v4639_v49, %v4638_v23  ;;  %v4641_v25 = vsel %vm4077_vm8, %v9046_v63, 0.0 }
 0x301   : > { %v4478_v31 = vadd.f32 %v4477_v58, %v4476_v37  ;;  %v4579_v28 = vsel %vm4077_vm8, %v4520_v4, 0.0  ;;  %v4688_v17 = vmul.f32 %v9046_v63, %v9046_v63  ;;  %v4522_v43 = vmul.f32 %v9029_v1, %v9029_v1 }
 0x302   : > { %v4580_v53 = vadd.f32 %v4579_v28, %v4578_v8  ;;  %v4642_v19 = vadd.f32 %v4641_v25, %v4640_v60  ;;  %v4742_v20 = vadd.f32 %v4741_v32, %v4740_v56  ;;  %v4690_v16 = vmul.f32 %v9038_v26, %v9038_v26 }
 0x303   : > { %v4743_v24 = vsel %vm4077_vm8, %v4688_v17, 0.0  ;;  %v4818_v51 = vpack.c.bf16 %v9048_v59, %v9029_v1  ;;  %v4479_v44 = vsel %vm4077_vm8, %v9059_v13, 0.0  ;;  %v4521_v39 = vmul.f32 %v9059_v13, %v9059_v13 }
 0x304   : > { %v4744_v33 = vadd.f32 %v4743_v24, %v4742_v20  ;;  %v4480_v62 = vadd.f32 %v4479_v44, %v4478_v31  ;;  %v4817_v0 = vpack.c.bf16 %v9059_v13, %v9040_v41  ;;  %v4645_v61 = vsel %vm4077_vm8, %v9038_v26, 0.0 }
 0x305   : > { %v4483_v46 = vsel %vm4077_vm8, %v9048_v59, 0.0  ;;  %v4523_v1 = vmul.f32 %v9048_v59, %v9048_v59  ;;  %v4832_v11 = vpack.c.bf16 %v9061_v2, %v9038_v26  ;;  %4929 = vrot.lane.b32.xlu1 %v4818_v51, %s6950_s26  ;;  %v4581_v38 = vsel %vm4077_vm8, %v4521_v39, 0.0 }
 0x306   : > { %v4482_v45 = vadd.f32 %v4481_v15, %v4480_v62  ;;  %v4643_v41 = vsel %vm4077_vm8, %v9069_v42, 0.0  ;;  %v4689_v13 = vmul.f32 %v9069_v42, %v9069_v42  ;;  %4927 = vrot.lane.b32.xlu0 %v4817_v0, %s6950_s26  ;;  %v4582_v49 = vadd.f32 %v4581_v38, %v4580_v53 }
 0x307   : > { %v4691_v59 = vmul.f32 %v9061_v2, %v9061_v2  ;;  %v4644_v23 = vadd.f32 %v4643_v41, %v4642_v19  ;;  %v4831_v26 = vpack.c.bf16 %v9069_v42, %v9046_v63  ;;  %v4583_v34 = vsel %vm4077_vm8, %v4522_v43, 0.0 }
 0x308   : > { %v4747_v32 = vsel %vm4077_vm8, %v4690_v16, 0.0  ;;  %v4484_v37 = vadd.f32 %v4483_v46, %v4482_v45  ;;  %v4745_v58 = vsel %vm4077_vm8, %v4689_v13, 0.0  ;;  %v4585_v4 = vsel %vm4077_vm8, %v4523_v1, 0.0 }
 0x309   : > { %v4584_v56 = vadd.f32 %v4583_v34, %v4582_v49  ;;  %v4646_v15 = vadd.f32 %v4645_v61, %v4644_v23  ;;  %v4746_v8 = vadd.f32 %v4745_v58, %v4744_v33  ;;  %4973 = vrot.lane.b32.xlu1 %v4832_v11, %s6951_s27  ;;  %v4647_v31 = vsel %vm4077_vm8, %v9061_v2, 0.0 }
 0x30a   : > { %v4485_v60 = vrot.slane %v4484_v37, 4  ;;  %v4649_v63 = vsel %vm4077_vm8, %v9097_v27, 0.0  ;;  %v4692_v42 = vmul.f32 %v9097_v27, %v9097_v27  ;;  %4971 = vrot.lane.b32.xlu0 %v4831_v26, %s6951_s27  ;;  %v4749_v25 = vsel %vm4077_vm8, %v4691_v59, 0.0 }
 0x30b   : > { %v4586_v28 = vadd.f32 %v4585_v4, %v4584_v56  ;;  %v4748_v17 = vadd.f32 %v4747_v32, %v4746_v8  ;;  %v4648_v43 = vadd.f32 %v4647_v31, %v4646_v15  ;;  %v4834_v20 = vpack.c.bf16 %v9101_v3, %v9090_v35 }
 0x30c   : > { %v4486_v53 = vadd.f32 %v4485_v60, %v4484_v37  ;;  %v4751_v19 = vsel %vm4077_vm8, %v4692_v42, 0.0  ;;  %v4651_v2 = vsel %vm4077_vm8, %v9110_v54, 0.0  ;;  %v4694_v33 = vmul.f32 %v9090_v35, %v9090_v35 }
 0x30d   : > { %v4587_v16 = vrot.slane %v4586_v28, 4  ;;  %v4650_v24 = vadd.f32 %v4649_v63, %v4648_v43  ;;  %v4750_v51 = vadd.f32 %v4749_v25, %v4748_v17  ;;  %v4693_v62 = vmul.f32 %v9110_v54, %v9110_v54  ;;  %4977 = vrot.lane.b32.xlu1 %v4834_v20, %s6951_s27 }
 0x30e   : > { %v4487_v44 = vrot.slane %v4486_v53, 2  ;;  %v4833_v39 = vpack.c.bf16 %v9110_v54, %v9097_v27  ;;  %v4653_v11 = vsel %vm4077_vm8, %v9090_v35, 0.0  ;;  %v4695_v45 = vmul.f32 %v9101_v3, %v9101_v3 }
 0x30f   : > { %v4588_v0 = vadd.f32 %v4587_v16, %v4586_v28  ;;  %v4752_v61 = vadd.f32 %v4751_v19, %v4750_v51  ;;  %v4652_v46 = vadd.f32 %v4651_v2, %v4650_v24  ;;  %v4753_v38 = vsel %vm4077_vm8, %v4693_v62, 0.0  ;;  %v9229_v16 = vpop.permute.xlu1 %4881  ;;  %v9231_v24 = vpop.permute.xlu0 %4879 }
 0x310   : > { %v4488_v1 = vadd.f32 %v4487_v44, %v4486_v53  ;;  %4975 = vrot.lane.b32.xlu0 %v4833_v39, %s6951_s27  ;;  %v4755_v54 = vsel %vm4077_vm8, %v4694_v33, 0.0  ;;  %v4655_v59 = vsel %vm4077_vm8, %v9101_v3, 0.0  ;;  %v4757_v32 = vsel %vm4077_vm8, %v4695_v45, 0.0  ;;  %v9605_v39 = vld [vmem:[#allocation16_spill] sm:$0xff]  ;;  %v9608_v45 = vld [vmem:[#allocation18_spill] sm:$0xff] }
 0x311   : > { %v4589_v41 = vrot.slane %v4588_v0, 2  ;;  %v4654_v13 = vadd.f32 %v4653_v11, %v4652_v46  ;;  %v4754_v49 = vadd.f32 %v4753_v38, %v4752_v61  ;;  %v9609_v38 = vld [vmem:[#allocation9_spill] sm:$0xff] }
 0x312   : > { %v4489_v27 = vrot.slane %v4488_v1, 1 }
 0x313   : > { %v4590_v23 = vadd.f32 %v4589_v41, %v4588_v0  ;;  %v4656_v26 = vadd.f32 %v4655_v59, %v4654_v13  ;;  %v4756_v34 = vadd.f32 %v4755_v54, %v4754_v49  ;;  %v9606_v0 = vld [vmem:[#allocation2_spill] sm:$0xff]  ;;  %v9610_v41 = vpack.c.bf16 %v9608_v45, %v9609_v38 }
 0x314   : > { %v4490_v35 = vadd.f32 %v4489_v27, %v4488_v1  ;;  %v9607_v61 = vpack.c.bf16 %v9605_v39, %v9606_v0 }
 0x315   : > { %v4591_v37 = vrot.slane %v4590_v23, 1  ;;  %v4657_v58 = vrot.slane %v4656_v26, 4  ;;  %v4758_v4 = vadd.f32 %v4757_v32, %v4756_v34  ;;  %v4981_v13 = vsel %vm4077_vm8, %v9610_v41, %v8746_v9  ;;  %v9611_v32 = vld [vmem:[#allocation23_spill] sm:$0xff] }
 0x316   : > { %v4491_v56 = vadd.f32 %v4490_v35, %v8734_v30  ;;  %v4984_v46 = vsel %vm4077_vm8, %v9607_v61, %v8742_v47 }
 0x317   : > { %v4592_v15 = vadd.f32 %v4591_v37, %v4590_v23  ;;  %v4658_v8 = vadd.f32 %v4657_v58, %v4656_v26  ;;  %v4759_v60 = vrot.slane %v4758_v4, 4  ;;  %v9612_v37 = vld [vmem:[#allocation19_spill] sm:$0xff] }
 0x318   : > { %v9613_v58 = vpack.c.bf16 %v9611_v32, %v9612_v37 }
 0x319   : > { %v4593_v31 = vadd.f32 %v4592_v15, %v8738_v52  ;;  %v4659_v63 = vrot.slane %v4658_v8, 2  ;;  %v4760_v42 = vadd.f32 %v4759_v60, %v4758_v4  ;;  %v9615_v15 = vld [vmem:[#allocation21_spill] sm:$0xff] }
 0x31a   : > { %v4990_v4 = vsel %vm4077_vm8, %v9613_v58, %v8740_v12 }
 0x31b   : > { %v4660_v3 = vadd.f32 %v4659_v63, %v4658_v8  ;;  %v4761_v28 = vrot.slane %v4760_v42, 2 }
 0x31d   : > { %v4661_v25 = vrot.slane %v4660_v3, 1  ;;  %v4762_v17 = vadd.f32 %v4761_v28, %v4760_v42 }
 0x31f   : > { %v4662_v43 = vadd.f32 %v4661_v25, %v4660_v3  ;;  %v4763_v53 = vrot.slane %v4762_v17, 1 }
 0x321   : > { %v4663_v19 = vadd.f32 %v4662_v43, %v4491_v56  ;;  %v4764_v20 = vadd.f32 %v4763_v53, %v4762_v17  ;;  %v9614_v56 = vld [vmem:[#allocation24_spill] sm:$0xff] }
 0x322   : > { %v9616_v8 = vpack.c.bf16 %v9614_v56, %v9615_v15 }
 0x323   : > { %v4765_v2 = vadd.f32 %v4764_v20, %v4593_v31  ;;  %v9617_v20 = vld [vmem:[#allocation29_spill] sm:$0xff] }
 0x324   : > { %v4987_v60 = vsel %vm4077_vm8, %v9616_v8, %v8744_v21 }
 0x325   : > { %v4767_v30 = vsel %vm4766_vm9, %v4663_v19, %v4765_v2  ;;  %v9618_v2 = vld [vmem:[#allocation26_spill] sm:$0xff] }
 0x326   : > { %v4769_v52 = vsel %vm4768_vm10, %v4767_v30, 0.0  ;;  %v9619_v30 = vpack.c.bf16 %v9617_v20, %v9618_v2 }
 0x327   : > { %4770 = vst.msk [vmem:[%s181_s4] sm:$0xff] %vm4077_vm8, %v4769_v52 }
 0x328   : > { %v4996_v52 = vsel %vm4077_vm8, %v9619_v30, %v8748_v22 }
 0x32c   : > { %v4902_v51 = vpop.permute.xlu1 %4901 }
 0x32d   : > { %v4900_v44 = vpop.permute.xlu0 %4899  ;;  %v5030_v1 = vsel %vm919_vm3, %v4984_v46, %v4902_v51  ;;  %v9620_v51 = vld [vmem:[#allocation31_spill] sm:$0xff] }
 0x32e   : > { %v5028_v49 = vsel %vm919_vm3, %v4981_v13, %v4900_v44  ;;  %v9621_v44 = vld [vmem:[#allocation28_spill] sm:$0xff] }
 0x334   : > { %v4906_v33 = vpop.permute.xlu1 %4905 }
 0x335   : > { %v5034_v31 = vsel %vm919_vm3, %v4990_v4, %v4906_v33  ;;  %v9622_v33 = vpack.c.bf16 %v9620_v51, %v9621_v44 }
 0x336   : > { %v4904_v62 = vpop.permute.xlu0 %4903 }
 0x337   : > { %v5032_v42 = vsel %vm919_vm3, %v4987_v60, %v4904_v62  ;;  %v4993_v62 = vsel %vm4077_vm8, %v9622_v33, %v8750_v48 }
 0x338   : > { %v4950_v11 = vpop.permute.xlu1 %4949 }
 0x339   : > { %v5063_v47 = vsel %vm5059_vm11, %v5030_v1, %v4950_v11 }
 0x33a   : > { %v5662_v27 = vcombine.low %v5063_v47, %v5063_v47  ;;  %v5663_v54 = vcombine.high %v5063_v47, %v5063_v47  ;;  %v4948_v59 = vpop.permute.xlu0 %4947  ;;  %v9623_v47 = vld [vmem:[#allocation13_spill] sm:$0xff] }
 0x33b   : > { %v5061_v23 = vsel %vm5059_vm11, %v5028_v49, %v4948_v59  ;;  %v9624_v49 = vld [vmem:[#allocation33_spill] sm:$0xff]  ;;  %v9626_v59 = vld [vmem:[#allocation34_spill] sm:$0xff] }
 0x33c   : > { %5207 = vst.msk [vmem:[%s9248_s13 + $0x8] sm:$0xf] %vm5204_vm12, %v5662_v27  ;;  %5208 = vst.msk [vmem:[%s9248_s13 + $0xc] sm:$0xf] %vm5204_vm12, %v5663_v54  ;;  %v5660_v9 = vcombine.low %v5061_v23, %v5061_v23  ;;  %v5661_v26 = vcombine.high %v5061_v23, %v5061_v23  ;;  %v9625_v27 = vpack.c.bf16 %v9623_v47, %v9624_v49  ;;  %v9627_v23 = vld [vmem:[#allocation11_spill] sm:$0xff] }
 0x33e   : > { %5205 = vst.msk [vmem:[%s9248_s13] sm:$0xf] %vm5204_vm12, %v5660_v9  ;;  %5206 = vst.msk [vmem:[%s9248_s13 + $0x4] sm:$0xf] %vm5204_vm12, %v5661_v26  ;;  %v5002_v54 = vsel %vm4077_vm8, %v9625_v27, %v8752_v7  ;;  %v9628_v9 = vpack.c.bf16 %v9626_v59, %v9627_v23 }
 0x340   : > { %v4910_v34 = vpop.permute.xlu1 %4909  ;;  %v4999_v26 = vsel %vm4077_vm8, %v9628_v9, %v8754_v36 }
 0x341   : > { %v4908_v35 = vpop.permute.xlu0 %4907  ;;  %v5038_v39 = vsel %vm919_vm3, %v4996_v52, %v4910_v34 }
 0x342   : > { %v5036_v61 = vsel %vm919_vm3, %v4993_v62, %v4908_v35 }
 0x344   : > { %v4954_v63 = vpop.permute.xlu1 %4953 }
 0x345   : > { %v5067_v3 = vsel %vm5059_vm11, %v5034_v31, %v4954_v63  ;;  %v4952_v28 = vpop.permute.xlu0 %4951 }
 0x346   : > { %v5666_v25 = vcombine.low %v5067_v3, %v5067_v3  ;;  %v5667_v17 = vcombine.high %v5067_v3, %v5067_v3  ;;  %v5065_v43 = vsel %vm5059_vm11, %v5032_v42, %v4952_v28 }
 0x347   : > { %v5664_v53 = vcombine.low %v5065_v43, %v5065_v43  ;;  %v5665_v12 = vcombine.high %v5065_v43, %v5065_v43 }
 0x348   : > { %5211 = vst.msk [vmem:[%s9248_s13 + $0x18] sm:$0xf] %vm5204_vm12, %v5666_v25  ;;  %5212 = vst.msk [vmem:[%s9248_s13 + $0x1c] sm:$0xf] %vm5204_vm12, %v5667_v17 }
 0x349   : > { %5209 = vst.msk [vmem:[%s9248_s13 + $0x10] sm:$0xf] %vm5204_vm12, %v5664_v53  ;;  %5210 = vst.msk [vmem:[%s9248_s13 + $0x14] sm:$0xf] %vm5204_vm12, %v5665_v12 }
 0x34b   : > { %v4914_v21 = vpop.permute.xlu1 %4913 }
 0x34c   : > { %v4912_v19 = vpop.permute.xlu0 %4911  ;;  %v5042_v34 = vsel %vm919_vm3, %v5002_v54, %v4914_v21 }
 0x34d   : > { %v5040_v32 = vsel %vm919_vm3, %v4999_v26, %v4912_v19 }
 0x34f   : > { %v4958_v0 = vpop.permute.xlu1 %4957 }
 0x350   : > { %v5071_v46 = vsel %vm5059_vm11, %v5038_v39, %v4958_v0  ;;  %v4956_v1 = vpop.permute.xlu0 %4955 }
 0x351   : > { %v5670_v11 = vcombine.low %v5071_v46, %v5071_v46  ;;  %v5671_v45 = vcombine.high %v5071_v46, %v5071_v46  ;;  %v5069_v38 = vsel %vm5059_vm11, %v5036_v61, %v4956_v1 }
 0x352   : > { %v5668_v41 = vcombine.low %v5069_v38, %v5069_v38  ;;  %v5669_v22 = vcombine.high %v5069_v38, %v5069_v38 }
 0x353   : > { %5215 = vst.msk [vmem:[%s9248_s13 + $0x28] sm:$0xf] %vm5204_vm12, %v5670_v11  ;;  %5216 = vst.msk [vmem:[%s9248_s13 + $0x2c] sm:$0xf] %vm5204_vm12, %v5671_v45 }
 0x354   : > { %5213 = vst.msk [vmem:[%s9248_s13 + $0x20] sm:$0xf] %vm5204_vm12, %v5668_v41  ;;  %5214 = vst.msk [vmem:[%s9248_s13 + $0x24] sm:$0xf] %vm5204_vm12, %v5669_v22 }
 0x356   : > { %v4918_v48 = vpop.permute.xlu1 %4917 }
 0x357   : > { %v4916_v13 = vpop.permute.xlu0 %4915  ;;  %v5046_v31 = vsel %vm919_vm3, %v8760_v29, %v4918_v48  ;;  %v9629_v48 = vpack.c.bf16 %v8521_v18, %v8504_v55  ;;  %v9630_v55 = vpack.c.bf16 %v8531_v57, %v8512_v40 }
 0x358   : > { %v5044_v42 = vsel %vm919_vm3, %v8766_v10, %v4916_v13 }
 0x359   : > { %v5023_v18 = vsel %vm4077_vm8, %v9630_v55, %v9231_v24 }
 0x35a   : > { %v4962_v35 = vpop.permute.xlu1 %4961 }
 0x35b   : > { %v5075_v37 = vsel %vm5059_vm11, %v5042_v34, %v4962_v35  ;;  %v4960_v58 = vpop.permute.xlu0 %4959 }
 0x35c   : > { %v5674_v4 = vcombine.low %v5075_v37, %v5075_v37  ;;  %v5675_v56 = vcombine.high %v5075_v37, %v5075_v37  ;;  %v5073_v15 = vsel %vm5059_vm11, %v5040_v32, %v4960_v58 }
 0x35d   : > { %v5672_v8 = vcombine.low %v5073_v15, %v5073_v15  ;;  %v5673_v7 = vcombine.high %v5073_v15, %v5073_v15 }
 0x35e   : > { %5219 = vst.msk [vmem:[%s9248_s13 + $0x38] sm:$0xf] %vm5204_vm12, %v5674_v4  ;;  %5220 = vst.msk [vmem:[%s9248_s13 + $0x3c] sm:$0xf] %vm5204_vm12, %v5675_v56 }
 0x35f   : > { %5217 = vst.msk [vmem:[%s9248_s13 + $0x30] sm:$0xf] %vm5204_vm12, %v5672_v8  ;;  %5218 = vst.msk [vmem:[%s9248_s13 + $0x34] sm:$0xf] %vm5204_vm12, %v5673_v7 }
 0x361   : > { %v4922_v36 = vpop.permute.xlu1 %4921 }
 0x362   : > { %v4920_v60 = vpop.permute.xlu0 %4919  ;;  %v5050_v21 = vsel %vm919_vm3, %v8772_v5, %v4922_v36 }
 0x363   : > { %v5048_v20 = vsel %vm919_vm3, %v8778_v14, %v4920_v60 }
 0x365   : > { %v4966_v63 = vpop.permute.xlu1 %4965 }
 0x366   : > { %v5079_v3 = vsel %vm5059_vm11, %v5046_v31, %v4966_v63  ;;  %v4964_v28 = vpop.permute.xlu0 %4963 }
 0x367   : > { %v5678_v25 = vcombine.low %v5079_v3, %v5079_v3  ;;  %v5679_v17 = vcombine.high %v5079_v3, %v5079_v3  ;;  %v5077_v43 = vsel %vm5059_vm11, %v5044_v42, %v4964_v28 }
 0x368   : > { %v5676_v53 = vcombine.low %v5077_v43, %v5077_v43  ;;  %v5677_v12 = vcombine.high %v5077_v43, %v5077_v43 }
 0x369   : > { %5223 = vst.msk [vmem:[%s9248_s13 + $0x48] sm:$0xf] %vm5204_vm12, %v5678_v25  ;;  %5224 = vst.msk [vmem:[%s9248_s13 + $0x4c] sm:$0xf] %vm5204_vm12, %v5679_v17 }
 0x36a   : > { %5221 = vst.msk [vmem:[%s9248_s13 + $0x40] sm:$0xf] %vm5204_vm12, %v5676_v53  ;;  %5222 = vst.msk [vmem:[%s9248_s13 + $0x44] sm:$0xf] %vm5204_vm12, %v5677_v12 }
 0x36c   : > { %v4926_v29 = vpop.permute.xlu1 %4925 }
 0x36d   : > { %v4924_v10 = vpop.permute.xlu0 %4923  ;;  %v5054_v39 = vsel %vm919_vm3, %v8784_v6, %v4926_v29  ;;  %v5026_v6 = vsel %vm4077_vm8, %v9629_v48, %v9229_v16 }
 0x36e   : > { %v5052_v61 = vsel %vm919_vm3, %v8790_v50, %v4924_v10 }
 0x370   : > { %v4970_v19 = vpop.permute.xlu1 %4969 }
 0x371   : > { %v5083_v2 = vsel %vm5059_vm11, %v5050_v21, %v4970_v19  ;;  %v4968_v30 = vpop.permute.xlu0 %4967 }
 0x372   : > { %v5682_v52 = vcombine.low %v5083_v2, %v5083_v2  ;;  %v5683_v51 = vcombine.high %v5083_v2, %v5083_v2  ;;  %v5081_v44 = vsel %vm5059_vm11, %v5048_v20, %v4968_v30 }
 0x373   : > { %v5680_v33 = vcombine.low %v5081_v44, %v5081_v44  ;;  %v5681_v62 = vcombine.high %v5081_v44, %v5081_v44 }
 0x374   : > { %5227 = vst.msk [vmem:[%s9248_s13 + $0x58] sm:$0xf] %vm5204_vm12, %v5682_v52  ;;  %5228 = vst.msk [vmem:[%s9248_s13 + $0x5c] sm:$0xf] %vm5204_vm12, %v5683_v51 }
 0x375   : > { %5225 = vst.msk [vmem:[%s9248_s13 + $0x50] sm:$0xf] %vm5204_vm12, %v5680_v33  ;;  %5226 = vst.msk [vmem:[%s9248_s13 + $0x54] sm:$0xf] %vm5204_vm12, %v5681_v62 }
 0x377   : > { %v4930_v5 = vpop.permute.xlu1 %4929 }
 0x378   : > { %v4928_v14 = vpop.permute.xlu0 %4927  ;;  %v5058_v50 = vsel %vm919_vm3, %v5026_v6, %v4930_v5 }
 0x379   : > { %v5056_v47 = vsel %vm919_vm3, %v5023_v18, %v4928_v14 }
 0x37b   : > { %v4974_v0 = vpop.permute.xlu1 %4973 }
 0x37c   : > { %v5087_v46 = vsel %vm5059_vm11, %v5054_v39, %v4974_v0  ;;  %v4972_v1 = vpop.permute.xlu0 %4971 }
 0x37d   : > { %v5686_v11 = vcombine.low %v5087_v46, %v5087_v46  ;;  %v5687_v45 = vcombine.high %v5087_v46, %v5087_v46  ;;  %v5085_v38 = vsel %vm5059_vm11, %v5052_v61, %v4972_v1 }
 0x37e   : > { %v5684_v41 = vcombine.low %v5085_v38, %v5085_v38  ;;  %v5685_v22 = vcombine.high %v5085_v38, %v5085_v38 }
 0x37f   : > { %5231 = vst.msk [vmem:[%s9248_s13 + $0x68] sm:$0xf] %vm5204_vm12, %v5686_v11  ;;  %5232 = vst.msk [vmem:[%s9248_s13 + $0x6c] sm:$0xf] %vm5204_vm12, %v5687_v45  ;;  %v4978_v13 = vpop.permute.xlu1 %4977 }
 0x380   : > { %5229 = vst.msk [vmem:[%s9248_s13 + $0x60] sm:$0xf] %vm5204_vm12, %v5684_v41  ;;  %5230 = vst.msk [vmem:[%s9248_s13 + $0x64] sm:$0xf] %vm5204_vm12, %v5685_v22  ;;  %v5091_v16 = vsel %vm5059_vm11, %v5058_v50, %v4978_v13 }
 0x381   : > { %v5690_v49 = vcombine.low %v5091_v16, %v5091_v16  ;;  %v5691_v27 = vcombine.high %v5091_v16, %v5091_v16 }
 0x382   : > { %v4976_v54 = vpop.permute.xlu0 %4975 }
 0x383   : > { %v5089_v59 = vsel %vm5059_vm11, %v5056_v47, %v4976_v54  ;;  %5235 = vst.msk [vmem:[%s9248_s13 + $0x78] sm:$0xf] %vm5204_vm12, %v5690_v49  ;;  %5236 = vst.msk [vmem:[%s9248_s13 + $0x7c] sm:$0xf] %vm5204_vm12, %v5691_v27 }
 0x384   : > { %v5688_v23 = vcombine.low %v5089_v59, %v5089_v59  ;;  %v5689_v9 = vcombine.high %v5089_v59, %v5089_v59 }
 0x386   : > { %5233 = vst.msk [vmem:[%s9248_s13 + $0x70] sm:$0xf] %vm5204_vm12, %v5688_v23  ;;  %5234 = vst.msk [vmem:[%s9248_s13 + $0x74] sm:$0xf] %vm5204_vm12, %v5689_v9 }
 0x387 PF: > { %s14_s12 = sadd.s32 1, %s6947_s12  }
 0x388   : > { %p11_p4 = scmp.ge.s32.totalorder %s14_s12, 4  }
 0x38a   :  { %13 = sbr.rel (!%p11_p4) target bundleno = 1 (0x1), region = 70 }

</bundles_post_ra>
